<compile_context>
chip_gen: v7x
topology: tpu7x:2x2x1
jax: 0.10.0
libtpu: 0.0.40
codegen_flags: <defaults>
</compile_context>

<pallas_src>
import jax
import jax.numpy as jnp
from jax import lax
from jax.experimental import pallas as pl
from jax.experimental.pallas import tpu as pltpu

NC = 3            # input channels
NDF = 16          # base feature maps
BN_EPS = 1e-5
LRELU_SLOPE = 0.2
VMEM_LIMIT = 32 * 1024 * 1024     # far above actual use; safe on v5e/v6e/v7x


# ----------------------------- Pallas kernels ------------------------------

def _conv_bn_lrelu_kernel(p_ref, w_ref, g_ref, b_ref, o_ref):
    """Fused conv-GEMM (transposed, bf16 in / f32 acc) + batch-stats
    BatchNorm + LeakyReLU(0.2).  Single grid step; all math in f32."""
    # y^T = W^T @ P^T : (Co, M); M (= N*Ho*Wo) sits on the lane axis.
    y = jnp.dot(w_ref[...], p_ref[...], preferred_element_type=jnp.float32)
    m = y.shape[1]
    # Per-channel batch statistics: single-pass sum / sum-of-squares
    # (lane reductions on the XLU).
    s = jnp.sum(y, axis=1, keepdims=True)            # (Co, 1)
    ss = jnp.sum(y * y, axis=1, keepdims=True)       # (Co, 1)
    mean = s * (1.0 / m)
    var = jnp.maximum(ss * (1.0 / m) - mean * mean, 0.0)
    inv = lax.rsqrt(var + BN_EPS)
    scale = g_ref[...] * inv
    shift = b_ref[...] - mean * scale
    z = y * scale + shift
    o_ref[...] = jnp.where(z > 0, z, LRELU_SLOPE * z).astype(o_ref.dtype)


def _conv_bn_lrelu_final_kernel(p_ref, w_ref, g_ref, b_ref, wf_ref, sel_ref,
                                o_ref):
    """Layer-4 conv + BN + LeakyReLU, fused with the final 4x4/stride-1/pad-0
    conv (a per-sample dot over Cin x 4 x 4) + Sigmoid.  Emits (1, N) probs."""
    y = jnp.dot(w_ref[...], p_ref[...], preferred_element_type=jnp.float32)
    m = y.shape[1]
    s = jnp.sum(y, axis=1, keepdims=True)
    ss = jnp.sum(y * y, axis=1, keepdims=True)
    mean = s * (1.0 / m)
    var = jnp.maximum(ss * (1.0 / m) - mean * mean, 0.0)
    inv = lax.rsqrt(var + BN_EPS)
    scale = g_ref[...] * inv
    shift = b_ref[...] - mean * scale
    z = y * scale + shift
    act = jnp.where(z > 0, z, LRELU_SLOPE * z)        # (Co, M) f32
    # Final conv: elementwise weight product, reduce channels (sublanes),
    # then group the 16 spatial columns of each sample via a tiny matmul.
    prod = act * wf_ref[...]                          # (Co, M) f32
    col = jnp.sum(prod, axis=0, keepdims=True)        # (1, M)
    logits = jnp.dot(col, sel_ref[...],
                     preferred_element_type=jnp.float32)   # (1, N)
    o_ref[...] = jax.nn.sigmoid(logits)


# ------------------------------ Pallas wrappers -----------------------------

def _vmem_specs(n):
    return [pl.BlockSpec(memory_space=pltpu.MemorySpace.VMEM) for _ in range(n)]


def conv_bn_lrelu(patches_t, w_mat_t, gamma, beta):
    """patches_t: (K, M) bf16, w_mat_t: (Co, K) bf16, gamma/beta: (Co, 1) f32
       -> (Co, M) bf16 activation."""
    co, k = w_mat_t.shape
    m = patches_t.shape[1]
    cost = pl.CostEstimate(
        flops=2 * m * k * co + 10 * m * co,
        transcendentals=0,
        bytes_accessed=k * m * 2 + k * co * 2 + m * co * 2 + 2 * co * 4)
    return pl.pallas_call(
        _conv_bn_lrelu_kernel,
        out_shape=jax.ShapeDtypeStruct((co, m), jnp.bfloat16),
        in_specs=_vmem_specs(4),
        out_specs=pl.BlockSpec(memory_space=pltpu.MemorySpace.VMEM),
        compiler_params=pltpu.CompilerParams(vmem_limit_bytes=VMEM_LIMIT),
        cost_estimate=cost,
    )(patches_t, w_mat_t, gamma, beta)


def conv_bn_lrelu_final(patches_t, w_mat_t, gamma, beta, wf_tiled, sel_t):
    """Layer-4 + final conv + sigmoid.  Returns (1, N) f32 probabilities."""
    co, k = w_mat_t.shape
    m = patches_t.shape[1]
    n = sel_t.shape[1]
    cost = pl.CostEstimate(
        flops=2 * m * k * co + 14 * m * co + 2 * m * n,
        transcendentals=n,
        bytes_accessed=k * m * 2 + k * co * 2 + m * co * 4 + m * n * 4 + n * 4)
    return pl.pallas_call(
        _conv_bn_lrelu_final_kernel,
        out_shape=jax.ShapeDtypeStruct((1, n), jnp.float32),
        in_specs=_vmem_specs(6),
        out_specs=pl.BlockSpec(memory_space=pltpu.MemorySpace.VMEM),
        compiler_params=pltpu.CompilerParams(vmem_limit_bytes=VMEM_LIMIT),
        cost_estimate=cost,
    )(patches_t, w_mat_t, gamma, beta, wf_tiled, sel_t)


# ------------------------------- JAX glue -----------------------------------

def im2col_cfirst(x_cnhw, k, stride, pad):
    """x: (C, N, H, W) -> patches^T (k*k*C, N*Ho*Wo); K ordered (kh, kw, c)."""
    c, n, h, w = x_cnhw.shape
    xp = jnp.pad(x_cnhw, ((0, 0), (0, 0), (pad, pad), (pad, pad)))
    ho = (h + 2 * pad - k) // stride + 1
    wo = (w + 2 * pad - k) // stride + 1
    slabs = []
    for kh in range(k):
        for kw in range(k):
            slabs.append(xp[:, :, kh:kh + stride * ho:stride,
                            kw:kw + stride * wo:stride])
    pt = jnp.concatenate(slabs, axis=0)              # (k*k*C, N, Ho, Wo)
    return pt.reshape(k * k * c, n * ho * wo), n, ho, wo


def make_params(key):
    """DCGAN-style N(0, 0.02) conv weights, default BN affine (gamma=1, beta=0).
    Conv weights are pre-reshaped to (Cout, kH*kW*Cin) matching the
    channels-first transposed patch layout; stored bf16 for the MXU."""
    chans = [(NC, NDF), (NDF, NDF * 2), (NDF * 2, NDF * 4), (NDF * 4, NDF * 8)]
    keys = jax.random.split(key, 5)
    params = []
    for i, (cin, cout) in enumerate(chans):
        w = 0.02 * jax.random.normal(keys[i], (cout, cin, 4, 4), jnp.float32)
        # (Cout, Cin, kH, kW) -> (Cout, kH, kW, Cin) -> (Cout, kH*kW*Cin)
        w_mat_t = w.transpose(0, 2, 3, 1).reshape(cout, 16 * cin)
        gamma = jnp.ones((cout, 1), jnp.float32)
        beta = jnp.zeros((cout, 1), jnp.float32)
        params.append((w_mat_t.astype(jnp.bfloat16), gamma, beta))
    w_last = 0.02 * jax.random.normal(keys[4], (1, NDF * 8, 4, 4), jnp.float32)
    params.append(w_last[0].reshape(NDF * 8, 16))    # (Cin, kH*kW) f32
    return params


def discriminator_forward(x_nchw, params):
    """x: (N, NC, 64, 64) f32 -> (N, 1, 1, 1) f32 (PyTorch forward semantics,
    BatchNorm in training mode / batch statistics)."""
    n_batch = x_nchw.shape[0]
    # Single layout conversion: NCHW -> (C, N, H, W); bf16 operands for MXU.
    h = jnp.transpose(x_nchw, (1, 0, 2, 3)).astype(jnp.bfloat16)
    for (w_mat_t, gamma, beta) in params[:3]:
        pt, n, ho, wo = im2col_cfirst(h, k=4, stride=2, pad=1)
        act = conv_bn_lrelu(pt, w_mat_t, gamma, beta)        # (Co, M) bf16
        h = act.reshape(w_mat_t.shape[0], n, ho, wo)
    # Layer 4 (+ fused final 4x4 conv + sigmoid).
    w_mat_t, gamma, beta = params[3]
    wf = params[4]                                           # (ndf*8, 16) f32
    pt, n, ho, wo = im2col_cfirst(h, k=4, stride=2, pad=1)   # M = n*16
    wf_tiled = jnp.tile(wf, (1, n))                          # (ndf*8, n*16)
    sel_t = (jnp.arange(n * ho * wo)[:, None] // (ho * wo)
             == jnp.arange(n)[None, :]).astype(jnp.float32)  # (M, n)
    out = conv_bn_lrelu_final(pt, w_mat_t, gamma, beta, wf_tiled, sel_t)
    return out.reshape(n_batch, 1, 1, 1)


def reference_forward(x_nchw, params):
    """Pure-JAX float32 reference using the same (bf16-quantized) weights."""
    h = x_nchw.astype(jnp.float32)
    for (w_mat_t, gamma, beta) in params[:4]:
        co, k2c = w_mat_t.shape
        cin = k2c // 16
        w = (w_mat_t.astype(jnp.float32)
             .reshape(co, 4, 4, cin).transpose(0, 3, 1, 2))   # OIHW
        h = lax.conv_general_dilated(
            h, w, window_strides=(2, 2), padding=((1, 1), (1, 1)),
            dimension_numbers=("NCHW", "OIHW", "NCHW"))
        mean = jnp.mean(h, axis=(0, 2, 3), keepdims=True)
        var = jnp.var(h, axis=(0, 2, 3), keepdims=True)       # biased, as BN
        hn = (h - mean) * lax.rsqrt(var + BN_EPS)
        hn = hn * gamma.reshape(1, co, 1, 1) + beta.reshape(1, co, 1, 1)
        h = jnp.where(hn > 0, hn, LRELU_SLOPE * hn)
    w_last = params[4].reshape(1, NDF * 8, 4, 4)
    h = lax.conv_general_dilated(
        h, w_last, window_strides=(1, 1), padding=((0, 0), (0, 0)),
        dimension_numbers=("NCHW", "OIHW", "NCHW"))
    return jax.nn.sigmoid(h)


# --------------------------------- main --------------------------------------

if __name__ == "__main__":
    key = jax.random.PRNGKey(0)
    k_param, k_x = jax.random.split(key)
    params = make_params(k_param)

    N, H, W = 2, 64, 64
    x = jax.random.normal(k_x, (N, NC, H, W), jnp.float32)

    fwd = jax.jit(lambda xx: discriminator_forward(xx, params))
    y = fwd(x)
    jax.block_until_ready(y)

    assert y.shape == (N, 1, 1, 1), y.shape
    assert bool(jnp.all(jnp.isfinite(y)))
    assert bool(jnp.all((y >= 0.0) & (y <= 1.0)))

    # Pure-JAX f32 reference; loose tolerance covers bf16 operands/activations.
    y_ref = reference_forward(x, params)
    assert bool(jnp.max(jnp.abs(y - y_ref)) < 0.08), (y, y_ref)

    print("KERNEL_OK")
</pallas_src>

<mosaic_0001>
module attributes {stable_mosaic.version = 11 : i64} {
  func.func @_conv_bn_lrelu_kernel(%arg0: memref<48x2048xbf16, #tpu.memory_space<vmem>>, %arg1: memref<16x48xbf16, #tpu.memory_space<vmem>>, %arg2: memref<16x1xf32, #tpu.memory_space<vmem>>, %arg3: memref<16x1xf32, #tpu.memory_space<vmem>>, %arg4: memref<16x2048xbf16, #tpu.memory_space<vmem>>) attributes {dimension_semantics = [], scalar_prefetch = 0 : i64, scratch_operands = 0 : i64, tpu.core_type = #tpu.core_type<tc>} {
    %c0 = arith.constant 0 : index
    %c0_0 = arith.constant 0 : index
    %0 = vector.load %arg1[%c0, %c0_0] : memref<16x48xbf16, #tpu.memory_space<vmem>>, vector<16x48xbf16>
    %c0_1 = arith.constant 0 : index
    %c0_2 = arith.constant 0 : index
    %1 = vector.load %arg0[%c0_1, %c0_2] : memref<48x2048xbf16, #tpu.memory_space<vmem>>, vector<48x2048xbf16>
    %cst = arith.constant dense<0.000000e+00> : vector<16x2048xf32>
    %2 = tpu.matmul %0, %1, %cst {dimension_numbers = #tpu.dot_dimension_numbers<[1], [0], [0], [1], [0, 0, 1, 1], [], []>} : vector<16x48xbf16>, vector<48x2048xbf16>, vector<16x2048xf32> -> vector<16x2048xf32>
    %cst_3 = arith.constant dense<0.000000e+00> : vector<16xf32>
    %3 = vector.multi_reduction <add>, %2, %cst_3 [1] : vector<16x2048xf32> to vector<16xf32>
    %4 = vector.shape_cast %3 : vector<16xf32> to vector<16x1xf32>
    %5 = arith.mulf %2, %2 : vector<16x2048xf32>
    %cst_4 = arith.constant dense<0.000000e+00> : vector<16xf32>
    %6 = vector.multi_reduction <add>, %5, %cst_4 [1] : vector<16x2048xf32> to vector<16xf32>
    %7 = vector.shape_cast %6 : vector<16xf32> to vector<16x1xf32>
    %cst_5 = arith.constant 4.8828125E-4 : f32
    %8 = vector.broadcast %cst_5 : f32 to vector<16x1xf32>
    %9 = arith.mulf %4, %8 : vector<16x1xf32>
    %cst_6 = arith.constant 4.8828125E-4 : f32
    %10 = vector.broadcast %cst_6 : f32 to vector<16x1xf32>
    %11 = arith.mulf %7, %10 : vector<16x1xf32>
    %12 = arith.mulf %9, %9 : vector<16x1xf32>
    %13 = arith.subf %11, %12 : vector<16x1xf32>
    %cst_7 = arith.constant 0.000000e+00 : f32
    %14 = vector.broadcast %cst_7 : f32 to vector<16x1xf32>
    %15 = arith.maximumf %13, %14 : vector<16x1xf32>
    %cst_8 = arith.constant 9.99999974E-6 : f32
    %16 = vector.broadcast %cst_8 : f32 to vector<16x1xf32>
    %17 = arith.addf %15, %16 : vector<16x1xf32>
    %18 = math.rsqrt %17 : vector<16x1xf32>
    %c0_9 = arith.constant 0 : index
    %c0_10 = arith.constant 0 : index
    %19 = vector.load %arg2[%c0_9, %c0_10] : memref<16x1xf32, #tpu.memory_space<vmem>>, vector<16x1xf32>
    %20 = arith.mulf %19, %18 : vector<16x1xf32>
    %c0_11 = arith.constant 0 : index
    %c0_12 = arith.constant 0 : index
    %21 = vector.load %arg3[%c0_11, %c0_12] : memref<16x1xf32, #tpu.memory_space<vmem>>, vector<16x1xf32>
    %22 = arith.mulf %9, %20 : vector<16x1xf32>
    %23 = arith.subf %21, %22 : vector<16x1xf32>
    %24 = vector.broadcast %20 : vector<16x1xf32> to vector<16x2048xf32>
    %25 = arith.mulf %2, %24 : vector<16x2048xf32>
    %26 = vector.broadcast %23 : vector<16x1xf32> to vector<16x2048xf32>
    %27 = arith.addf %25, %26 : vector<16x2048xf32>
    %cst_13 = arith.constant 0.000000e+00 : f32
    %28 = vector.broadcast %cst_13 : f32 to vector<16x2048xf32>
    %29 = arith.cmpf ogt, %27, %28 : vector<16x2048xf32>
    %cst_14 = arith.constant 2.000000e-01 : f32
    %30 = vector.broadcast %cst_14 : f32 to vector<16x2048xf32>
    %31 = arith.mulf %30, %27 : vector<16x2048xf32>
    %32 = arith.select %29, %27, %31 : vector<16x2048xi1>, vector<16x2048xf32>
    %33 = arith.truncf %32 : vector<16x2048xf32> to vector<16x2048xbf16>
    %c0_15 = arith.constant 0 : index
    %c0_16 = arith.constant 0 : index
    %34 = vector.load %arg4[%c0_15, %c0_16] : memref<16x2048xbf16, #tpu.memory_space<vmem>>, vector<16x2048xbf16>
    tpu.vector_store %arg4[%c0_15, %c0_16], %33 {strides = array<i32>} : memref<16x2048xbf16, #tpu.memory_space<vmem>>, vector<16x2048xbf16>,
    return
  }
}

module attributes {stable_mosaic.version = 11 : i64} {
  func.func @_conv_bn_lrelu_kernel(%arg0: memref<256x512xbf16, #tpu.memory_space<vmem>>, %arg1: memref<32x256xbf16, #tpu.memory_space<vmem>>, %arg2: memref<32x1xf32, #tpu.memory_space<vmem>>, %arg3: memref<32x1xf32, #tpu.memory_space<vmem>>, %arg4: memref<32x512xbf16, #tpu.memory_space<vmem>>) attributes {dimension_semantics = [], scalar_prefetch = 0 : i64, scratch_operands = 0 : i64, tpu.core_type = #tpu.core_type<tc>} {
    %c0 = arith.constant 0 : index
    %c0_0 = arith.constant 0 : index
    %0 = vector.load %arg1[%c0, %c0_0] : memref<32x256xbf16, #tpu.memory_space<vmem>>, vector<32x256xbf16>
    %c0_1 = arith.constant 0 : index
    %c0_2 = arith.constant 0 : index
    %1 = vector.load %arg0[%c0_1, %c0_2] : memref<256x512xbf16, #tpu.memory_space<vmem>>, vector<256x512xbf16>
    %cst = arith.constant dense<0.000000e+00> : vector<32x512xf32>
    %2 = tpu.matmul %0, %1, %cst {dimension_numbers = #tpu.dot_dimension_numbers<[1], [0], [0], [1], [0, 0, 1, 1], [], []>} : vector<32x256xbf16>, vector<256x512xbf16>, vector<32x512xf32> -> vector<32x512xf32>
    %cst_3 = arith.constant dense<0.000000e+00> : vector<32xf32>
    %3 = vector.multi_reduction <add>, %2, %cst_3 [1] : vector<32x512xf32> to vector<32xf32>
    %4 = vector.shape_cast %3 : vector<32xf32> to vector<32x1xf32>
    %5 = arith.mulf %2, %2 : vector<32x512xf32>
    %cst_4 = arith.constant dense<0.000000e+00> : vector<32xf32>
    %6 = vector.multi_reduction <add>, %5, %cst_4 [1] : vector<32x512xf32> to vector<32xf32>
    %7 = vector.shape_cast %6 : vector<32xf32> to vector<32x1xf32>
    %cst_5 = arith.constant 0.001953125 : f32
    %8 = vector.broadcast %cst_5 : f32 to vector<32x1xf32>
    %9 = arith.mulf %4, %8 : vector<32x1xf32>
    %cst_6 = arith.constant 0.001953125 : f32
    %10 = vector.broadcast %cst_6 : f32 to vector<32x1xf32>
    %11 = arith.mulf %7, %10 : vector<32x1xf32>
    %12 = arith.mulf %9, %9 : vector<32x1xf32>
    %13 = arith.subf %11, %12 : vector<32x1xf32>
    %cst_7 = arith.constant 0.000000e+00 : f32
    %14 = vector.broadcast %cst_7 : f32 to vector<32x1xf32>
    %15 = arith.maximumf %13, %14 : vector<32x1xf32>
    %cst_8 = arith.constant 9.99999974E-6 : f32
    %16 = vector.broadcast %cst_8 : f32 to vector<32x1xf32>
    %17 = arith.addf %15, %16 : vector<32x1xf32>
    %18 = math.rsqrt %17 : vector<32x1xf32>
    %c0_9 = arith.constant 0 : index
    %c0_10 = arith.constant 0 : index
    %19 = vector.load %arg2[%c0_9, %c0_10] : memref<32x1xf32, #tpu.memory_space<vmem>>, vector<32x1xf32>
    %20 = arith.mulf %19, %18 : vector<32x1xf32>
    %c0_11 = arith.constant 0 : index
    %c0_12 = arith.constant 0 : index
    %21 = vector.load %arg3[%c0_11, %c0_12] : memref<32x1xf32, #tpu.memory_space<vmem>>, vector<32x1xf32>
    %22 = arith.mulf %9, %20 : vector<32x1xf32>
    %23 = arith.subf %21, %22 : vector<32x1xf32>
    %24 = vector.broadcast %20 : vector<32x1xf32> to vector<32x512xf32>
    %25 = arith.mulf %2, %24 : vector<32x512xf32>
    %26 = vector.broadcast %23 : vector<32x1xf32> to vector<32x512xf32>
    %27 = arith.addf %25, %26 : vector<32x512xf32>
    %cst_13 = arith.constant 0.000000e+00 : f32
    %28 = vector.broadcast %cst_13 : f32 to vector<32x512xf32>
    %29 = arith.cmpf ogt, %27, %28 : vector<32x512xf32>
    %cst_14 = arith.constant 2.000000e-01 : f32
    %30 = vector.broadcast %cst_14 : f32 to vector<32x512xf32>
    %31 = arith.mulf %30, %27 : vector<32x512xf32>
    %32 = arith.select %29, %27, %31 : vector<32x512xi1>, vector<32x512xf32>
    %33 = arith.truncf %32 : vector<32x512xf32> to vector<32x512xbf16>
    %c0_15 = arith.constant 0 : index
    %c0_16 = arith.constant 0 : index
    %34 = vector.load %arg4[%c0_15, %c0_16] : memref<32x512xbf16, #tpu.memory_space<vmem>>, vector<32x512xbf16>
    tpu.vector_store %arg4[%c0_15, %c0_16], %33 {strides = array<i32>} : memref<32x512xbf16, #tpu.memory_space<vmem>>, vector<32x512xbf16>,
    return
  }
}

module attributes {stable_mosaic.version = 11 : i64} {
  func.func @_conv_bn_lrelu_kernel(%arg0: memref<512x128xbf16, #tpu.memory_space<vmem>>, %arg1: memref<64x512xbf16, #tpu.memory_space<vmem>>, %arg2: memref<64x1xf32, #tpu.memory_space<vmem>>, %arg3: memref<64x1xf32, #tpu.memory_space<vmem>>, %arg4: memref<64x128xbf16, #tpu.memory_space<vmem>>) attributes {dimension_semantics = [], scalar_prefetch = 0 : i64, scratch_operands = 0 : i64, tpu.core_type = #tpu.core_type<tc>} {
    %c0 = arith.constant 0 : index
    %c0_0 = arith.constant 0 : index
    %0 = vector.load %arg1[%c0, %c0_0] : memref<64x512xbf16, #tpu.memory_space<vmem>>, vector<64x512xbf16>
    %c0_1 = arith.constant 0 : index
    %c0_2 = arith.constant 0 : index
    %1 = vector.load %arg0[%c0_1, %c0_2] : memref<512x128xbf16, #tpu.memory_space<vmem>>, vector<512x128xbf16>
    %cst = arith.constant dense<0.000000e+00> : vector<64x128xf32>
    %2 = tpu.matmul %0, %1, %cst {dimension_numbers = #tpu.dot_dimension_numbers<[1], [0], [0], [1], [0, 0, 1, 1], [], []>} : vector<64x512xbf16>, vector<512x128xbf16>, vector<64x128xf32> -> vector<64x128xf32>
    %cst_3 = arith.constant dense<0.000000e+00> : vector<64xf32>
    %3 = vector.multi_reduction <add>, %2, %cst_3 [1] : vector<64x128xf32> to vector<64xf32>
    %4 = vector.shape_cast %3 : vector<64xf32> to vector<64x1xf32>
    %5 = arith.mulf %2, %2 : vector<64x128xf32>
    %cst_4 = arith.constant dense<0.000000e+00> : vector<64xf32>
    %6 = vector.multi_reduction <add>, %5, %cst_4 [1] : vector<64x128xf32> to vector<64xf32>
    %7 = vector.shape_cast %6 : vector<64xf32> to vector<64x1xf32>
    %cst_5 = arith.constant 7.812500e-03 : f32
    %8 = vector.broadcast %cst_5 : f32 to vector<64x1xf32>
    %9 = arith.mulf %4, %8 : vector<64x1xf32>
    %cst_6 = arith.constant 7.812500e-03 : f32
    %10 = vector.broadcast %cst_6 : f32 to vector<64x1xf32>
    %11 = arith.mulf %7, %10 : vector<64x1xf32>
    %12 = arith.mulf %9, %9 : vector<64x1xf32>
    %13 = arith.subf %11, %12 : vector<64x1xf32>
    %cst_7 = arith.constant 0.000000e+00 : f32
    %14 = vector.broadcast %cst_7 : f32 to vector<64x1xf32>
    %15 = arith.maximumf %13, %14 : vector<64x1xf32>
    %cst_8 = arith.constant 9.99999974E-6 : f32
    %16 = vector.broadcast %cst_8 : f32 to vector<64x1xf32>
    %17 = arith.addf %15, %16 : vector<64x1xf32>
    %18 = math.rsqrt %17 : vector<64x1xf32>
    %c0_9 = arith.constant 0 : index
    %c0_10 = arith.constant 0 : index
    %19 = vector.load %arg2[%c0_9, %c0_10] : memref<64x1xf32, #tpu.memory_space<vmem>>, vector<64x1xf32>
    %20 = arith.mulf %19, %18 : vector<64x1xf32>
    %c0_11 = arith.constant 0 : index
    %c0_12 = arith.constant 0 : index
    %21 = vector.load %arg3[%c0_11, %c0_12] : memref<64x1xf32, #tpu.memory_space<vmem>>, vector<64x1xf32>
    %22 = arith.mulf %9, %20 : vector<64x1xf32>
    %23 = arith.subf %21, %22 : vector<64x1xf32>
    %24 = vector.broadcast %20 : vector<64x1xf32> to vector<64x128xf32>
    %25 = arith.mulf %2, %24 : vector<64x128xf32>
    %26 = vector.broadcast %23 : vector<64x1xf32> to vector<64x128xf32>
    %27 = arith.addf %25, %26 : vector<64x128xf32>
    %cst_13 = arith.constant 0.000000e+00 : f32
    %28 = vector.broadcast %cst_13 : f32 to vector<64x128xf32>
    %29 = arith.cmpf ogt, %27, %28 : vector<64x128xf32>
    %cst_14 = arith.constant 2.000000e-01 : f32
    %30 = vector.broadcast %cst_14 : f32 to vector<64x128xf32>
    %31 = arith.mulf %30, %27 : vector<64x128xf32>
    %32 = arith.select %29, %27, %31 : vector<64x128xi1>, vector<64x128xf32>
    %33 = arith.truncf %32 : vector<64x128xf32> to vector<64x128xbf16>
    %c0_15 = arith.constant 0 : index
    %c0_16 = arith.constant 0 : index
    %34 = vector.load %arg4[%c0_15, %c0_16] : memref<64x128xbf16, #tpu.memory_space<vmem>>, vector<64x128xbf16>
    tpu.vector_store %arg4[%c0_15, %c0_16], %33 {strides = array<i32>} : memref<64x128xbf16, #tpu.memory_space<vmem>>, vector<64x128xbf16>,
    return
  }
}

module attributes {stable_mosaic.version = 11 : i64} {
  func.func @_conv_bn_lrelu_final_kernel(%arg0: memref<1024x32xbf16, #tpu.memory_space<vmem>>, %arg1: memref<128x1024xbf16, #tpu.memory_space<vmem>>, %arg2: memref<128x1xf32, #tpu.memory_space<vmem>>, %arg3: memref<128x1xf32, #tpu.memory_space<vmem>>, %arg4: memref<128x32xf32, #tpu.memory_space<vmem>>, %arg5: memref<32x2xf32, #tpu.memory_space<vmem>>, %arg6: memref<1x2xf32, #tpu.memory_space<vmem>>) attributes {dimension_semantics = [], scalar_prefetch = 0 : i64, scratch_operands = 0 : i64, tpu.core_type = #tpu.core_type<tc>} {
    %c0 = arith.constant 0 : index
    %c0_0 = arith.constant 0 : index
    %0 = vector.load %arg1[%c0, %c0_0] : memref<128x1024xbf16, #tpu.memory_space<vmem>>, vector<128x1024xbf16>
    %c0_1 = arith.constant 0 : index
    %c0_2 = arith.constant 0 : index
    %1 = vector.load %arg0[%c0_1, %c0_2] : memref<1024x32xbf16, #tpu.memory_space<vmem>>, vector<1024x32xbf16>
    %cst = arith.constant dense<0.000000e+00> : vector<128x32xf32>
    %2 = tpu.matmul %0, %1, %cst {dimension_numbers = #tpu.dot_dimension_numbers<[1], [0], [0], [1], [0, 0, 1, 1], [], []>} : vector<128x1024xbf16>, vector<1024x32xbf16>, vector<128x32xf32> -> vector<128x32xf32>
    %cst_3 = arith.constant dense<0.000000e+00> : vector<128xf32>
    %3 = vector.multi_reduction <add>, %2, %cst_3 [1] : vector<128x32xf32> to vector<128xf32>
    %4 = vector.shape_cast %3 : vector<128xf32> to vector<128x1xf32>
    %5 = arith.mulf %2, %2 : vector<128x32xf32>
    %cst_4 = arith.constant dense<0.000000e+00> : vector<128xf32>
    %6 = vector.multi_reduction <add>, %5, %cst_4 [1] : vector<128x32xf32> to vector<128xf32>
    %7 = vector.shape_cast %6 : vector<128xf32> to vector<128x1xf32>
    %cst_5 = arith.constant 3.125000e-02 : f32
    %8 = vector.broadcast %cst_5 : f32 to vector<128x1xf32>
    %9 = arith.mulf %4, %8 : vector<128x1xf32>
    %cst_6 = arith.constant 3.125000e-02 : f32
    %10 = vector.broadcast %cst_6 : f32 to vector<128x1xf32>
    %11 = arith.mulf %7, %10 : vector<128x1xf32>
    %12 = arith.mulf %9, %9 : vector<128x1xf32>
    %13 = arith.subf %11, %12 : vector<128x1xf32>
    %cst_7 = arith.constant 0.000000e+00 : f32
    %14 = vector.broadcast %cst_7 : f32 to vector<128x1xf32>
    %15 = arith.maximumf %13, %14 : vector<128x1xf32>
    %cst_8 = arith.constant 9.99999974E-6 : f32
    %16 = vector.broadcast %cst_8 : f32 to vector<128x1xf32>
    %17 = arith.addf %15, %16 : vector<128x1xf32>
    %18 = math.rsqrt %17 : vector<128x1xf32>
    %c0_9 = arith.constant 0 : index
    %c0_10 = arith.constant 0 : index
    %19 = vector.load %arg2[%c0_9, %c0_10] : memref<128x1xf32, #tpu.memory_space<vmem>>, vector<128x1xf32>
    %20 = arith.mulf %19, %18 : vector<128x1xf32>
    %c0_11 = arith.constant 0 : index
    %c0_12 = arith.constant 0 : index
    %21 = vector.load %arg3[%c0_11, %c0_12] : memref<128x1xf32, #tpu.memory_space<vmem>>, vector<128x1xf32>
    %22 = arith.mulf %9, %20 : vector<128x1xf32>
    %23 = arith.subf %21, %22 : vector<128x1xf32>
    %24 = vector.broadcast %20 : vector<128x1xf32> to vector<128x32xf32>
    %25 = arith.mulf %2, %24 : vector<128x32xf32>
    %26 = vector.broadcast %23 : vector<128x1xf32> to vector<128x32xf32>
    %27 = arith.addf %25, %26 : vector<128x32xf32>
    %cst_13 = arith.constant 0.000000e+00 : f32
    %28 = vector.broadcast %cst_13 : f32 to vector<128x32xf32>
    %29 = arith.cmpf ogt, %27, %28 : vector<128x32xf32>
    %cst_14 = arith.constant 2.000000e-01 : f32
    %30 = vector.broadcast %cst_14 : f32 to vector<128x32xf32>
    %31 = arith.mulf %30, %27 : vector<128x32xf32>
    %32 = arith.select %29, %27, %31 : vector<128x32xi1>, vector<128x32xf32>
    %c0_15 = arith.constant 0 : index
    %c0_16 = arith.constant 0 : index
    %33 = vector.load %arg4[%c0_15, %c0_16] : memref<128x32xf32, #tpu.memory_space<vmem>>, vector<128x32xf32>
    %34 = arith.mulf %32, %33 : vector<128x32xf32>
    %cst_17 = arith.constant dense<0.000000e+00> : vector<32xf32>
    %35 = vector.multi_reduction <add>, %34, %cst_17 [0] : vector<128x32xf32> to vector<32xf32>
    %36 = vector.shape_cast %35 : vector<32xf32> to vector<1x32xf32>
    %c0_18 = arith.constant 0 : index
    %c0_19 = arith.constant 0 : index
    %37 = vector.load %arg5[%c0_18, %c0_19] : memref<32x2xf32, #tpu.memory_space<vmem>>, vector<32x2xf32>
    %cst_20 = arith.constant dense<0.000000e+00> : vector<1x2xf32>
    %38 = tpu.matmul %36, %37, %cst_20 {dimension_numbers = #tpu.dot_dimension_numbers<[1], [0], [0], [1], [0, 0, 1, 1], [], []>} : vector<1x32xf32>, vector<32x2xf32>, vector<1x2xf32> -> vector<1x2xf32>
    %39 = arith.negf %38 : vector<1x2xf32>
    %40 = math.exp %39 : vector<1x2xf32>
    %cst_21 = arith.constant 1.000000e+00 : f32
    %41 = vector.broadcast %cst_21 : f32 to vector<1x2xf32>
    %42 = arith.addf %41, %40 : vector<1x2xf32>
    %43 = arith.divf %41, %42 : vector<1x2xf32>
    %c0_22 = arith.constant 0 : index
    %c0_23 = arith.constant 0 : index
    %44 = vector.load %arg6[%c0_22, %c0_23] : memref<1x2xf32, #tpu.memory_space<vmem>>, vector<1x2xf32>
    tpu.vector_store %arg6[%c0_22, %c0_23], %43 {strides = array<i32>} : memref<1x2xf32, #tpu.memory_space<vmem>>, vector<1x2xf32>,
    return
  }
}

</mosaic_0001>

<bundles_post_ra>
// kernel: _lambda_.4
= control target key start
LH: loop header
LB: loop body
LE: loop exit
PB: predicated region body
PF: predicated region fallthrough
CT: control target
= control target key end

     0   :  { %v1178_v3 = vmov 0   ;;  %vm313_vm0 = vcmask 392192   ;;  %s1735_s0 = inlined_call_operand.vmem [shape: bf16[48,2048], index: 0, kind: input, shape index: {}]   ;;  %s1736_s1 = inlined_call_operand.vmem [shape: bf16[16,48], index: 1, kind: input, shape index: {}]   ;;  %s1737_s2 = inlined_call_operand.vmem [shape: f32[16,1], index: 2, kind: input, shape index: {}]   ;;  %s1738_s3 = inlined_call_operand.vmem [shape: f32[16,1], index: 3, kind: input, shape index: {}]   ;;  %s1739_s4 = inlined_call_operand.vmem [shape: bf16[16,2048], index: 4, kind: output, shape index: {}]  }
   0x1   :  { %v20_v0 = vld [vmem:[%s1735_s0] sm:$0xff]  ;;  %v21_v2 = vld [vmem:[%s1735_s0 + $0x8] sm:$0xff]  ;;  %349 = vmatprep.mubr.bf16.mxu0 %v1178_v3  ;;  %392 = vmatprep.mubr.bf16.mxu1 %v1178_v3  ;;  %v22_v23 = vld [vmem:[%s1735_s0 + $0x10] sm:$0xff] }
   0x2   :  { %v28_v1 = vld [vmem:[%s1735_s0 + $0x40] sm:$0xff]  ;;  %v29_v6 = vld [vmem:[%s1735_s0 + $0x48] sm:$0xff]  ;;  %1171 = vset.pattern.permute.xlu0 %v1178_v3  ;;  %1172 = vset.pattern.permute.xlu1 %v1178_v3  ;;  %v30_v24 = vld [vmem:[%s1735_s0 + $0x50] sm:$0xff] }
   0x3   :  { %v1083_v4 = vcombine.high %v20_v0, %v28_v1  ;;  %v1082_v5 = vcombine.low %v20_v0, %v28_v1  ;;  %v36_v7 = vld [vmem:[%s1735_s0 + $0x80] sm:$0xff]  ;;  %v1085_v9 = vcombine.high %v21_v2, %v29_v6  ;;  %v1084_v10 = vcombine.low %v21_v2, %v29_v6  ;;  %v37_v12 = vld [vmem:[%s1735_s0 + $0x88] sm:$0xff]  ;;  %v23_v25 = vld [vmem:[%s1735_s0 + $0x18] sm:$0xff] }
   0x4   :  { %v44_v8 = vld [vmem:[%s1735_s0 + $0xc0] sm:$0xff]  ;;  %v45_v13 = vld [vmem:[%s1735_s0 + $0xc8] sm:$0xff]  ;;  %v31_v26 = vld [vmem:[%s1735_s0 + $0x58] sm:$0xff]  ;;  %v1087_v29 = vcombine.high %v22_v23, %v30_v24  ;;  %v1086_v36 = vcombine.low %v22_v23, %v30_v24 }
   0x5   :  { %v1099_v11 = vcombine.high %v36_v7, %v44_v8  ;;  %v52_v14 = vld [vmem:[%s1735_s0 + $0x100] sm:$0xff]  ;;  %317 = vmatprep.subr.bf16.mxu0 %v1083_v4  ;;  %v1101_v15 = vcombine.high %v37_v12, %v45_v13  ;;  %v53_v17 = vld [vmem:[%s1735_s0 + $0x108] sm:$0xff]  ;;  %360 = vmatprep.subr.bf16.mxu1 %v1085_v9  ;;  %v1098_v19 = vcombine.low %v36_v7, %v44_v8  ;;  %v38_v31 = vld [vmem:[%s1735_s0 + $0x90] sm:$0xff] }
   0x6   :  { %v60_v16 = vld [vmem:[%s1735_s0 + $0x140] sm:$0xff]  ;;  %v61_v18 = vld [vmem:[%s1735_s0 + $0x148] sm:$0xff]  ;;  %318 = vmatpush1.bf16.msra.mxu0 %v1082_v5  ;;  %361 = vmatpush1.bf16.msra.mxu1 %v1084_v10  ;;  %v1100_v20 = vcombine.low %v37_v12, %v45_v13  ;;  %v1089_v30 = vcombine.high %v23_v25, %v31_v26  ;;  %v46_v32 = vld [vmem:[%s1735_s0 + $0xd0] sm:$0xff]  ;;  %v1088_v37 = vcombine.low %v23_v25, %v31_v26 }
   0x7   :  { %319 = vmatprep.subr.bf16.mxu0 %v1099_v11  ;;  %v1115_v21 = vcombine.high %v52_v14, %v60_v16  ;;  %362 = vmatprep.subr.bf16.mxu1 %v1101_v15  ;;  %v1117_v22 = vcombine.high %v53_v17, %v61_v18  ;;  %v1114_v27 = vcombine.low %v52_v14, %v60_v16  ;;  %v1265_v33 = vld [vmem:[%s1736_s1] sm:$0xff]   ;;  %v39_v34 = vld [vmem:[%s1735_s0 + $0x98] sm:$0xff]  ;;  %v54_v40 = vld [vmem:[%s1735_s0 + $0x110] sm:$0xff] }
   0x8   :  { %v1116_v28 = vcombine.low %v53_v17, %v61_v18  ;;  %v47_v35 = vld [vmem:[%s1735_s0 + $0xd8] sm:$0xff]  ;;  %v1103_v38 = vcombine.high %v38_v31, %v46_v32  ;;  %v62_v41 = vld [vmem:[%s1735_s0 + $0x150] sm:$0xff]  ;;  %v1102_v44 = vcombine.low %v38_v31, %v46_v32  ;;  %v24_v48 = vld [vmem:[%s1735_s0 + $0x20] sm:$0xff] }
   0x9   :  { %v1105_v39 = vcombine.high %v39_v34, %v47_v35  ;;  %v55_v42 = vld [vmem:[%s1735_s0 + $0x118] sm:$0xff]  ;;  %v1104_v45 = vcombine.low %v39_v34, %v47_v35  ;;  %v1119_v46 = vcombine.high %v54_v40, %v62_v41  ;;  %v32_v49 = vld [vmem:[%s1735_s0 + $0x60] sm:$0xff]  ;;  %v25_v50 = vld [vmem:[%s1735_s0 + $0x28] sm:$0xff]  ;;  %v1118_v52 = vcombine.low %v54_v40, %v62_v41 }
   0xa   :  { %320 = vmatpush1.bf16.msra.mxu0 %v1098_v19  ;;  %363 = vmatpush1.bf16.msra.mxu1 %v1100_v20  ;;  %v63_v43 = vld [vmem:[%s1735_s0 + $0x158] sm:$0xff]  ;;  %v33_v51 = vld [vmem:[%s1735_s0 + $0x68] sm:$0xff]  ;;  %v1091_v54 = vcombine.high %v24_v48, %v32_v49  ;;  %v40_v56 = vld [vmem:[%s1735_s0 + $0xa0] sm:$0xff]  ;;  %v1090_v60 = vcombine.low %v24_v48, %v32_v49 }
   0xb   :  { %321 = vmatprep.subr.bf16.mxu0 %v1115_v21  ;;  %364 = vmatprep.subr.bf16.mxu1 %v1117_v22  ;;  %v1121_v47 = vcombine.high %v55_v42, %v63_v43  ;;  %v1120_v53 = vcombine.low %v55_v42, %v63_v43  ;;  %v1093_v55 = vcombine.high %v25_v50, %v33_v51  ;;  %v48_v57 = vld [vmem:[%s1735_s0 + $0xe0] sm:$0xff]  ;;  %v41_v58 = vld [vmem:[%s1735_s0 + $0xa8] sm:$0xff]  ;;  %v26_v9 = vld [vmem:[%s1735_s0 + $0x30] sm:$0xff] }
   0xc   :  { %v49_v59 = vld [vmem:[%s1735_s0 + $0xe8] sm:$0xff]  ;;  %v1092_v61 = vcombine.low %v25_v50, %v33_v51  ;;  %v1107_v62 = vcombine.high %v40_v56, %v48_v57  ;;  %v56_v0 = vld [vmem:[%s1735_s0 + $0x120] sm:$0xff]  ;;  %v1106_v5 = vcombine.low %v40_v56, %v48_v57  ;;  %v34_v10 = vld [vmem:[%s1735_s0 + $0x70] sm:$0xff] }
   0xd   :  { %v1109_v63 = vcombine.high %v41_v58, %v49_v59  ;;  %v64_v1 = vld [vmem:[%s1735_s0 + $0x160] sm:$0xff]  ;;  %v57_v2 = vld [vmem:[%s1735_s0 + $0x128] sm:$0xff]  ;;  %v1108_v6 = vcombine.low %v41_v58, %v49_v59  ;;  %v27_v11 = vld [vmem:[%s1735_s0 + $0x38] sm:$0xff]  ;;  %v1095_v15 = vcombine.high %v26_v9, %v34_v10  ;;  %v1094_v21 = vcombine.low %v26_v9, %v34_v10 }
   0xe   :  { %322 = vmatpush1.bf16.msra.mxu0 %v1114_v27  ;;  %365 = vmatpush1.bf16.msra.mxu1 %v1116_v28  ;;  %v65_v4 = vld [vmem:[%s1735_s0 + $0x168] sm:$0xff]  ;;  %v1123_v7 = vcombine.high %v56_v0, %v64_v1  ;;  %v35_v12 = vld [vmem:[%s1735_s0 + $0x78] sm:$0xff]  ;;  %v1122_v13 = vcombine.low %v56_v0, %v64_v1  ;;  %v42_v17 = vld [vmem:[%s1735_s0 + $0xb0] sm:$0xff] }
   0xf   :  { %403 = vmatprep.subr.bf16.mxu0 %v1087_v29  ;;  %446 = vmatprep.subr.bf16.mxu1 %v1089_v30  ;;  %v1125_v8 = vcombine.high %v57_v2, %v65_v4  ;;  %v1124_v14 = vcombine.low %v57_v2, %v65_v4  ;;  %v1097_v16 = vcombine.high %v27_v11, %v35_v12  ;;  %v50_v18 = vld [vmem:[%s1735_s0 + $0xf0] sm:$0xff]  ;;  %v43_v19 = vld [vmem:[%s1735_s0 + $0xb8] sm:$0xff] }
  0x10   :  { %v51_v20 = vld [vmem:[%s1735_s0 + $0xf8] sm:$0xff]  ;;  %v1096_v22 = vcombine.low %v27_v11, %v35_v12  ;;  %v1111_v23 = vcombine.high %v42_v17, %v50_v18  ;;  %v58_v25 = vld [vmem:[%s1735_s0 + $0x130] sm:$0xff]  ;;  %v1110_v29 = vcombine.low %v42_v17, %v50_v18 }
  0x11   :  { %1130 = vmatmul.mubr.msk.bf16.vlgmr.msra.gmra.mrb[0].mxu0 %vm313_vm0, %v1265_v33  ;;  %1131 = vmatmul.mubr.msk.bf16.vlgmr.msra.gmra.mrb[0].mxu1 %vm313_vm0, %v1265_v33  ;;  %v1113_v24 = vcombine.high %v43_v19, %v51_v20  ;;  %v66_v26 = vld [vmem:[%s1735_s0 + $0x170] sm:$0xff]  ;;  %v59_v27 = vld [vmem:[%s1735_s0 + $0x138] sm:$0xff]  ;;  %v1112_v30 = vcombine.low %v43_v19, %v51_v20 }
  0x12   :  { %404 = vmatpush1.bf16.msra.mxu0 %v1086_v36  ;;  %447 = vmatpush1.bf16.msra.mxu1 %v1088_v37  ;;  %v67_v28 = vld [vmem:[%s1735_s0 + $0x178] sm:$0xff]  ;;  %v1127_v31 = vcombine.high %v58_v25, %v66_v26  ;;  %v1126_v34 = vcombine.low %v58_v25, %v66_v26 }
  0x13   :  { %405 = vmatprep.subr.bf16.mxu0 %v1103_v38  ;;  %448 = vmatprep.subr.bf16.mxu1 %v1105_v39  ;;  %v1129_v32 = vcombine.high %v59_v27, %v67_v28  ;;  %v1128_v35 = vcombine.low %v59_v27, %v67_v28 }
  0x14   :  { %435 = vmatprep.mubr.bf16.mxu0 %v1178_v3  ;;  %478 = vmatprep.mubr.bf16.mxu1 %v1178_v3 }
  0x16   :  { %406 = vmatpush1.bf16.msra.mxu0 %v1102_v44  ;;  %449 = vmatpush1.bf16.msra.mxu1 %v1104_v45 }
  0x17   :  { %407 = vmatprep.subr.bf16.mxu0 %v1119_v46  ;;  %450 = vmatprep.subr.bf16.mxu1 %v1121_v47 }
  0x1a   :  { %408 = vmatpush1.bf16.msra.mxu0 %v1118_v52  ;;  %451 = vmatpush1.bf16.msra.mxu1 %v1120_v53 }
  0x1b   :  { %489 = vmatprep.subr.bf16.mxu0 %v1091_v54  ;;  %532 = vmatprep.subr.bf16.mxu1 %v1093_v55 }
  0x1d   :  { %1132 = vmatmul.mubr.msk.bf16.vlgmr.msra.gmra.mrb[4].mxu0 %vm313_vm0, %v1265_v33  ;;  %1133 = vmatmul.mubr.msk.bf16.vlgmr.msra.gmra.mrb[4].mxu1 %vm313_vm0, %v1265_v33 }
  0x1e   :  { %490 = vmatpush1.bf16.msra.mxu0 %v1090_v60  ;;  %533 = vmatpush1.bf16.msra.mxu1 %v1092_v61 }
  0x1f   :  { %491 = vmatprep.subr.bf16.mxu0 %v1107_v62  ;;  %534 = vmatprep.subr.bf16.mxu1 %v1109_v63 }
  0x20   :  { %521 = vmatprep.mubr.bf16.mxu0 %v1178_v3  ;;  %564 = vmatprep.mubr.bf16.mxu1 %v1178_v3 }
  0x22   :  { %492 = vmatpush1.bf16.msra.mxu0 %v1106_v5  ;;  %535 = vmatpush1.bf16.msra.mxu1 %v1108_v6 }
  0x23   :  { %493 = vmatprep.subr.bf16.mxu0 %v1123_v7  ;;  %536 = vmatprep.subr.bf16.mxu1 %v1125_v8 }
  0x26   :  { %494 = vmatpush1.bf16.msra.mxu0 %v1122_v13  ;;  %537 = vmatpush1.bf16.msra.mxu1 %v1124_v14 }
  0x27   :  { %575 = vmatprep.subr.bf16.mxu0 %v1095_v15  ;;  %618 = vmatprep.subr.bf16.mxu1 %v1097_v16 }
  0x29   :  { %1134 = vmatmul.mubr.msk.bf16.vlgmr.msra.gmra.mrb[8].mxu0 %vm313_vm0, %v1265_v33  ;;  %1135 = vmatmul.mubr.msk.bf16.vlgmr.msra.gmra.mrb[8].mxu1 %vm313_vm0, %v1265_v33 }
  0x2a   :  { %576 = vmatpush1.bf16.msra.mxu0 %v1094_v21  ;;  %619 = vmatpush1.bf16.msra.mxu1 %v1096_v22 }
  0x2b   :  { %577 = vmatprep.subr.bf16.mxu0 %v1111_v23  ;;  %620 = vmatprep.subr.bf16.mxu1 %v1113_v24 }
  0x2c   :  { %607 = vmatprep.mubr.bf16.mxu0 %v1178_v3  ;;  %650 = vmatprep.mubr.bf16.mxu1 %v1178_v3 }
  0x2e   :  { %578 = vmatpush1.bf16.msra.mxu0 %v1110_v29  ;;  %621 = vmatpush1.bf16.msra.mxu1 %v1112_v30 }
  0x2f   :  { %579 = vmatprep.subr.bf16.mxu0 %v1127_v31  ;;  %622 = vmatprep.subr.bf16.mxu1 %v1129_v32 }
  0x32   :  { %580 = vmatpush1.bf16.msra.mxu0 %v1126_v34  ;;  %623 = vmatpush1.bf16.msra.mxu1 %v1128_v35 }
  0x35   :  { %1136 = vmatmul.mubr.msk.bf16.vlgmr.msra.gmra.mrb[12].mxu0 %vm313_vm0, %v1265_v33  ;;  %1137 = vmatmul.mubr.msk.bf16.vlgmr.msra.gmra.mrb[12].mxu1 %vm313_vm0, %v1265_v33 }
  0xe4   :  { %v1379_v36 = vpop.f32.mrb[0].mxu0  ;;  %v1385_v38 = vpop.f32.mrb[0].mxu1 }
  0xe5   :  { %v695_v37 = vmul.f32 %v1379_v36, %v1379_v36  ;;  %v1383_v3 = vpop.f32.mrb[1].mxu0  ;;  %v697_v33 = vmul.f32 %v1385_v38, %v1385_v38  ;;  %v1395_v42 = vpop.f32.mrb[1].mxu1 }
  0xe6   :  { %v661_v39 = vadd.f32 %v1383_v3, %v1379_v36  ;;  %v696_v40 = vmul.f32 %v1383_v3, %v1383_v3  ;;  %v1391_v41 = vpop.f32.mrb[2].mxu0  ;;  %v698_v45 = vmul.f32 %v1395_v42, %v1395_v42  ;;  %v1403_v46 = vpop.f32.mrb[2].mxu1 }
  0xe7   :  { %v711_v43 = vmul.f32 %v1391_v41, %v1391_v41  ;;  %v1399_v44 = vpop.f32.mrb[3].mxu0  ;;  %v1410_v51 = vpop.f32.mrb[3].mxu1  ;;  %v713_v52 = vmul.f32 %v1403_v46, %v1403_v46 }
  0xe8   :  { %v727_v47 = vadd.f32 %v696_v40, %v695_v37  ;;  %v662_v48 = vadd.f32 %v661_v39, %v1385_v38  ;;  %v678_v49 = vadd.f32 %v1399_v44, %v1391_v41  ;;  %v712_v50 = vmul.f32 %v1399_v44, %v1399_v44 }
  0xe9   :  { %v714_v60 = vmul.f32 %v1410_v51, %v1410_v51 }
  0xea   :  { %v728_v53 = vadd.f32 %v727_v47, %v697_v33  ;;  %v744_v54 = vadd.f32 %v712_v50, %v711_v43  ;;  %v663_v55 = vadd.f32 %v662_v48, %v1395_v42  ;;  %v679_v56 = vadd.f32 %v678_v49, %v1403_v46 }
  0xec   :  { %v729_v57 = vadd.f32 %v728_v53, %v698_v45  ;;  %v745_v58 = vadd.f32 %v744_v54, %v713_v52  ;;  %v680_v59 = vadd.f32 %v679_v56, %v1410_v51 }
  0xee   :  { %v746_v61 = vadd.f32 %v745_v58, %v714_v60 }
  0xf0   :  { %v1419_v62 = vpop.f32.mrb[4].mxu0  ;;  %v1426_v2 = vpop.f32.mrb[4].mxu1 }
  0xf1   :  { %v664_v63 = vadd.f32 %v663_v55, %v1419_v62  ;;  %v699_v0 = vmul.f32 %v1419_v62, %v1419_v62  ;;  %v1424_v1 = vpop.f32.mrb[5].mxu0  ;;  %v701_v6 = vmul.f32 %v1426_v2, %v1426_v2  ;;  %v1434_v7 = vpop.f32.mrb[5].mxu1 }
  0xf2   :  { %v700_v4 = vmul.f32 %v1424_v1, %v1424_v1  ;;  %v1430_v5 = vpop.f32.mrb[6].mxu0  ;;  %v1442_v13 = vpop.f32.mrb[6].mxu1  ;;  %v702_v15 = vmul.f32 %v1434_v7, %v1434_v7 }
  0xf3   :  { %v730_v8 = vadd.f32 %v729_v57, %v699_v0  ;;  %v665_v9 = vadd.f32 %v664_v63, %v1424_v1  ;;  %v681_v10 = vadd.f32 %v680_v59, %v1430_v5  ;;  %v715_v11 = vmul.f32 %v1430_v5, %v1430_v5  ;;  %v1440_v12 = vpop.f32.mrb[7].mxu0  ;;  %v1450_v17 = vpop.f32.mrb[7].mxu1 }
  0xf4   :  { %v716_v14 = vmul.f32 %v1440_v12, %v1440_v12  ;;  %v717_v16 = vmul.f32 %v1442_v13, %v1442_v13  ;;  %v718_v29 = vmul.f32 %v1450_v17, %v1450_v17 }
  0xf5   :  { %v731_v18 = vadd.f32 %v730_v8, %v700_v4  ;;  %v747_v19 = vadd.f32 %v746_v61, %v715_v11  ;;  %v666_v20 = vadd.f32 %v665_v9, %v1426_v2  ;;  %v682_v21 = vadd.f32 %v681_v10, %v1440_v12 }
  0xf7   :  { %v732_v22 = vadd.f32 %v731_v18, %v701_v6  ;;  %v748_v23 = vadd.f32 %v747_v19, %v716_v14  ;;  %v667_v24 = vadd.f32 %v666_v20, %v1434_v7  ;;  %v683_v25 = vadd.f32 %v682_v21, %v1442_v13 }
  0xf9   :  { %v733_v26 = vadd.f32 %v732_v22, %v702_v15  ;;  %v749_v27 = vadd.f32 %v748_v23, %v717_v16  ;;  %v684_v28 = vadd.f32 %v683_v25, %v1450_v17 }
  0xfb   :  { %v750_v30 = vadd.f32 %v749_v27, %v718_v29 }
  0xfc   :  { %v1459_v31 = vpop.f32.mrb[8].mxu0  ;;  %v1466_v37 = vpop.f32.mrb[8].mxu1 }
  0xfd   :  { %v668_v32 = vadd.f32 %v667_v24, %v1459_v31  ;;  %v703_v34 = vmul.f32 %v1459_v31, %v1459_v31  ;;  %v1464_v35 = vpop.f32.mrb[9].mxu0  ;;  %v705_v33 = vmul.f32 %v1466_v37, %v1466_v37  ;;  %v1474_v43 = vpop.f32.mrb[9].mxu1 }
  0xfe   :  { %v704_v39 = vmul.f32 %v1464_v35, %v1464_v35  ;;  %v1470_v40 = vpop.f32.mrb[10].mxu0  ;;  %v1482_v52 = vpop.f32.mrb[10].mxu1  ;;  %v706_v54 = vmul.f32 %v1474_v43, %v1474_v43 }
  0xff   :  { %v734_v45 = vadd.f32 %v733_v26, %v703_v34  ;;  %v669_v47 = vadd.f32 %v668_v32, %v1464_v35  ;;  %v685_v48 = vadd.f32 %v684_v28, %v1470_v40  ;;  %v719_v49 = vmul.f32 %v1470_v40, %v1470_v40  ;;  %v1480_v50 = vpop.f32.mrb[11].mxu0  ;;  %v1490_v56 = vpop.f32.mrb[11].mxu1 }
 0x100   :  { %v720_v53 = vmul.f32 %v1480_v50, %v1480_v50  ;;  %v721_v55 = vmul.f32 %v1482_v52, %v1482_v52  ;;  %v722_v10 = vmul.f32 %v1490_v56, %v1490_v56 }
 0x101   :  { %v735_v57 = vadd.f32 %v734_v45, %v704_v39  ;;  %v751_v58 = vadd.f32 %v750_v30, %v719_v49  ;;  %v670_v59 = vadd.f32 %v669_v47, %v1466_v37  ;;  %v686_v60 = vadd.f32 %v685_v48, %v1480_v50 }
 0x103   :  { %v736_v61 = vadd.f32 %v735_v57, %v705_v33  ;;  %v752_v63 = vadd.f32 %v751_v58, %v720_v53  ;;  %v671_v0 = vadd.f32 %v670_v59, %v1474_v43  ;;  %v687_v4 = vadd.f32 %v686_v60, %v1482_v52 }
 0x105   :  { %v737_v6 = vadd.f32 %v736_v61, %v706_v54  ;;  %v753_v8 = vadd.f32 %v752_v63, %v721_v55  ;;  %v688_v9 = vadd.f32 %v687_v4, %v1490_v56 }
 0x107   :  { %v754_v11 = vadd.f32 %v753_v8, %v722_v10 }
 0x108   :  { %v1499_v14 = vpop.f32.mrb[12].mxu0  ;;  %v1506_v19 = vpop.f32.mrb[12].mxu1 }
 0x109   :  { %v672_v15 = vadd.f32 %v671_v0, %v1499_v14  ;;  %v707_v16 = vmul.f32 %v1499_v14, %v1499_v14  ;;  %v1504_v18 = vpop.f32.mrb[13].mxu0  ;;  %v1512_v22 = vpop.f32.mrb[13].mxu1  ;;  %v709_v29 = vmul.f32 %v1506_v19, %v1506_v19 }
 0x10a   :  { %v708_v20 = vmul.f32 %v1504_v18, %v1504_v18  ;;  %v1510_v21 = vpop.f32.mrb[14].mxu0  ;;  %v1520_v28 = vpop.f32.mrb[14].mxu1  ;;  %v710_v54 = vmul.f32 %v1512_v22, %v1512_v22 }
 0x10b   :  { %v738_v23 = vadd.f32 %v737_v6, %v707_v16  ;;  %v673_v24 = vadd.f32 %v672_v15, %v1504_v18  ;;  %v689_v25 = vadd.f32 %v688_v9, %v1510_v21  ;;  %v723_v26 = vmul.f32 %v1510_v21, %v1510_v21  ;;  %v1518_v27 = vpop.f32.mrb[15].mxu0  ;;  %v1526_v32 = vpop.f32.mrb[15].mxu1 }
 0x10c   :  { %v724_v30 = vmul.f32 %v1518_v27, %v1518_v27  ;;  %v725_v48 = vmul.f32 %v1520_v28, %v1520_v28  ;;  %v726_v57 = vmul.f32 %v1526_v32, %v1526_v32 }
 0x10d   :  { %v755_v34 = vadd.f32 %v754_v11, %v723_v26  ;;  %v690_v39 = vadd.f32 %v689_v25, %v1518_v27  ;;  %v674_v33 = vadd.f32 %v673_v24, %v1506_v19  ;;  %v739_v45 = vadd.f32 %v738_v23, %v708_v20 }
 0x10f   :  { %v756_v47 = vadd.f32 %v755_v34, %v724_v30  ;;  %v675_v49 = vadd.f32 %v674_v33, %v1512_v22  ;;  %v691_v53 = vadd.f32 %v690_v39, %v1520_v28  ;;  %v740_v55 = vadd.f32 %v739_v45, %v709_v29  ;;  %v775_v30 = vld [vmem:[%s1737_s2] sm:$0xff]  ;;  %v776_v33 = vld [vmem:[%s1737_s2 + $0x8] sm:$0xff] }
 0x111   :  { %676 = vadd.xlane.f32.xlu0 %v675_v49  ;;  %v692_v58 = vadd.f32 %v691_v53, %v1526_v32  ;;  %v757_v59 = vadd.f32 %v756_v47, %v725_v48  ;;  %v741_v60 = vadd.f32 %v740_v55, %v710_v54  ;;  %v779_v49 = vld [vmem:[%s1738_s3] sm:$0xff]  ;;  %v780_v55 = vld [vmem:[%s1738_s3 + $0x8] sm:$0xff] }
 0x113   :  { %v758_v61 = vadd.f32 %v757_v59, %v726_v57  ;;  %742 = vadd.xlane.f32.xlu1 %v741_v60 }
 0x115   :  { %693 = vadd.xlane.f32.xlu0 %v692_v58 }
 0x117   :  { %759 = vadd.xlane.f32.xlu1 %v758_v61 }
 0x19e   :  { %v677_v63 = vpop.xlane.xlu0 %676 }
 0x19f   :  { %v761_v0 = vmul.f32 0.00048828125, %v677_v63 }
 0x1a0   :  { %v743_v6 = vpop.xlane.xlu1 %742 }
 0x1a1   :  { %v765_v4 = vmul.f32 %v761_v0, %v761_v0  ;;  %v763_v8 = vmul.f32 0.00048828125, %v743_v6 }
 0x1a2   :  { %v694_v9 = vpop.xlane.xlu0 %693 }
 0x1a3   :  { %v762_v10 = vmul.f32 0.00048828125, %v694_v9  ;;  %v767_v11 = vsub.f32 %v763_v8, %v765_v4 }
 0x1a4   :  { %v760_v16 = vpop.xlane.xlu1 %759 }
 0x1a5   :  { %v766_v15 = vmul.f32 %v762_v10, %v762_v10  ;;  %v769_v20 = vmax.f32 %v767_v11, 0.0  ;;  %v764_v23 = vmul.f32 0.00048828125, %v760_v16 }
 0x1a7   :  { %v771_v24 = vadd.f32 1e-05, %v769_v20  ;;  %v768_v25 = vsub.f32 %v764_v23, %v766_v15 }
 0x1a9   :  { %1174 = vrsqrt.f32 %v771_v24  ;;  %v770_v26 = vmax.f32 %v768_v25, 0.0 }
 0x1ab   :  { %v772_v29 = vadd.f32 1e-05, %v770_v26 }
 0x1ad   :  { %1176 = vrsqrt.f32 %v772_v29 }
 0x1b3   :  { %v1175_v34 = vpop.eup %1174 }
 0x1b4   :  { %v777_v39 = vmul.f32 %v1175_v34, %v775_v30 }
 0x1b6   :  { %787 = vperm.xlu0 %1171, %v777_v39   ;;  %v781_v48 = vmul.f32 %v777_v39, %v761_v0 }
 0x1b7   :  { %v1177_v45 = vpop.eup %1176 }
 0x1b8   :  { %v778_v47 = vmul.f32 %v1177_v45, %v776_v33  ;;  %v783_v53 = vsub.f32 %v779_v49, %v781_v48 }
 0x1ba   :  { %792 = vperm.xlu1 %1172, %v778_v47   ;;  %v782_v54 = vmul.f32 %v778_v47, %v762_v10 }
 0x1bc   :  { %v784_v57 = vsub.f32 %v780_v55, %v782_v54 }
 0x1be   :  { %829 = vperm.xlu1 %1172, %v783_v53  }
 0x1c2   :  { %834 = vperm.xlu1 %1172, %v784_v57  }
 0x235   :  { %v788_v58 = vpop.permute.xlu0 %787 }
 0x236   :  { %v795_v59 = vmul.f32 %v788_v58, %v1379_v36  ;;  %v796_v60 = vmul.f32 %v788_v58, %v1383_v3  ;;  %v797_v61 = vmul.f32 %v788_v58, %v1385_v38  ;;  %v798_v63 = vmul.f32 %v788_v58, %v1395_v42 }
 0x237   :  { %v799_v0 = vmul.f32 %v788_v58, %v1419_v62  ;;  %v800_v4 = vmul.f32 %v788_v58, %v1424_v1  ;;  %v801_v6 = vmul.f32 %v788_v58, %v1426_v2  ;;  %v802_v8 = vmul.f32 %v788_v58, %v1434_v7 }
 0x238   :  { %v803_v9 = vmul.f32 %v788_v58, %v1459_v31  ;;  %v804_v10 = vmul.f32 %v788_v58, %v1464_v35  ;;  %v805_v36 = vmul.f32 %v788_v58, %v1466_v37  ;;  %v806_v3 = vmul.f32 %v788_v58, %v1474_v43 }
 0x239   :  { %v807_v38 = vmul.f32 %v788_v58, %v1499_v14  ;;  %v808_v42 = vmul.f32 %v788_v58, %v1504_v18  ;;  %v809_v62 = vmul.f32 %v788_v58, %v1506_v19  ;;  %v810_v1 = vmul.f32 %v788_v58, %v1512_v22  ;;  %v793_v11 = vpop.permute.xlu1 %792 }
 0x23a   :  { %v811_v2 = vmul.f32 %v793_v11, %v1391_v41  ;;  %v812_v7 = vmul.f32 %v793_v11, %v1399_v44  ;;  %v1570_v31 = vmul.f32 %v793_v11, %v1403_v46  ;;  %v1573_v35 = vmul.f32 %v793_v11, %v1410_v51 }
 0x23b   :  { %v1576_v37 = vmul.f32 %v793_v11, %v1430_v5  ;;  %v1579_v43 = vmul.f32 %v793_v11, %v1440_v12  ;;  %v1582_v14 = vmul.f32 %v793_v11, %v1442_v13  ;;  %v1585_v18 = vmul.f32 %v793_v11, %v1450_v17 }
 0x23c   :  { %v1588_v41 = vmul.f32 %v793_v11, %v1470_v40  ;;  %v1591_v44 = vmul.f32 %v793_v11, %v1480_v50  ;;  %v1594_v46 = vmul.f32 %v793_v11, %v1482_v52  ;;  %v1597_v51 = vmul.f32 %v793_v11, %v1490_v56 }
 0x23d   :  { %v830_v5 = vpop.permute.xlu1 %829  ;;  %v1600_v12 = vmul.f32 %v793_v11, %v1510_v21  ;;  %v1603_v13 = vmul.f32 %v793_v11, %v1518_v27  ;;  %v1606_v17 = vmul.f32 %v793_v11, %v1520_v28  ;;  %v1609_v40 = vmul.f32 %v793_v11, %v1526_v32 }
 0x23e   :  { %v837_v50 = vadd.f32 %v830_v5, %v795_v59  ;;  %v838_v19 = vadd.f32 %v830_v5, %v796_v60  ;;  %v839_v52 = vadd.f32 %v830_v5, %v797_v61  ;;  %v840_v22 = vadd.f32 %v830_v5, %v798_v63 }
 0x23f   :  { %v841_v15 = vadd.f32 %v830_v5, %v799_v0  ;;  %v842_v56 = vadd.f32 %v830_v5, %v800_v4  ;;  %v843_v16 = vadd.f32 %v830_v5, %v801_v6  ;;  %v844_v20 = vadd.f32 %v830_v5, %v802_v8 }
 0x240   :  { %v845_v23 = vadd.f32 %v830_v5, %v803_v9  ;;  %v846_v21 = vadd.f32 %v830_v5, %v804_v10  ;;  %v847_v24 = vadd.f32 %v830_v5, %v805_v36  ;;  %v848_v25 = vadd.f32 %v830_v5, %v806_v3 }
 0x241   :  { %v849_v27 = vadd.f32 %v830_v5, %v807_v38  ;;  %v850_v26 = vadd.f32 %v830_v5, %v808_v42  ;;  %v851_v29 = vadd.f32 %v830_v5, %v809_v62  ;;  %v852_v28 = vadd.f32 %v830_v5, %v810_v1  ;;  %v1611_v32 = vpop.permute.xlu1 %834 }
 0x242   :  { %vm869_vm1 = vcmp.gt.f32.partialorder %v837_v50, 0.0  ;;  %vm870_vm2 = vcmp.gt.f32.partialorder %v838_v19, 0.0  ;;  %vm871_vm3 = vcmp.gt.f32.partialorder %v839_v52, 0.0  ;;  %vm872_vm4 = vcmp.gt.f32.partialorder %v840_v22, 0.0 }
 0x243   :  { %vm873_vm5 = vcmp.gt.f32.partialorder %v841_v15, 0.0  ;;  %vm874_vm6 = vcmp.gt.f32.partialorder %v842_v56, 0.0  ;;  %vm875_vm7 = vcmp.gt.f32.partialorder %v843_v16, 0.0  ;;  %vm876_vm8 = vcmp.gt.f32.partialorder %v844_v20, 0.0 }
 0x244   :  { %vm877_vm9 = vcmp.gt.f32.partialorder %v845_v23, 0.0  ;;  %vm878_vm10 = vcmp.gt.f32.partialorder %v846_v21, 0.0  ;;  %vm879_vm11 = vcmp.gt.f32.partialorder %v847_v24, 0.0  ;;  %vm880_vm12 = vcmp.gt.f32.partialorder %v848_v25, 0.0 }
 0x245   :  { %vm881_vm13 = vcmp.gt.f32.partialorder %v849_v27, 0.0  ;;  %vm882_vm14 = vcmp.gt.f32.partialorder %v850_v26, 0.0  ;;  %vm883_vm15 = vcmp.gt.f32.partialorder %v851_v29, 0.0  ;;  %vm884_vm0 = vcmp.gt.f32.partialorder %v852_v28, 0.0 }
 0x246   :  { %v901_v30 = vmul.f32 0.2, %v837_v50  ;;  %v902_v34 = vmul.f32 0.2, %v838_v19  ;;  %v903_v39 = vmul.f32 0.2, %v839_v52  ;;  %v1614_v33 = vadd.f32 %v1611_v32, %v811_v2 }
 0x247   :  { %v904_v45 = vmul.f32 0.2, %v840_v22  ;;  %v905_v47 = vmul.f32 0.2, %v841_v15  ;;  %v906_v48 = vmul.f32 0.2, %v842_v56  ;;  %v1617_v49 = vadd.f32 %v1611_v32, %v812_v7 }
 0x248   :  { %v907_v53 = vmul.f32 0.2, %v843_v16  ;;  %v908_v54 = vmul.f32 0.2, %v844_v20  ;;  %v909_v55 = vmul.f32 0.2, %v845_v23  ;;  %v933_v57 = vsel %vm869_vm1, %v837_v50, %v901_v30 }
 0x249   :  { %v910_v58 = vmul.f32 0.2, %v846_v21  ;;  %v911_v59 = vmul.f32 0.2, %v847_v24  ;;  %v912_v60 = vmul.f32 0.2, %v848_v25  ;;  %v934_v61 = vsel %vm870_vm2, %v838_v19, %v902_v34 }
 0x24a   :  { %v913_v63 = vmul.f32 0.2, %v849_v27  ;;  %v914_v0 = vmul.f32 0.2, %v850_v26  ;;  %v915_v4 = vmul.f32 0.2, %v851_v29  ;;  %v935_v6 = vsel %vm871_vm3, %v839_v52, %v903_v39 }
 0x24b   :  { %v916_v8 = vmul.f32 0.2, %v852_v28  ;;  %v936_v9 = vsel %vm872_vm4, %v840_v22, %v904_v45  ;;  %v937_v10 = vsel %vm873_vm5, %v841_v15, %v905_v47  ;;  %v938_v36 = vsel %vm874_vm6, %v842_v56, %v906_v48 }
 0x24c   :  { %v939_v3 = vsel %vm875_vm7, %v843_v16, %v907_v53  ;;  %v940_v38 = vsel %vm876_vm8, %v844_v20, %v908_v54  ;;  %v941_v42 = vsel %vm877_vm9, %v845_v23, %v909_v55  ;;  %v942_v62 = vsel %vm878_vm10, %v846_v21, %v910_v58 }
 0x24d   :  { %v943_v1 = vsel %vm879_vm11, %v847_v24, %v911_v59  ;;  %v944_v11 = vsel %vm880_vm12, %v848_v25, %v912_v60  ;;  %v945_v2 = vsel %vm881_vm13, %v849_v27, %v913_v63  ;;  %v946_v7 = vsel %vm882_vm14, %v850_v26, %v914_v0 }
 0x24e   :  { %v947_v5 = vsel %vm883_vm15, %v851_v29, %v915_v4  ;;  %v948_v50 = vsel %vm884_vm0, %v852_v28, %v916_v8  ;;  %v1154_v19 = vpack.c.bf16 %v934_v61, %v933_v57  ;;  %v1155_v52 = vpack.c.bf16 %v936_v9, %v935_v6 }
 0x24f   :  { %v1156_v22 = vpack.c.bf16 %v938_v36, %v937_v10  ;;  %v1157_v15 = vpack.c.bf16 %v940_v38, %v939_v3  ;;  %v1158_v56 = vpack.c.bf16 %v942_v62, %v941_v42  ;;  %v1159_v16 = vpack.c.bf16 %v944_v11, %v943_v1 }
 0x250   :  { %v1160_v20 = vpack.c.bf16 %v946_v7, %v945_v2  ;;  %v1161_v23 = vpack.c.bf16 %v948_v50, %v947_v5  ;;  %1061 = vst [vmem:[%s1739_s4] sm:$0xff] %v1154_v19  ;;  %1062 = vst [vmem:[%s1739_s4 + $0x8] sm:$0xff] %v1155_v52  ;;  %v855_v21 = vadd.f32 %v1611_v32, %v1570_v31  ;;  %vm885_vm1 = vcmp.gt.f32.partialorder %v1614_v33, 0.0 }
 0x251   :  { %v856_v24 = vadd.f32 %v1611_v32, %v1573_v35  ;;  %1063 = vst [vmem:[%s1739_s4 + $0x10] sm:$0xff] %v1156_v22  ;;  %1064 = vst [vmem:[%s1739_s4 + $0x18] sm:$0xff] %v1157_v15  ;;  %v857_v31 = vadd.f32 %v1611_v32, %v1576_v37  ;;  %v858_v35 = vadd.f32 %v1611_v32, %v1579_v43  ;;  %vm886_vm2 = vcmp.gt.f32.partialorder %v1617_v49, 0.0 }
 0x252   :  { %1065 = vst [vmem:[%s1739_s4 + $0x20] sm:$0xff] %v1158_v56  ;;  %1066 = vst [vmem:[%s1739_s4 + $0x28] sm:$0xff] %v1159_v16  ;;  %v859_v25 = vadd.f32 %v1611_v32, %v1582_v14  ;;  %v860_v27 = vadd.f32 %v1611_v32, %v1585_v18  ;;  %v861_v37 = vadd.f32 %v1611_v32, %v1588_v41  ;;  %vm887_vm3 = vcmp.gt.f32.partialorder %v855_v21, 0.0 }
 0x253   :  { %1067 = vst [vmem:[%s1739_s4 + $0x30] sm:$0xff] %v1160_v20  ;;  %1068 = vst [vmem:[%s1739_s4 + $0x38] sm:$0xff] %v1161_v23  ;;  %v862_v43 = vadd.f32 %v1611_v32, %v1591_v44  ;;  %v863_v14 = vadd.f32 %v1611_v32, %v1594_v46  ;;  %v864_v18 = vadd.f32 %v1611_v32, %v1597_v51  ;;  %vm888_vm4 = vcmp.gt.f32.partialorder %v856_v24, 0.0 }
 0x254   :  { %v865_v26 = vadd.f32 %v1611_v32, %v1600_v12  ;;  %v866_v29 = vadd.f32 %v1611_v32, %v1603_v13  ;;  %v867_v28 = vadd.f32 %v1611_v32, %v1606_v17  ;;  %v868_v41 = vadd.f32 %v1611_v32, %v1609_v40 }
 0x255   :  { %vm889_vm5 = vcmp.gt.f32.partialorder %v857_v31, 0.0  ;;  %vm890_vm6 = vcmp.gt.f32.partialorder %v858_v35, 0.0  ;;  %vm891_vm7 = vcmp.gt.f32.partialorder %v859_v25, 0.0  ;;  %vm892_vm8 = vcmp.gt.f32.partialorder %v860_v27, 0.0 }
 0x256   :  { %vm893_vm9 = vcmp.gt.f32.partialorder %v861_v37, 0.0  ;;  %vm894_vm10 = vcmp.gt.f32.partialorder %v862_v43, 0.0  ;;  %vm895_vm11 = vcmp.gt.f32.partialorder %v863_v14, 0.0  ;;  %vm896_vm12 = vcmp.gt.f32.partialorder %v864_v18, 0.0 }
 0x257   :  { %vm897_vm13 = vcmp.gt.f32.partialorder %v865_v26, 0.0  ;;  %vm898_vm14 = vcmp.gt.f32.partialorder %v866_v29, 0.0  ;;  %vm899_vm15 = vcmp.gt.f32.partialorder %v867_v28, 0.0  ;;  %vm900_vm0 = vcmp.gt.f32.partialorder %v868_v41, 0.0 }
 0x258   :  { %v917_v44 = vmul.f32 0.2, %v1614_v33  ;;  %v918_v46 = vmul.f32 0.2, %v1617_v49  ;;  %v919_v51 = vmul.f32 0.2, %v855_v21 }
 0x259   :  { %v920_v12 = vmul.f32 0.2, %v856_v24  ;;  %v921_v13 = vmul.f32 0.2, %v857_v31  ;;  %v922_v17 = vmul.f32 0.2, %v858_v35 }
 0x25a   :  { %v923_v40 = vmul.f32 0.2, %v859_v25  ;;  %v924_v32 = vmul.f32 0.2, %v860_v27  ;;  %v925_v30 = vmul.f32 0.2, %v861_v37  ;;  %v949_v34 = vsel %vm885_vm1, %v1614_v33, %v917_v44 }
 0x25b   :  { %v926_v39 = vmul.f32 0.2, %v862_v43  ;;  %v927_v45 = vmul.f32 0.2, %v863_v14  ;;  %v928_v47 = vmul.f32 0.2, %v864_v18  ;;  %v950_v48 = vsel %vm886_vm2, %v1617_v49, %v918_v46 }
 0x25c   :  { %v929_v53 = vmul.f32 0.2, %v865_v26  ;;  %v930_v54 = vmul.f32 0.2, %v866_v29  ;;  %v931_v55 = vmul.f32 0.2, %v867_v28  ;;  %v951_v57 = vsel %vm887_vm3, %v855_v21, %v919_v51 }
 0x25d   :  { %v932_v58 = vmul.f32 0.2, %v868_v41  ;;  %v952_v59 = vsel %vm888_vm4, %v856_v24, %v920_v12  ;;  %v953_v60 = vsel %vm889_vm5, %v857_v31, %v921_v13  ;;  %v954_v61 = vsel %vm890_vm6, %v858_v35, %v922_v17 }
 0x25e   :  { %v955_v33 = vsel %vm891_vm7, %v859_v25, %v923_v40  ;;  %v956_v63 = vsel %vm892_vm8, %v860_v27, %v924_v32  ;;  %v957_v0 = vsel %vm893_vm9, %v861_v37, %v925_v30  ;;  %v958_v49 = vsel %vm894_vm10, %v862_v43, %v926_v39 }
 0x25f   :  { %v959_v4 = vsel %vm895_vm11, %v863_v14, %v927_v45  ;;  %v960_v6 = vsel %vm896_vm12, %v864_v18, %v928_v47  ;;  %v961_v8 = vsel %vm897_vm13, %v865_v26, %v929_v53  ;;  %v962_v9 = vsel %vm898_vm14, %v866_v29, %v930_v54 }
 0x260   :  { %v963_v10 = vsel %vm899_vm15, %v867_v28, %v931_v55  ;;  %v964_v36 = vsel %vm900_vm0, %v868_v41, %v932_v58  ;;  %v1162_v3 = vpack.c.bf16 %v950_v48, %v949_v34  ;;  %v1163_v38 = vpack.c.bf16 %v952_v59, %v951_v57 }
 0x261   :  { %v1164_v42 = vpack.c.bf16 %v954_v61, %v953_v60  ;;  %v1165_v62 = vpack.c.bf16 %v956_v63, %v955_v33  ;;  %v1166_v1 = vpack.c.bf16 %v958_v49, %v957_v0  ;;  %v1167_v11 = vpack.c.bf16 %v960_v6, %v959_v4 }
 0x262   :  { %v1168_v2 = vpack.c.bf16 %v962_v9, %v961_v8  ;;  %v1169_v7 = vpack.c.bf16 %v964_v36, %v963_v10  ;;  %1069 = vst [vmem:[%s1739_s4 + $0x40] sm:$0xff] %v1162_v3  ;;  %1070 = vst [vmem:[%s1739_s4 + $0x48] sm:$0xff] %v1163_v38 }
 0x263   :  { %1071 = vst [vmem:[%s1739_s4 + $0x50] sm:$0xff] %v1164_v42  ;;  %1072 = vst [vmem:[%s1739_s4 + $0x58] sm:$0xff] %v1165_v62 }
 0x264   :  { %1073 = vst [vmem:[%s1739_s4 + $0x60] sm:$0xff] %v1166_v1  ;;  %1074 = vst [vmem:[%s1739_s4 + $0x68] sm:$0xff] %v1167_v11 }
 0x265   :  { %1075 = vst [vmem:[%s1739_s4 + $0x70] sm:$0xff] %v1168_v2  ;;  %1076 = vst [vmem:[%s1739_s4 + $0x78] sm:$0xff] %v1169_v7 }

// kernel: _lambda_.5
= control target key start
LH: loop header
LB: loop body
LE: loop exit
PB: predicated region body
PF: predicated region fallthrough
CT: control target
= control target key end

     0   :  { %s1386_s0 = inlined_call_operand.vmem [shape: bf16[256,512], index: 0, kind: input, shape index: {}]   ;;  %s1387_s1 = inlined_call_operand.vmem [shape: bf16[32,256], index: 1, kind: input, shape index: {}]   ;;  %s1388_s2 = inlined_call_operand.vmem [shape: f32[32,1], index: 2, kind: input, shape index: {}]   ;;  %s1389_s3 = inlined_call_operand.vmem [shape: f32[32,1], index: 3, kind: input, shape index: {}]   ;;  %s1390_s4 = inlined_call_operand.vmem [shape: bf16[32,512], index: 4, kind: output, shape index: {}]  }
   0x1   :  { %v902_v0 = vld [vmem:[%s1386_s0 + $0x4] ss:$16 sps:$4 sm:$0xff]   ;;  %v904_v1 = vld [vmem:[%s1386_s0 + $0xc] ss:$16 sps:$4 sm:$0xff]   ;;  %v906_v2 = vld [vmem:[%s1386_s0] ss:$16 sps:$4 sm:$0xff]  }
   0x2   :  { %425 = vmatprep.subr.bf16.mxu0 %v902_v0  ;;  %v907_v3 = vld [vmem:[%s1386_s0 + $0x8] ss:$16 sps:$4 sm:$0xff]   ;;  %478 = vmatprep.subr.bf16.mxu1 %v904_v1  ;;  %v908_v4 = vld [vmem:[%s1386_s0 + $0x24] ss:$16 sps:$4 sm:$0xff]   ;;  %v910_v5 = vld [vmem:[%s1386_s0 + $0x2c] ss:$16 sps:$4 sm:$0xff]  }
   0x3   :  { %426 = vmatpush1.bf16.msra.mxu0 %v906_v2  ;;  %479 = vmatpush1.bf16.msra.mxu1 %v907_v3  ;;  %v912_v6 = vld [vmem:[%s1386_s0 + $0x20] ss:$16 sps:$4 sm:$0xff]   ;;  %v913_v7 = vld [vmem:[%s1386_s0 + $0x28] ss:$16 sps:$4 sm:$0xff]   ;;  %v914_v8 = vld [vmem:[%s1386_s0 + $0x44] ss:$16 sps:$4 sm:$0xff]  }
   0x4   :  { %427 = vmatprep.subr.bf16.mxu0 %v908_v4  ;;  %480 = vmatprep.subr.bf16.mxu1 %v910_v5  ;;  %v916_v9 = vld [vmem:[%s1386_s0 + $0x4c] ss:$16 sps:$4 sm:$0xff]   ;;  %v918_v10 = vld [vmem:[%s1386_s0 + $0x40] ss:$16 sps:$4 sm:$0xff]   ;;  %v919_v11 = vld [vmem:[%s1386_s0 + $0x48] ss:$16 sps:$4 sm:$0xff]  }
   0x5   :  { %v920_v12 = vld [vmem:[%s1386_s0 + $0x64] ss:$16 sps:$4 sm:$0xff]   ;;  %v922_v13 = vld [vmem:[%s1386_s0 + $0x6c] ss:$16 sps:$4 sm:$0xff]   ;;  %v924_v14 = vld [vmem:[%s1386_s0 + $0x60] ss:$16 sps:$4 sm:$0xff]  }
   0x6   :  { %v925_v15 = vld [vmem:[%s1386_s0 + $0x68] ss:$16 sps:$4 sm:$0xff]   ;;  %v926_v16 = vld [vmem:[%s1386_s0 + $0x84] ss:$16 sps:$4 sm:$0xff]   ;;  %v928_v17 = vld [vmem:[%s1386_s0 + $0x8c] ss:$16 sps:$4 sm:$0xff]  }
   0x7   :  { %428 = vmatpush1.bf16.msra.mxu0 %v912_v6  ;;  %481 = vmatpush1.bf16.msra.mxu1 %v913_v7  ;;  %v930_v18 = vld [vmem:[%s1386_s0 + $0x80] ss:$16 sps:$4 sm:$0xff]   ;;  %v931_v19 = vld [vmem:[%s1386_s0 + $0x88] ss:$16 sps:$4 sm:$0xff]   ;;  %v932_v20 = vld [vmem:[%s1386_s0 + $0xa4] ss:$16 sps:$4 sm:$0xff]  }
   0x8   :  { %429 = vmatprep.subr.bf16.mxu0 %v914_v8  ;;  %482 = vmatprep.subr.bf16.mxu1 %v916_v9  ;;  %v934_v21 = vld [vmem:[%s1386_s0 + $0xac] ss:$16 sps:$4 sm:$0xff]   ;;  %v936_v22 = vld [vmem:[%s1386_s0 + $0xa0] ss:$16 sps:$4 sm:$0xff]   ;;  %v937_v23 = vld [vmem:[%s1386_s0 + $0xa8] ss:$16 sps:$4 sm:$0xff]  }
   0x9   :  { %v938_v24 = vld [vmem:[%s1386_s0 + $0xc4] ss:$16 sps:$4 sm:$0xff]   ;;  %v940_v25 = vld [vmem:[%s1386_s0 + $0xcc] ss:$16 sps:$4 sm:$0xff]   ;;  %v942_v26 = vld [vmem:[%s1386_s0 + $0xc0] ss:$16 sps:$4 sm:$0xff]  }
   0xa   :  { %v943_v27 = vld [vmem:[%s1386_s0 + $0xc8] ss:$16 sps:$4 sm:$0xff]   ;;  %v944_v28 = vld [vmem:[%s1386_s0 + $0xe4] ss:$16 sps:$4 sm:$0xff]   ;;  %v946_v29 = vld [vmem:[%s1386_s0 + $0xec] ss:$16 sps:$4 sm:$0xff]  }
   0xb   :  { %430 = vmatpush1.bf16.msra.mxu0 %v918_v10  ;;  %483 = vmatpush1.bf16.msra.mxu1 %v919_v11  ;;  %v948_v30 = vld [vmem:[%s1386_s0 + $0xe0] ss:$16 sps:$4 sm:$0xff]   ;;  %v949_v31 = vld [vmem:[%s1386_s0 + $0xe8] ss:$16 sps:$4 sm:$0xff]   ;;  %v950_v32 = vld [vmem:[%s1386_s0 + $0x104] ss:$16 sps:$4 sm:$0xff]  }
   0xc   :  { %431 = vmatprep.subr.bf16.mxu0 %v920_v12  ;;  %484 = vmatprep.subr.bf16.mxu1 %v922_v13  ;;  %v952_v33 = vld [vmem:[%s1386_s0 + $0x10c] ss:$16 sps:$4 sm:$0xff]   ;;  %v954_v34 = vld [vmem:[%s1386_s0 + $0x100] ss:$16 sps:$4 sm:$0xff]   ;;  %v955_v35 = vld [vmem:[%s1386_s0 + $0x108] ss:$16 sps:$4 sm:$0xff]  }
   0xd   :  { %v956_v36 = vld [vmem:[%s1386_s0 + $0x124] ss:$16 sps:$4 sm:$0xff]   ;;  %v958_v37 = vld [vmem:[%s1386_s0 + $0x12c] ss:$16 sps:$4 sm:$0xff]   ;;  %v960_v38 = vld [vmem:[%s1386_s0 + $0x120] ss:$16 sps:$4 sm:$0xff]  }
   0xe   :  { %v961_v39 = vld [vmem:[%s1386_s0 + $0x128] ss:$16 sps:$4 sm:$0xff]   ;;  %v962_v40 = vld [vmem:[%s1386_s0 + $0x144] ss:$16 sps:$4 sm:$0xff]   ;;  %v964_v41 = vld [vmem:[%s1386_s0 + $0x14c] ss:$16 sps:$4 sm:$0xff]  }
   0xf   :  { %432 = vmatpush1.bf16.msra.mxu0 %v924_v14  ;;  %485 = vmatpush1.bf16.msra.mxu1 %v925_v15  ;;  %v966_v42 = vld [vmem:[%s1386_s0 + $0x140] ss:$16 sps:$4 sm:$0xff]   ;;  %v967_v43 = vld [vmem:[%s1386_s0 + $0x148] ss:$16 sps:$4 sm:$0xff]   ;;  %v968_v44 = vld [vmem:[%s1386_s0 + $0x164] ss:$16 sps:$4 sm:$0xff]  }
  0x10   :  { %433 = vmatprep.subr.bf16.mxu0 %v926_v16  ;;  %486 = vmatprep.subr.bf16.mxu1 %v928_v17  ;;  %v970_v45 = vld [vmem:[%s1386_s0 + $0x16c] ss:$16 sps:$4 sm:$0xff]   ;;  %v972_v46 = vld [vmem:[%s1386_s0 + $0x160] ss:$16 sps:$4 sm:$0xff]   ;;  %v973_v48 = vld [vmem:[%s1386_s0 + $0x168] ss:$16 sps:$4 sm:$0xff]  }
  0x11   :  { %v1000_v47 = vld [vmem:[%s1387_s1 + $0x4] ss:$8 sps:$4 sm:$0xff]   ;;  %v978_v51 = vld [vmem:[%s1386_s0 + $0x180] ss:$16 sps:$4 sm:$0xff]   ;;  %v979_v52 = vld [vmem:[%s1386_s0 + $0x188] ss:$16 sps:$4 sm:$0xff]  }
  0x12   :  { %v974_v49 = vld [vmem:[%s1386_s0 + $0x184] ss:$16 sps:$4 sm:$0xff]   ;;  %v976_v50 = vld [vmem:[%s1386_s0 + $0x18c] ss:$16 sps:$4 sm:$0xff]   ;;  %457 = vmatprep.mubr.bf16.mxu0 %v1000_v47  ;;  %510 = vmatprep.mubr.bf16.mxu1 %v1000_v47  ;;  %v984_v55 = vld [vmem:[%s1386_s0 + $0x1a0] ss:$16 sps:$4 sm:$0xff]  }
  0x13   :  { %434 = vmatpush1.bf16.msra.mxu0 %v930_v18  ;;  %487 = vmatpush1.bf16.msra.mxu1 %v931_v19  ;;  %v980_v53 = vld [vmem:[%s1386_s0 + $0x1a4] ss:$16 sps:$4 sm:$0xff]   ;;  %v982_v54 = vld [vmem:[%s1386_s0 + $0x1ac] ss:$16 sps:$4 sm:$0xff]   ;;  %v985_v56 = vld [vmem:[%s1386_s0 + $0x1a8] ss:$16 sps:$4 sm:$0xff]  }
  0x14   :  { %435 = vmatprep.subr.bf16.mxu0 %v932_v20  ;;  %488 = vmatprep.subr.bf16.mxu1 %v934_v21  ;;  %v986_v57 = vld [vmem:[%s1386_s0 + $0x1c4] ss:$16 sps:$4 sm:$0xff]   ;;  %v988_v58 = vld [vmem:[%s1386_s0 + $0x1cc] ss:$16 sps:$4 sm:$0xff]   ;;  %v990_v59 = vld [vmem:[%s1386_s0 + $0x1c0] ss:$16 sps:$4 sm:$0xff]  }
  0x15   :  { %v991_v60 = vld [vmem:[%s1386_s0 + $0x1c8] ss:$16 sps:$4 sm:$0xff]   ;;  %v992_v61 = vld [vmem:[%s1386_s0 + $0x1e4] ss:$16 sps:$4 sm:$0xff]   ;;  %v994_v62 = vld [vmem:[%s1386_s0 + $0x1ec] ss:$16 sps:$4 sm:$0xff]  }
  0x16   :  { %v996_v63 = vld [vmem:[%s1386_s0 + $0x1e0] ss:$16 sps:$4 sm:$0xff]   ;;  %v997_v0 = vld [vmem:[%s1386_s0 + $0x1e8] ss:$16 sps:$4 sm:$0xff]   ;;  %v1001_v2 = vld [vmem:[%s1387_s1 + $0x14] ss:$8 sps:$4 sm:$0xff]  }
  0x17   :  { %436 = vmatpush1.bf16.msra.mxu0 %v936_v22  ;;  %489 = vmatpush1.bf16.msra.mxu1 %v937_v23  ;;  %v998_v1 = vld [vmem:[%s1387_s1] ss:$8 sps:$4 sm:$0xff]   ;;  %v1003_v3 = vld [vmem:[%s1387_s1 + $0x10] ss:$8 sps:$4 sm:$0xff]  }
  0x18   :  { %437 = vmatprep.subr.bf16.mxu0 %v938_v24  ;;  %490 = vmatprep.subr.bf16.mxu1 %v940_v25 }
  0x1b   :  { %438 = vmatpush1.bf16.msra.mxu0 %v942_v26  ;;  %491 = vmatpush1.bf16.msra.mxu1 %v943_v27 }
  0x1c   :  { %439 = vmatprep.subr.bf16.mxu0 %v944_v28  ;;  %492 = vmatprep.subr.bf16.mxu1 %v946_v29 }
  0x1f   :  { %440 = vmatpush1.bf16.msra.mxu0 %v948_v30  ;;  %493 = vmatpush1.bf16.msra.mxu1 %v949_v31 }
  0x20   :  { %441 = vmatprep.subr.bf16.mxu0 %v950_v32  ;;  %494 = vmatprep.subr.bf16.mxu1 %v952_v33 }
  0x23   :  { %442 = vmatpush1.bf16.msra.mxu0 %v954_v34  ;;  %495 = vmatpush1.bf16.msra.mxu1 %v955_v35 }
  0x24   :  { %443 = vmatprep.subr.bf16.mxu0 %v956_v36  ;;  %496 = vmatprep.subr.bf16.mxu1 %v958_v37 }
  0x27   :  { %444 = vmatpush1.bf16.msra.mxu0 %v960_v38  ;;  %497 = vmatpush1.bf16.msra.mxu1 %v961_v39 }
  0x28   :  { %445 = vmatprep.subr.bf16.mxu0 %v962_v40  ;;  %498 = vmatprep.subr.bf16.mxu1 %v964_v41 }
  0x2b   :  { %446 = vmatpush1.bf16.msra.mxu0 %v966_v42  ;;  %499 = vmatpush1.bf16.msra.mxu1 %v967_v43 }
  0x2c   :  { %447 = vmatprep.subr.bf16.mxu0 %v968_v44  ;;  %500 = vmatprep.subr.bf16.mxu1 %v970_v45 }
  0x2f   :  { %448 = vmatpush1.bf16.msra.mxu0 %v972_v46  ;;  %501 = vmatpush1.bf16.msra.mxu1 %v973_v48 }
  0x30   :  { %449 = vmatprep.subr.bf16.mxu0 %v974_v49  ;;  %502 = vmatprep.subr.bf16.mxu1 %v976_v50 }
  0x33   :  { %450 = vmatpush1.bf16.msra.mxu0 %v978_v51  ;;  %503 = vmatpush1.bf16.msra.mxu1 %v979_v52 }
  0x34   :  { %451 = vmatprep.subr.bf16.mxu0 %v980_v53  ;;  %504 = vmatprep.subr.bf16.mxu1 %v982_v54 }
  0x37   :  { %452 = vmatpush1.bf16.msra.mxu0 %v984_v55  ;;  %505 = vmatpush1.bf16.msra.mxu1 %v985_v56 }
  0x38   :  { %453 = vmatprep.subr.bf16.mxu0 %v986_v57  ;;  %506 = vmatprep.subr.bf16.mxu1 %v988_v58 }
  0x3b   :  { %454 = vmatpush1.bf16.msra.mxu0 %v990_v59  ;;  %507 = vmatpush1.bf16.msra.mxu1 %v991_v60  ;;  %v1012_v60 = vmov 0  }
  0x3c   :  { %455 = vmatprep.subr.bf16.mxu0 %v992_v61  ;;  %508 = vmatprep.subr.bf16.mxu1 %v994_v62 }
  0x3d   :  { %901 = vset.pattern.permute.xlu1 %v1012_v60  ;;  %900 = vset.pattern.permute.xlu0 %v1012_v60 }
  0x3f   :  { %456 = vmatpush1.bf16.msra.mxu0 %v996_v63  ;;  %509 = vmatpush1.bf16.msra.mxu1 %v997_v0 }
  0x42   :  { %458 = vmatmul.mubr.bf16.vlgmr.msra.gmra.mrb[0].mxu0 %v998_v1  ;;  %511 = vmatmul.mubr.bf16.vlgmr.msra.gmra.mrb[0].mxu1 %v998_v1 }
  0x43   :  { %467 = vmatprep.mubr.bf16.mxu0 %v1001_v2  ;;  %520 = vmatprep.mubr.bf16.mxu1 %v1001_v2 }
  0x4a   :  { %468 = vmatmul.mubr.bf16.gmra.mrb[4].mxu0 %v1003_v3  ;;  %521 = vmatmul.mubr.bf16.gmra.mrb[4].mxu1 %v1003_v3 }
 0x115   :  { %v1242_v4 = vpop.f32.mrb[0].mxu0  ;;  %v1244_v5 = vpop.f32.mrb[0].mxu1 }
 0x116   :  { %v551_v6 = vmul.f32 %v1242_v4, %v1242_v4  ;;  %v1248_v7 = vpop.f32.mrb[1].mxu0  ;;  %v1250_v8 = vpop.f32.mrb[1].mxu1  ;;  %v553_v13 = vmul.f32 %v1244_v5, %v1244_v5 }
 0x117   :  { %v531_v9 = vadd.f32 %v1248_v7, %v1242_v4  ;;  %v552_v10 = vmul.f32 %v1248_v7, %v1248_v7  ;;  %v1256_v11 = vpop.f32.mrb[2].mxu0  ;;  %v1258_v12 = vpop.f32.mrb[2].mxu1  ;;  %v554_v25 = vmul.f32 %v1250_v8, %v1250_v8 }
 0x118   :  { %v555_v14 = vmul.f32 %v1256_v11, %v1256_v11  ;;  %v1264_v15 = vpop.f32.mrb[3].mxu0  ;;  %v1266_v16 = vpop.f32.mrb[3].mxu1  ;;  %v557_v21 = vmul.f32 %v1258_v12, %v1258_v12 }
 0x119   :  { %v536_v17 = vadd.f32 %v1264_v15, %v1256_v11  ;;  %v556_v18 = vmul.f32 %v1264_v15, %v1264_v15  ;;  %v532_v19 = vadd.f32 %v531_v9, %v1244_v5  ;;  %v567_v20 = vadd.f32 %v552_v10, %v551_v6 }
 0x11a   :  { %v558_v29 = vmul.f32 %v1266_v16, %v1266_v16 }
 0x11b   :  { %v533_v22 = vadd.f32 %v532_v19, %v1250_v8  ;;  %v572_v23 = vadd.f32 %v556_v18, %v555_v14  ;;  %v537_v24 = vadd.f32 %v536_v17, %v1258_v12  ;;  %v568_v26 = vadd.f32 %v567_v20, %v553_v13 }
 0x11d   :  { %534 = vadd.xlane.f32.xlu0 %v533_v22  ;;  %v1279_v27 = vpop.f32.mrb[4].mxu0  ;;  %v1281_v28 = vpop.f32.mrb[4].mxu1  ;;  %v573_v30 = vadd.f32 %v572_v23, %v557_v21  ;;  %v538_v31 = vadd.f32 %v537_v24, %v1266_v16  ;;  %v569_v35 = vadd.f32 %v568_v26, %v554_v25 }
 0x11e   :  { %v559_v32 = vmul.f32 %v1279_v27, %v1279_v27  ;;  %v1288_v33 = vpop.f32.mrb[5].mxu0  ;;  %v1290_v34 = vpop.f32.mrb[5].mxu1  ;;  %v561_v41 = vmul.f32 %v1281_v28, %v1281_v28 }
 0x11f   :  { %v541_v36 = vadd.f32 %v1288_v33, %v1279_v27  ;;  %v560_v37 = vmul.f32 %v1288_v33, %v1288_v33  ;;  %v574_v38 = vadd.f32 %v573_v30, %v558_v29  ;;  %v1296_v39 = vpop.f32.mrb[6].mxu0  ;;  %v1298_v40 = vpop.f32.mrb[6].mxu1  ;;  %v562_v49 = vmul.f32 %v1290_v34, %v1290_v34 }
 0x120   :  { %v563_v42 = vmul.f32 %v1296_v39, %v1296_v39  ;;  %v1304_v43 = vpop.f32.mrb[7].mxu0  ;;  %v565_v44 = vmul.f32 %v1298_v40, %v1298_v40  ;;  %v1308_v45 = vpop.f32.mrb[7].mxu1 }
 0x121   :  { %575 = vadd.xlane.f32.xlu1 %v574_v38  ;;  %539 = vadd.xlane.f32.xlu0 %v538_v31  ;;  %v546_v46 = vadd.f32 %v1304_v43, %v1296_v39  ;;  %v564_v47 = vmul.f32 %v1304_v43, %v1304_v43  ;;  %v542_v48 = vadd.f32 %v541_v36, %v1281_v28  ;;  %v616_v38 = vld [vmem:[%s1388_s2 + $0x8] sm:$0xff] }
 0x122   :  { %v577_v50 = vadd.f32 %v560_v37, %v559_v32  ;;  %v566_v53 = vmul.f32 %v1308_v45, %v1308_v45 }
 0x123   :  { %v582_v51 = vadd.f32 %v564_v47, %v563_v42  ;;  %v543_v52 = vadd.f32 %v542_v48, %v1290_v34  ;;  %v547_v54 = vadd.f32 %v546_v46, %v1298_v40  ;;  %v615_v46 = vld [vmem:[%s1388_s2] sm:$0xff] }
 0x124   :  { %v578_v55 = vadd.f32 %v577_v50, %v561_v41 }
 0x125   :  { %570 = vadd.xlane.f32.xlu0 %v569_v35  ;;  %544 = vadd.xlane.f32.xlu1 %v543_v52  ;;  %v548_v56 = vadd.f32 %v547_v54, %v1308_v45  ;;  %v583_v57 = vadd.f32 %v582_v51, %v565_v44  ;;  %v623_v51 = vld [vmem:[%s1389_s3] sm:$0xff] }
 0x126   :  { %v579_v58 = vadd.f32 %v578_v55, %v562_v49  ;;  %v624_v55 = vld [vmem:[%s1389_s3 + $0x8] sm:$0xff] }
 0x127   :  { %v584_v59 = vadd.f32 %v583_v57, %v566_v53 }
 0x129   :  { %580 = vadd.xlane.f32.xlu0 %v579_v58  ;;  %549 = vadd.xlane.f32.xlu1 %v548_v56  ;;  %v617_v58 = vld [vmem:[%s1388_s2 + $0x10] sm:$0xff] }
 0x12d   :  { %585 = vadd.xlane.f32.xlu1 %v584_v59 }
 0x1aa   :  { %v535_v61 = vpop.xlane.xlu0 %534 }
 0x1ab   :  { %v587_v0 = vmul.f32 0.001953125, %v535_v61  ;;  %v618_v61 = vld [vmem:[%s1388_s2 + $0x18] sm:$0xff] }
 0x1ad   :  { %v595_v10 = vmul.f32 %v587_v0, %v587_v0 }
 0x1ae   :  { %v576_v62 = vpop.xlane.xlu1 %575  ;;  %v540_v63 = vpop.xlane.xlu0 %539 }
 0x1af   :  { %v588_v1 = vmul.f32 0.001953125, %v540_v63  ;;  %v592_v2 = vmul.f32 0.001953125, %v576_v62 }
 0x1b1   :  { %v596_v3 = vmul.f32 %v588_v1, %v588_v1 }
 0x1b2   :  { %v571_v6 = vpop.xlane.xlu0 %570  ;;  %v545_v9 = vpop.xlane.xlu1 %544 }
 0x1b3   :  { %v600_v13 = vsub.f32 %v592_v2, %v596_v3  ;;  %v591_v14 = vmul.f32 0.001953125, %v571_v6  ;;  %v589_v17 = vmul.f32 0.001953125, %v545_v9  ;;  %v626_v3 = vld [vmem:[%s1389_s3 + $0x18] sm:$0xff] }
 0x1b5   :  { %v604_v18 = vmax.f32 %v600_v13, 0.0  ;;  %v599_v19 = vsub.f32 %v591_v14, %v595_v10  ;;  %v597_v20 = vmul.f32 %v589_v17, %v589_v17 }
 0x1b6   :  { %v581_v21 = vpop.xlane.xlu0 %580  ;;  %v550_v22 = vpop.xlane.xlu1 %549 }
 0x1b7   :  { %v608_v23 = vadd.f32 1e-05, %v604_v18  ;;  %v603_v24 = vmax.f32 %v599_v19, 0.0  ;;  %v593_v25 = vmul.f32 0.001953125, %v581_v21  ;;  %v590_v26 = vmul.f32 0.001953125, %v550_v22 }
 0x1b9   :  { %1004 = vrsqrt.f32 %v608_v23  ;;  %v607_v29 = vadd.f32 1e-05, %v603_v24  ;;  %v601_v30 = vsub.f32 %v593_v25, %v597_v20  ;;  %v598_v31 = vmul.f32 %v590_v26, %v590_v26 }
 0x1ba   :  { %v586_v32 = vpop.xlane.xlu1 %585 }
 0x1bb   :  { %1006 = vrsqrt.f32 %v607_v29  ;;  %v594_v35 = vmul.f32 0.001953125, %v586_v32  ;;  %v605_v36 = vmax.f32 %v601_v30, 0.0 }
 0x1bd   :  { %v602_v37 = vsub.f32 %v594_v35, %v598_v31  ;;  %v609_v41 = vadd.f32 1e-05, %v605_v36 }
 0x1bf   :  { %v606_v42 = vmax.f32 %v602_v37, 0.0  ;;  %1008 = vrsqrt.f32 %v609_v41 }
 0x1c1   :  { %v610_v49 = vadd.f32 1e-05, %v606_v42 }
 0x1c3   :  { %v1005_v44 = vpop.eup %1004  ;;  %1010 = vrsqrt.f32 %v610_v49 }
 0x1c4   :  { %v620_v47 = vmul.f32 %v1005_v44, %v616_v38 }
 0x1c5   :  { %v1007_v48 = vpop.eup %1006 }
 0x1c6   :  { %642 = vperm.xlu1 %901, %v620_v47   ;;  %v619_v50 = vmul.f32 %v1007_v48, %v615_v46  ;;  %v628_v53 = vmul.f32 %v620_v47, %v588_v1 }
 0x1c8   :  { %637 = vperm.xlu0 %900, %v619_v50   ;;  %v627_v52 = vmul.f32 %v619_v50, %v587_v0  ;;  %v632_v56 = vsub.f32 %v624_v55, %v628_v53  ;;  %v625_v0 = vld [vmem:[%s1389_s3 + $0x10] sm:$0xff] }
 0x1c9   :  { %v1009_v57 = vpop.eup %1008 }
 0x1ca   :  { %v631_v54 = vsub.f32 %v623_v51, %v627_v52  ;;  %v621_v59 = vmul.f32 %v1009_v57, %v617_v58 }
 0x1cc   :  { %673 = vperm.xlu1 %901, %v631_v54   ;;  %v629_v63 = vmul.f32 %v621_v59, %v589_v17 }
 0x1cd   :  { %v1011_v60 = vpop.eup %1010 }
 0x1ce   :  { %v622_v62 = vmul.f32 %v1011_v60, %v618_v61  ;;  %v633_v1 = vsub.f32 %v625_v0, %v629_v63 }
 0x1d0   :  { %678 = vperm.xlu1 %901, %v632_v56   ;;  %v630_v2 = vmul.f32 %v622_v62, %v590_v26 }
 0x1d2   :  { %v634_v6 = vsub.f32 %v626_v3, %v630_v2 }
 0x1d4   :  { %647 = vperm.xlu1 %901, %v621_v59  }
 0x1d8   :  { %652 = vperm.xlu1 %901, %v622_v62  }
 0x1dc   :  { %683 = vperm.xlu1 %901, %v633_v1  }
 0x1e0   :  { %688 = vperm.xlu1 %901, %v634_v6  }
 0x245   :  { %v643_v9 = vpop.permute.xlu1 %642 }
 0x246   :  { %v659_v24 = vmul.f32 %v643_v9, %v1256_v11  ;;  %v660_v25 = vmul.f32 %v643_v9, %v1264_v15  ;;  %v661_v26 = vmul.f32 %v643_v9, %v1258_v12 }
 0x247   :  { %v638_v10 = vpop.permute.xlu0 %637 }
 0x248   :  { %v655_v13 = vmul.f32 %v638_v10, %v1242_v4  ;;  %v656_v14 = vmul.f32 %v638_v10, %v1248_v7  ;;  %v657_v17 = vmul.f32 %v638_v10, %v1244_v5  ;;  %v658_v18 = vmul.f32 %v638_v10, %v1250_v8 }
 0x249   :  { %v662_v4 = vmul.f32 %v643_v9, %v1266_v16 }
 0x24b   :  { %v674_v19 = vpop.permute.xlu1 %673 }
 0x24c   :  { %v691_v20 = vadd.f32 %v674_v19, %v655_v13  ;;  %v692_v21 = vadd.f32 %v674_v19, %v656_v14  ;;  %v693_v22 = vadd.f32 %v674_v19, %v657_v17  ;;  %v694_v23 = vadd.f32 %v674_v19, %v658_v18 }
 0x24e   :  { %vm707_vm0 = vcmp.gt.f32.partialorder %v691_v20, 0.0  ;;  %vm708_vm1 = vcmp.gt.f32.partialorder %v692_v21, 0.0  ;;  %vm709_vm2 = vcmp.gt.f32.partialorder %v693_v22, 0.0  ;;  %vm710_vm3 = vcmp.gt.f32.partialorder %v694_v23, 0.0 }
 0x24f   :  { %v723_v5 = vmul.f32 0.2, %v691_v20  ;;  %v724_v7 = vmul.f32 0.2, %v692_v21  ;;  %v725_v8 = vmul.f32 0.2, %v693_v22  ;;  %v679_v29 = vpop.permute.xlu1 %678 }
 0x250   :  { %v726_v30 = vmul.f32 0.2, %v694_v23  ;;  %v695_v31 = vadd.f32 %v679_v29, %v659_v24  ;;  %v696_v32 = vadd.f32 %v679_v29, %v660_v25  ;;  %v697_v35 = vadd.f32 %v679_v29, %v661_v26 }
 0x251   :  { %v739_v36 = vsel %vm707_vm0, %v691_v20, %v723_v5  ;;  %v740_v11 = vsel %vm708_vm1, %v692_v21, %v724_v7  ;;  %v741_v37 = vsel %vm709_vm2, %v693_v22, %v725_v8  ;;  %v698_v15 = vadd.f32 %v679_v29, %v662_v4 }
 0x252   :  { %v742_v38 = vsel %vm710_vm3, %v694_v23, %v726_v30  ;;  %v891_v12 = vpack.c.bf16 %v740_v11, %v739_v36  ;;  %vm711_vm4 = vcmp.gt.f32.partialorder %v695_v31, 0.0  ;;  %vm712_vm5 = vcmp.gt.f32.partialorder %v696_v32, 0.0 }
 0x253   :  { %v892_v41 = vpack.c.bf16 %v742_v38, %v741_v37  ;;  %vm713_vm6 = vcmp.gt.f32.partialorder %v697_v35, 0.0  ;;  %vm714_vm7 = vcmp.gt.f32.partialorder %v698_v15, 0.0  ;;  %v727_v16 = vmul.f32 0.2, %v695_v31  ;;  %v648_v42 = vpop.permute.xlu1 %647 }
 0x254   :  { %803 = vst [vmem:[%s1390_s4] sm:$0xff] %v891_v12  ;;  %v728_v44 = vmul.f32 0.2, %v696_v32  ;;  %v729_v46 = vmul.f32 0.2, %v697_v35  ;;  %v730_v47 = vmul.f32 0.2, %v698_v15  ;;  %v663_v55 = vmul.f32 %v648_v42, %v1279_v27 }
 0x255   :  { %804 = vst [vmem:[%s1390_s4 + $0x8] sm:$0xff] %v892_v41  ;;  %v743_v48 = vsel %vm711_vm4, %v695_v31, %v727_v16  ;;  %v664_v56 = vmul.f32 %v648_v42, %v1288_v33  ;;  %v665_v57 = vmul.f32 %v648_v42, %v1281_v28  ;;  %v666_v58 = vmul.f32 %v648_v42, %v1290_v34 }
 0x256   :  { %v744_v49 = vsel %vm712_vm5, %v696_v32, %v728_v44  ;;  %v745_v50 = vsel %vm713_vm6, %v697_v35, %v729_v46  ;;  %v746_v51 = vsel %vm714_vm7, %v698_v15, %v730_v47 }
 0x257   :  { %v893_v52 = vpack.c.bf16 %v744_v49, %v743_v48  ;;  %v894_v53 = vpack.c.bf16 %v746_v51, %v745_v50  ;;  %v653_v54 = vpop.permute.xlu1 %652 }
 0x258   :  { %v667_v0 = vmul.f32 %v653_v54, %v1296_v39  ;;  %v668_v1 = vmul.f32 %v653_v54, %v1304_v43  ;;  %v669_v2 = vmul.f32 %v653_v54, %v1298_v40  ;;  %v670_v34 = vmul.f32 %v653_v54, %v1308_v45 }
 0x259   :  { %805 = vst [vmem:[%s1390_s4 + $0x10] sm:$0xff] %v893_v52  ;;  %806 = vst [vmem:[%s1390_s4 + $0x18] sm:$0xff] %v894_v53 }
 0x25b   :  { %v684_v59 = vpop.permute.xlu1 %683 }
 0x25c   :  { %v699_v60 = vadd.f32 %v684_v59, %v663_v55  ;;  %v700_v61 = vadd.f32 %v684_v59, %v664_v56  ;;  %v701_v62 = vadd.f32 %v684_v59, %v665_v57  ;;  %v702_v63 = vadd.f32 %v684_v59, %v666_v58 }
 0x25e   :  { %vm715_vm8 = vcmp.gt.f32.partialorder %v699_v60, 0.0  ;;  %vm716_vm9 = vcmp.gt.f32.partialorder %v700_v61, 0.0  ;;  %vm717_vm10 = vcmp.gt.f32.partialorder %v701_v62, 0.0  ;;  %vm718_vm11 = vcmp.gt.f32.partialorder %v702_v63, 0.0 }
 0x25f   :  { %v731_v27 = vmul.f32 0.2, %v699_v60  ;;  %v732_v33 = vmul.f32 0.2, %v700_v61  ;;  %v733_v28 = vmul.f32 0.2, %v701_v62  ;;  %v689_v3 = vpop.permute.xlu1 %688 }
 0x260   :  { %v734_v6 = vmul.f32 0.2, %v702_v63  ;;  %v703_v9 = vadd.f32 %v689_v3, %v667_v0  ;;  %v704_v10 = vadd.f32 %v689_v3, %v668_v1  ;;  %v705_v13 = vadd.f32 %v689_v3, %v669_v2 }
 0x261   :  { %v747_v14 = vsel %vm715_vm8, %v699_v60, %v731_v27  ;;  %v748_v39 = vsel %vm716_vm9, %v700_v61, %v732_v33  ;;  %v749_v17 = vsel %vm717_vm10, %v701_v62, %v733_v28  ;;  %v706_v43 = vadd.f32 %v689_v3, %v670_v34 }
 0x262   :  { %v750_v18 = vsel %vm718_vm11, %v702_v63, %v734_v6  ;;  %v895_v40 = vpack.c.bf16 %v748_v39, %v747_v14  ;;  %vm719_vm12 = vcmp.gt.f32.partialorder %v703_v9, 0.0  ;;  %vm720_vm13 = vcmp.gt.f32.partialorder %v704_v10, 0.0 }
 0x263   :  { %v896_v19 = vpack.c.bf16 %v750_v18, %v749_v17  ;;  %vm721_vm14 = vcmp.gt.f32.partialorder %v705_v13, 0.0  ;;  %vm722_vm15 = vcmp.gt.f32.partialorder %v706_v43, 0.0  ;;  %v735_v20 = vmul.f32 0.2, %v703_v9 }
 0x264   :  { %807 = vst [vmem:[%s1390_s4 + $0x20] sm:$0xff] %v895_v40  ;;  %v736_v45 = vmul.f32 0.2, %v704_v10  ;;  %v737_v21 = vmul.f32 0.2, %v705_v13 }
 0x265   :  { %v738_v22 = vmul.f32 0.2, %v706_v43  ;;  %808 = vst [vmem:[%s1390_s4 + $0x28] sm:$0xff] %v896_v19  ;;  %v751_v23 = vsel %vm719_vm12, %v703_v9, %v735_v20 }
 0x266   :  { %v752_v24 = vsel %vm720_vm13, %v704_v10, %v736_v45  ;;  %v753_v25 = vsel %vm721_vm14, %v705_v13, %v737_v21 }
 0x267   :  { %v754_v26 = vsel %vm722_vm15, %v706_v43, %v738_v22  ;;  %v897_v4 = vpack.c.bf16 %v752_v24, %v751_v23 }
 0x268   :  { %v898_v5 = vpack.c.bf16 %v754_v26, %v753_v25 }
 0x269   :  { %809 = vst [vmem:[%s1390_s4 + $0x30] sm:$0xff] %v897_v4 }
 0x26a   :  { %810 = vst [vmem:[%s1390_s4 + $0x38] sm:$0xff] %v898_v5 }

// kernel: _lambda_.6
= control target key start
LH: loop header
LB: loop body
LE: loop exit
PB: predicated region body
PF: predicated region fallthrough
CT: control target
= control target key end

     0   :  { %s1350_s0 = inlined_call_operand.vmem [shape: bf16[512,128], index: 0, kind: input, shape index: {}]   ;;  %s1351_s1 = inlined_call_operand.vmem [shape: bf16[64,512], index: 1, kind: input, shape index: {}]   ;;  %s1352_s2 = inlined_call_operand.vmem [shape: f32[64,1], index: 2, kind: input, shape index: {}]   ;;  %s1353_s3 = inlined_call_operand.vmem [shape: f32[64,1], index: 3, kind: input, shape index: {}]   ;;  %s1354_s4 = inlined_call_operand.vmem [shape: bf16[64,128], index: 4, kind: output, shape index: {}]  }
   0x1   :  { %v970_v0 = vld [vmem:[%s1350_s0 + $0x40] sm:$0xff]   ;;  %v974_v4 = vld [vmem:[%s1350_s0 + $0x48] sm:$0xff]   ;;  %v978_v8 = vld [vmem:[%s1350_s0 + $0x50] sm:$0xff]  }
   0x2   :  { %v971_v1 = vld [vmem:[%s1350_s0 + $0xc0] sm:$0xff]   ;;  %887 = vmatprep.subr.bf16.mxu0 %v970_v0  ;;  %v975_v5 = vld [vmem:[%s1350_s0 + $0xc8] sm:$0xff]   ;;  %v979_v9 = vld [vmem:[%s1350_s0 + $0xd0] sm:$0xff]  }
   0x3   :  { %v972_v2 = vld [vmem:[%s1350_s0] sm:$0xff]   ;;  %927 = vmatprep.subr.bf16.mxu1 %v971_v1  ;;  %v976_v6 = vld [vmem:[%s1350_s0 + $0x8] sm:$0xff]   ;;  %v980_v10 = vld [vmem:[%s1350_s0 + $0x10] sm:$0xff]  }
   0x4   :  { %v973_v3 = vld [vmem:[%s1350_s0 + $0x80] sm:$0xff]   ;;  %888 = vmatpush3.bf16.msra.mxu0 %v972_v2  ;;  %v977_v7 = vld [vmem:[%s1350_s0 + $0x88] sm:$0xff]   ;;  %v981_v11 = vld [vmem:[%s1350_s0 + $0x90] sm:$0xff]  }
   0x5   :  { %928 = vmatpush3.bf16.msra.mxu1 %v973_v3  ;;  %889 = vmatprep.subr.bf16.mxu0 %v974_v4  ;;  %v982_v12 = vld [vmem:[%s1350_s0 + $0x58] sm:$0xff]   ;;  %v986_v16 = vld [vmem:[%s1350_s0 + $0x60] sm:$0xff]   ;;  %v990_v20 = vld [vmem:[%s1350_s0 + $0x68] sm:$0xff]  }
   0x6   :  { %929 = vmatprep.subr.bf16.mxu1 %v975_v5  ;;  %v983_v13 = vld [vmem:[%s1350_s0 + $0xd8] sm:$0xff]   ;;  %v987_v17 = vld [vmem:[%s1350_s0 + $0xe0] sm:$0xff]   ;;  %v991_v21 = vld [vmem:[%s1350_s0 + $0xe8] sm:$0xff]  }
   0x7   :  { %v984_v14 = vld [vmem:[%s1350_s0 + $0x18] sm:$0xff]   ;;  %v988_v18 = vld [vmem:[%s1350_s0 + $0x20] sm:$0xff]   ;;  %v992_v22 = vld [vmem:[%s1350_s0 + $0x28] sm:$0xff]  }
   0x8   :  { %890 = vmatpush3.bf16.msra.mxu0 %v976_v6  ;;  %v985_v15 = vld [vmem:[%s1350_s0 + $0x98] sm:$0xff]   ;;  %v989_v19 = vld [vmem:[%s1350_s0 + $0xa0] sm:$0xff]   ;;  %v993_v23 = vld [vmem:[%s1350_s0 + $0xa8] sm:$0xff]  }
   0x9   :  { %930 = vmatpush3.bf16.msra.mxu1 %v977_v7  ;;  %891 = vmatprep.subr.bf16.mxu0 %v978_v8  ;;  %v994_v24 = vld [vmem:[%s1350_s0 + $0x70] sm:$0xff]   ;;  %v998_v28 = vld [vmem:[%s1350_s0 + $0x78] sm:$0xff]  }
   0xa   :  { %931 = vmatprep.subr.bf16.mxu1 %v979_v9  ;;  %v995_v25 = vld [vmem:[%s1350_s0 + $0xf0] sm:$0xff]   ;;  %v999_v29 = vld [vmem:[%s1350_s0 + $0xf8] sm:$0xff]  }
   0xb   :  { %v996_v26 = vld [vmem:[%s1350_s0 + $0x30] sm:$0xff]   ;;  %v1000_v30 = vld [vmem:[%s1350_s0 + $0x38] sm:$0xff]  }
   0xc   :  { %892 = vmatpush3.bf16.msra.mxu0 %v980_v10  ;;  %v997_v27 = vld [vmem:[%s1350_s0 + $0xb0] sm:$0xff]   ;;  %v1001_v31 = vld [vmem:[%s1350_s0 + $0xb8] sm:$0xff]  }
   0xd   :  { %932 = vmatpush3.bf16.msra.mxu1 %v981_v11  ;;  %893 = vmatprep.subr.bf16.mxu0 %v982_v12  ;;  %v1002_v32 = vld [vmem:[%s1351_s1] ss:$16 sps:$4 sm:$0xff]   ;;  %v1004_v33 = vld [vmem:[%s1351_s1 + $0x4] ss:$16 sps:$4 sm:$0xff]   ;;  %v1005_v34 = vld [vmem:[%s1351_s1 + $0x8] ss:$16 sps:$4 sm:$0xff]  }
   0xe   :  { %933 = vmatprep.subr.bf16.mxu1 %v983_v13  ;;  %v1007_v35 = vld [vmem:[%s1351_s1 + $0xc] ss:$16 sps:$4 sm:$0xff]   ;;  %402 = vmatprep.mubr.bf16.mxu0 %v1004_v33  ;;  %v1008_v36 = vld [vmem:[%s1351_s1 + $0x24] ss:$16 sps:$4 sm:$0xff]   ;;  %v1012_v38 = vld [vmem:[%s1351_s1 + $0x20] ss:$16 sps:$4 sm:$0xff]  }
   0xf   :  { %467 = vmatprep.mubr.bf16.mxu1 %v1007_v35  ;;  %v1010_v37 = vld [vmem:[%s1351_s1 + $0x2c] ss:$16 sps:$4 sm:$0xff]   ;;  %v1013_v39 = vld [vmem:[%s1351_s1 + $0x28] ss:$16 sps:$4 sm:$0xff]   ;;  %v1014_v40 = vld [vmem:[%s1351_s1 + $0x44] ss:$16 sps:$4 sm:$0xff]  }
  0x10   :  { %894 = vmatpush3.bf16.msra.mxu0 %v984_v14  ;;  %v1016_v41 = vld [vmem:[%s1351_s1 + $0x4c] ss:$16 sps:$4 sm:$0xff]   ;;  %v1018_v42 = vld [vmem:[%s1351_s1 + $0x40] ss:$16 sps:$4 sm:$0xff]   ;;  %v1019_v43 = vld [vmem:[%s1351_s1 + $0x48] ss:$16 sps:$4 sm:$0xff]  }
  0x11   :  { %934 = vmatpush3.bf16.msra.mxu1 %v985_v15  ;;  %895 = vmatprep.subr.bf16.mxu0 %v986_v16  ;;  %v1020_v44 = vld [vmem:[%s1351_s1 + $0x64] ss:$16 sps:$4 sm:$0xff]   ;;  %v1022_v45 = vld [vmem:[%s1351_s1 + $0x6c] ss:$16 sps:$4 sm:$0xff]   ;;  %v1024_v46 = vld [vmem:[%s1351_s1 + $0x60] ss:$16 sps:$4 sm:$0xff]  }
  0x12   :  { %935 = vmatprep.subr.bf16.mxu1 %v987_v17  ;;  %v1025_v47 = vld [vmem:[%s1351_s1 + $0x68] ss:$16 sps:$4 sm:$0xff]  }
  0x14   :  { %896 = vmatpush3.bf16.msra.mxu0 %v988_v18 }
  0x15   :  { %936 = vmatpush3.bf16.msra.mxu1 %v989_v19  ;;  %897 = vmatprep.subr.bf16.mxu0 %v990_v20 }
  0x16   :  { %937 = vmatprep.subr.bf16.mxu1 %v991_v21 }
  0x18   :  { %898 = vmatpush3.bf16.msra.mxu0 %v992_v22 }
  0x19   :  { %938 = vmatpush3.bf16.msra.mxu1 %v993_v23  ;;  %899 = vmatprep.subr.bf16.mxu0 %v994_v24 }
  0x1a   :  { %939 = vmatprep.subr.bf16.mxu1 %v995_v25 }
  0x1c   :  { %900 = vmatpush3.bf16.msra.mxu0 %v996_v26 }
  0x1d   :  { %940 = vmatpush3.bf16.msra.mxu1 %v997_v27  ;;  %901 = vmatprep.subr.bf16.mxu0 %v998_v28 }
  0x1e   :  { %941 = vmatprep.subr.bf16.mxu1 %v999_v29 }
  0x20   :  { %902 = vmatpush3.bf16.msra.mxu0 %v1000_v30 }
  0x21   :  { %942 = vmatpush3.bf16.msra.mxu1 %v1001_v31 }
  0x23   :  { %403 = vmatmul.mubr.bf16.vlgmr.msra.gmra.mrb[0].mxu0 %v1002_v32 }
  0x24   :  { %468 = vmatmul.mubr.bf16.vlgmr.msra.gmra.mrb[0].mxu1 %v1005_v34  ;;  %410 = vmatprep.mubr.bf16.mxu0 %v1008_v36 }
  0x25   :  { %475 = vmatprep.mubr.bf16.mxu1 %v1010_v37 }
  0x2b   :  { %411 = vmatmul.mubr.bf16.gmra.mrb[4].mxu0 %v1012_v38 }
  0x2c   :  { %476 = vmatmul.mubr.bf16.gmra.mrb[4].mxu1 %v1013_v39  ;;  %418 = vmatprep.mubr.bf16.mxu0 %v1014_v40 }
  0x2d   :  { %483 = vmatprep.mubr.bf16.mxu1 %v1016_v41 }
  0x33   :  { %419 = vmatmul.mubr.bf16.gmra.mrb[8].mxu0 %v1018_v42 }
  0x34   :  { %484 = vmatmul.mubr.bf16.gmra.mrb[8].mxu1 %v1019_v43  ;;  %426 = vmatprep.mubr.bf16.mxu0 %v1020_v44 }
  0x35   :  { %491 = vmatprep.mubr.bf16.mxu1 %v1022_v45 }
  0x3b   :  { %427 = vmatmul.mubr.bf16.gmra.mrb[12].mxu0 %v1024_v46 }
  0x3c   :  { %492 = vmatmul.mubr.bf16.gmra.mrb[12].mxu1 %v1025_v47 }
  0xf6   :  { %v903_v48 = vpop.f32.mrb[0].mxu0 }
  0xf7   :  { %v943_v49 = vpop.f32.mrb[0].mxu1  ;;  %v904_v50 = vpop.f32.mrb[1].mxu0 }
  0xf8   :  { %v905_v51 = vadd.f32 %v904_v50, %v903_v48  ;;  %v944_v52 = vpop.f32.mrb[1].mxu1  ;;  %v906_v53 = vpop.f32.mrb[2].mxu0  ;;  %v1042_v48 = vmov 0  }
  0xf9   :  { %v945_v54 = vadd.f32 %v944_v52, %v943_v49  ;;  %v946_v55 = vpop.f32.mrb[2].mxu1  ;;  %v907_v56 = vpop.f32.mrb[3].mxu0  ;;  %969 = vset.pattern.permute.xlu1 %v1042_v48  ;;  %968 = vset.pattern.permute.xlu0 %v1042_v48 }
  0xfa   :  { %v908_v57 = vadd.f32 %v907_v56, %v906_v53  ;;  %v947_v58 = vpop.f32.mrb[3].mxu1 }
  0xfb   :  { %v1212_v59 = vadd.f32 %v945_v54, %v905_v51  ;;  %v948_v60 = vadd.f32 %v947_v58, %v946_v55 }
  0xfd   :  { %v1214_v61 = vadd.f32 %v948_v60, %v908_v57  ;;  %500 = vadd.xlane.f32.xlu0 %v1212_v59  ;;  %v516_v12 = vmul.f32 %v1212_v59, %v1212_v59 }
  0xfe   :  { %v909_v62 = vpop.f32.mrb[4].mxu0 }
  0xff   :  { %v949_v63 = vpop.f32.mrb[4].mxu1  ;;  %v910_v0 = vpop.f32.mrb[5].mxu0  ;;  %v517_v1 = vmul.f32 %v1214_v61, %v1214_v61 }
 0x100   :  { %v911_v2 = vadd.f32 %v910_v0, %v909_v62  ;;  %v950_v3 = vpop.f32.mrb[5].mxu1  ;;  %v912_v4 = vpop.f32.mrb[6].mxu0 }
 0x101   :  { %v951_v5 = vadd.f32 %v950_v3, %v949_v63  ;;  %526 = vadd.xlane.f32.xlu1 %v517_v1  ;;  %502 = vadd.xlane.f32.xlu0 %v1214_v61  ;;  %v952_v6 = vpop.f32.mrb[6].mxu1  ;;  %v913_v7 = vpop.f32.mrb[7].mxu0 }
 0x102   :  { %v914_v8 = vadd.f32 %v913_v7, %v912_v4  ;;  %v953_v9 = vpop.f32.mrb[7].mxu1 }
 0x103   :  { %v1220_v10 = vadd.f32 %v951_v5, %v911_v2  ;;  %v954_v11 = vadd.f32 %v953_v9, %v952_v6 }
 0x105   :  { %v1224_v13 = vadd.f32 %v954_v11, %v914_v8  ;;  %504 = vadd.xlane.f32.xlu1 %v1220_v10  ;;  %524 = vadd.xlane.f32.xlu0 %v516_v12  ;;  %v518_v14 = vmul.f32 %v1220_v10, %v1220_v10 }
 0x106   :  { %v915_v15 = vpop.f32.mrb[8].mxu0 }
 0x107   :  { %v955_v16 = vpop.f32.mrb[8].mxu1  ;;  %v916_v17 = vpop.f32.mrb[9].mxu0  ;;  %v519_v28 = vmul.f32 %v1224_v13, %v1224_v13 }
 0x108   :  { %v917_v18 = vadd.f32 %v916_v17, %v915_v15  ;;  %v956_v19 = vpop.f32.mrb[9].mxu1  ;;  %v918_v20 = vpop.f32.mrb[10].mxu0 }
 0x109   :  { %v957_v21 = vadd.f32 %v956_v19, %v955_v16  ;;  %506 = vadd.xlane.f32.xlu1 %v1224_v13  ;;  %528 = vadd.xlane.f32.xlu0 %v518_v14  ;;  %v958_v22 = vpop.f32.mrb[10].mxu1  ;;  %v919_v23 = vpop.f32.mrb[11].mxu0 }
 0x10a   :  { %v920_v24 = vadd.f32 %v919_v23, %v918_v20  ;;  %v959_v25 = vpop.f32.mrb[11].mxu1 }
 0x10b   :  { %v1230_v26 = vadd.f32 %v957_v21, %v917_v18  ;;  %v960_v27 = vadd.f32 %v959_v25, %v958_v22 }
 0x10d   :  { %v1234_v29 = vadd.f32 %v960_v27, %v920_v24  ;;  %530 = vadd.xlane.f32.xlu1 %v519_v28  ;;  %508 = vadd.xlane.f32.xlu0 %v1230_v26  ;;  %v520_v30 = vmul.f32 %v1230_v26, %v1230_v26  ;;  %v597_v28 = vld [vmem:[%s1352_s2 + $0x8] sm:$0xff] }
 0x10e   :  { %v921_v31 = vpop.f32.mrb[12].mxu0 }
 0x10f   :  { %v961_v32 = vpop.f32.mrb[12].mxu1  ;;  %v922_v33 = vpop.f32.mrb[13].mxu0  ;;  %v521_v40 = vmul.f32 %v1234_v29, %v1234_v29 }
 0x110   :  { %v923_v34 = vadd.f32 %v922_v33, %v921_v31  ;;  %v962_v35 = vpop.f32.mrb[13].mxu1  ;;  %v924_v36 = vpop.f32.mrb[14].mxu0 }
 0x111   :  { %v963_v37 = vadd.f32 %v962_v35, %v961_v32  ;;  %510 = vadd.xlane.f32.xlu1 %v1234_v29  ;;  %532 = vadd.xlane.f32.xlu0 %v520_v30  ;;  %v964_v38 = vpop.f32.mrb[14].mxu1  ;;  %v925_v39 = vpop.f32.mrb[15].mxu0 }
 0x112   :  { %v926_v41 = vadd.f32 %v925_v39, %v924_v36  ;;  %v965_v42 = vpop.f32.mrb[15].mxu1 }
 0x113   :  { %v1242_v43 = vadd.f32 %v963_v37, %v923_v34  ;;  %v966_v44 = vadd.f32 %v965_v42, %v964_v38  ;;  %v596_v37 = vld [vmem:[%s1352_s2] sm:$0xff] }
 0x115   :  { %v1244_v45 = vadd.f32 %v966_v44, %v926_v41  ;;  %534 = vadd.xlane.f32.xlu1 %v521_v40  ;;  %512 = vadd.xlane.f32.xlu0 %v1242_v43  ;;  %v522_v46 = vmul.f32 %v1242_v43, %v1242_v43 }
 0x117   :  { %v523_v47 = vmul.f32 %v1244_v45, %v1244_v45 }
 0x119   :  { %514 = vadd.xlane.f32.xlu1 %v1244_v45  ;;  %536 = vadd.xlane.f32.xlu0 %v522_v46 }
 0x11d   :  { %538 = vadd.xlane.f32.xlu1 %v523_v47 }
 0x18a   :  { %v501_v49 = vpop.xlane.xlu0 %500 }
 0x18b   :  { %v1252_v52 = vmul.f32 0.0078125, %v501_v49 }
 0x18d   :  { %v556_v58 = vmul.f32 %v1252_v52, %v1252_v52 }
 0x18e   :  { %v527_v50 = vpop.xlane.xlu1 %526  ;;  %v503_v51 = vpop.xlane.xlu0 %502 }
 0x18f   :  { %v541_v53 = vmul.f32 0.0078125, %v503_v51  ;;  %v549_v54 = vmul.f32 0.0078125, %v527_v50  ;;  %v613_v51 = vld [vmem:[%s1353_s3 + $0x8] sm:$0xff] }
 0x191   :  { %v557_v55 = vmul.f32 %v541_v53, %v541_v53 }
 0x192   :  { %v505_v56 = vpop.xlane.xlu1 %504  ;;  %v525_v57 = vpop.xlane.xlu0 %524 }
 0x193   :  { %v565_v60 = vsub.f32 %v549_v54, %v557_v55  ;;  %v1256_v62 = vmul.f32 0.0078125, %v505_v56  ;;  %v548_v63 = vmul.f32 0.0078125, %v525_v57  ;;  %v612_v54 = vld [vmem:[%s1353_s3] sm:$0xff] }
 0x195   :  { %v573_v0 = vmax.f32 %v565_v60, 0.0  ;;  %v558_v1 = vmul.f32 %v1256_v62, %v1256_v62  ;;  %v564_v2 = vsub.f32 %v548_v63, %v556_v58 }
 0x196   :  { %v507_v3 = vpop.xlane.xlu1 %506  ;;  %v529_v4 = vpop.xlane.xlu0 %528 }
 0x197   :  { %v581_v5 = vadd.f32 1e-05, %v573_v0  ;;  %v572_v6 = vmax.f32 %v564_v2, 0.0  ;;  %v1260_v7 = vmul.f32 0.0078125, %v507_v3  ;;  %v550_v8 = vmul.f32 0.0078125, %v529_v4  ;;  %v598_v4 = vld [vmem:[%s1352_s2 + $0x10] sm:$0xff] }
 0x199   :  { %1026 = vrsqrt.f32 %v581_v5  ;;  %v580_v9 = vadd.f32 1e-05, %v572_v6  ;;  %v566_v11 = vsub.f32 %v550_v8, %v558_v1  ;;  %v559_v12 = vmul.f32 %v1260_v7, %v1260_v7 }
 0x19a   :  { %v531_v14 = vpop.xlane.xlu1 %530  ;;  %v509_v15 = vpop.xlane.xlu0 %508 }
 0x19b   :  { %1028 = vrsqrt.f32 %v580_v9  ;;  %v574_v16 = vmax.f32 %v566_v11, 0.0  ;;  %v551_v17 = vmul.f32 0.0078125, %v531_v14  ;;  %v1264_v18 = vmul.f32 0.0078125, %v509_v15  ;;  %v615_v14 = vld [vmem:[%s1353_s3 + $0x18] sm:$0xff] }
 0x19d   :  { %v582_v19 = vadd.f32 1e-05, %v574_v16  ;;  %v567_v20 = vsub.f32 %v551_v17, %v559_v12  ;;  %v560_v21 = vmul.f32 %v1264_v18, %v1264_v18 }
 0x19e   :  { %v511_v22 = vpop.xlane.xlu1 %510  ;;  %v533_v23 = vpop.xlane.xlu0 %532 }
 0x19f   :  { %v575_v24 = vmax.f32 %v567_v20, 0.0  ;;  %v1268_v25 = vmul.f32 0.0078125, %v511_v22  ;;  %v552_v27 = vmul.f32 0.0078125, %v533_v23  ;;  %1030 = vrsqrt.f32 %v582_v19  ;;  %v601_v22 = vld [vmem:[%s1352_s2 + $0x28] sm:$0xff] }
 0x1a1   :  { %v583_v30 = vadd.f32 1e-05, %v575_v24  ;;  %v561_v31 = vmul.f32 %v1268_v25, %v1268_v25  ;;  %v568_v32 = vsub.f32 %v552_v27, %v560_v21  ;;  %v614_v21 = vld [vmem:[%s1353_s3 + $0x10] sm:$0xff] }
 0x1a2   :  { %v535_v33 = vpop.xlane.xlu1 %534  ;;  %v513_v34 = vpop.xlane.xlu0 %512 }
 0x1a3   :  { %v1027_v35 = vpop.eup %1026  ;;  %1032 = vrsqrt.f32 %v583_v30  ;;  %v553_v36 = vmul.f32 0.0078125, %v535_v33  ;;  %v576_v39 = vmax.f32 %v568_v32, 0.0  ;;  %v1278_v42 = vmul.f32 0.0078125, %v513_v34  ;;  %v600_v30 = vld [vmem:[%s1352_s2 + $0x20] sm:$0xff]  ;;  %v603_v34 = vld [vmem:[%s1352_s2 + $0x38] sm:$0xff] }
 0x1a4   :  { %v605_v38 = vmul.f32 %v1027_v35, %v597_v28 }
 0x1a5   :  { %v1029_v40 = vpop.eup %1028  ;;  %v569_v41 = vsub.f32 %v553_v36, %v561_v31  ;;  %v584_v55 = vadd.f32 1e-05, %v576_v39 }
 0x1a6   :  { %v621_v44 = vmul.f32 %v605_v38, %v541_v53  ;;  %v515_v46 = vpop.xlane.xlu1 %514  ;;  %643 = vperm.xlu1 %969, %v605_v38   ;;  %v537_v47 = vpop.xlane.xlu0 %536  ;;  %v604_v48 = vmul.f32 %v1029_v40, %v596_v37  ;;  %v562_v53 = vmul.f32 %v1278_v42, %v1278_v42  ;;  %v619_v38 = vld [vmem:[%s1353_s3 + $0x38] sm:$0xff] }
 0x1a7   :  { %v577_v49 = vmax.f32 %v569_v41, 0.0  ;;  %v547_v50 = vmul.f32 0.0078125, %v515_v46  ;;  %v554_v60 = vmul.f32 0.0078125, %v537_v47  ;;  %v602_v46 = vld [vmem:[%s1352_s2 + $0x30] sm:$0xff] }
 0x1a8   :  { %638 = vperm.xlu0 %968, %v604_v48   ;;  %v620_v56 = vmul.f32 %v604_v48, %v1252_v52  ;;  %v629_v0 = vsub.f32 %v613_v51, %v621_v44  ;;  %v599_v52 = vld [vmem:[%s1352_s2 + $0x18] sm:$0xff]  ;;  %v618_v48 = vld [vmem:[%s1353_s3 + $0x30] sm:$0xff] }
 0x1a9   :  { %v585_v57 = vadd.f32 1e-05, %v577_v49  ;;  %v563_v58 = vmul.f32 %v547_v50, %v547_v50  ;;  %v1031_v2 = vpop.eup %1030  ;;  %v570_v6 = vsub.f32 %v554_v60, %v562_v53 }
 0x1aa   :  { %v539_v63 = vpop.xlane.xlu1 %538  ;;  %v628_v1 = vsub.f32 %v612_v54, %v620_v56  ;;  %v606_v9 = vmul.f32 %v1031_v2, %v598_v4 }
 0x1ab   :  { %1034 = vrsqrt.f32 %v585_v57  ;;  %v555_v3 = vmul.f32 0.0078125, %v539_v63  ;;  %v578_v16 = vmax.f32 %v570_v6, 0.0 }
 0x1ac   :  { %691 = vperm.xlu0 %968, %v629_v0   ;;  %686 = vperm.xlu1 %969, %v628_v1   ;;  %1036 = vrsqrt.f32 %v584_v55  ;;  %v622_v20 = vmul.f32 %v606_v9, %v1256_v62  ;;  %v617_v62 = vld [vmem:[%s1353_s3 + $0x28] sm:$0xff] }
 0x1ad   :  { %v1033_v5 = vpop.eup %1032  ;;  %v571_v8 = vsub.f32 %v555_v3, %v563_v58  ;;  %v586_v24 = vadd.f32 1e-05, %v578_v16 }
 0x1ae   :  { %v607_v11 = vmul.f32 %v1033_v5, %v599_v52  ;;  %v630_v27 = vsub.f32 %v614_v21, %v622_v20 }
 0x1af   :  { %v579_v12 = vmax.f32 %v571_v8, 0.0 }
 0x1b0   :  { %648 = vperm.xlu1 %969, %v606_v9   ;;  %v623_v15 = vmul.f32 %v607_v11, %v1260_v7 }
 0x1b1   :  { %v587_v17 = vadd.f32 1e-05, %v579_v12 }
 0x1b2   :  { %v631_v19 = vsub.f32 %v615_v14, %v623_v15 }
 0x1b3   :  { %1038 = vrsqrt.f32 %v587_v17 }
 0x1b4   :  { %701 = vperm.xlu0 %968, %v631_v19   ;;  %653 = vperm.xlu1 %969, %v607_v11   ;;  %1040 = vrsqrt.f32 %v586_v24 }
 0x1b5   :  { %v1035_v23 = vpop.eup %1034 }
 0x1b6   :  { %v609_v7 = vmul.f32 %v1035_v23, %v601_v22  ;;  %v1037_v28 = vpop.eup %1036 }
 0x1b7   :  { %v608_v33 = vmul.f32 %v1037_v28, %v600_v30 }
 0x1b8   :  { %696 = vperm.xlu1 %969, %v630_v27   ;;  %v625_v31 = vmul.f32 %v609_v7, %v1268_v25  ;;  %v616_v25 = vld [vmem:[%s1353_s3 + $0x20] sm:$0xff] }
 0x1b9   :  { %v624_v37 = vmul.f32 %v608_v33, %v1264_v18 }
 0x1ba   :  { %v633_v32 = vsub.f32 %v617_v62, %v625_v31 }
 0x1bb   :  { %v632_v41 = vsub.f32 %v616_v25, %v624_v37 }
 0x1bc   :  { %711 = vperm.xlu0 %968, %v633_v32   ;;  %658 = vperm.xlu1 %969, %v608_v33  }
 0x1bd   :  { %v1039_v35 = vpop.eup %1038 }
 0x1be   :  { %v611_v36 = vmul.f32 %v1039_v35, %v603_v34  ;;  %v1041_v44 = vpop.eup %1040 }
 0x1bf   :  { %v610_v18 = vmul.f32 %v1041_v44, %v602_v46 }
 0x1c0   :  { %663 = vperm.xlu1 %969, %v609_v7   ;;  %v627_v39 = vmul.f32 %v611_v36, %v547_v50 }
 0x1c1   :  { %v626_v47 = vmul.f32 %v610_v18, %v1278_v42 }
 0x1c2   :  { %v635_v40 = vsub.f32 %v619_v38, %v627_v39 }
 0x1c3   :  { %v634_v49 = vsub.f32 %v618_v48, %v626_v47 }
 0x1c4   :  { %721 = vperm.xlu0 %968, %v635_v40   ;;  %706 = vperm.xlu1 %969, %v632_v41  }
 0x1c8   :  { %668 = vperm.xlu1 %969, %v610_v18  }
 0x1cc   :  { %673 = vperm.xlu1 %969, %v611_v36  }
 0x1d0   :  { %716 = vperm.xlu1 %969, %v634_v49  }
 0x225   :  { %v644_v50 = vpop.permute.xlu1 %643 }
 0x226   :  { %v677_v54 = vmul.f32 %v644_v50, %v1214_v61 }
 0x227   :  { %v639_v51 = vpop.permute.xlu0 %638 }
 0x228   :  { %v676_v55 = vmul.f32 %v639_v51, %v1212_v59 }
 0x22b   :  { %v687_v56 = vpop.permute.xlu1 %686  ;;  %v692_v57 = vpop.permute.xlu0 %691 }
 0x22c   :  { %v724_v53 = vadd.f32 %v687_v56, %v676_v55  ;;  %v725_v58 = vadd.f32 %v692_v57, %v677_v54 }
 0x22e   :  { %vm732_vm0 = vcmp.gt.f32.partialorder %v724_v53, 0.0  ;;  %v740_v60 = vmul.f32 0.2, %v724_v53  ;;  %vm733_vm1 = vcmp.gt.f32.partialorder %v725_v58, 0.0  ;;  %v741_v42 = vmul.f32 0.2, %v725_v58 }
 0x22f   :  { %v649_v63 = vpop.permute.xlu1 %648 }
 0x230   :  { %v748_v0 = vsel %vm732_vm0, %v724_v53, %v740_v60  ;;  %v749_v1 = vsel %vm733_vm1, %v725_v58, %v741_v42  ;;  %v678_v4 = vmul.f32 %v649_v63, %v1220_v10 }
 0x231   :  { %v867_v2 = vpack.c.bf16 %v749_v1, %v748_v0 }
 0x233   :  { %868 = vst [vmem:[%s1354_s4] sm:$0xff] %v867_v2   ;;  %v654_v3 = vpop.permute.xlu1 %653  ;;  %v702_v59 = vpop.permute.xlu0 %701 }
 0x234   :  { %v679_v61 = vmul.f32 %v654_v3, %v1224_v13 }
 0x236   :  { %v727_v52 = vadd.f32 %v702_v59, %v679_v61 }
 0x237   :  { %v697_v5 = vpop.permute.xlu1 %696 }
 0x238   :  { %v743_v6 = vmul.f32 0.2, %v727_v52  ;;  %v726_v8 = vadd.f32 %v697_v5, %v678_v4  ;;  %vm735_vm2 = vcmp.gt.f32.partialorder %v727_v52, 0.0 }
 0x23a   :  { %vm734_vm3 = vcmp.gt.f32.partialorder %v726_v8, 0.0  ;;  %v742_v9 = vmul.f32 0.2, %v726_v8  ;;  %v751_v12 = vsel %vm735_vm2, %v727_v52, %v743_v6 }
 0x23b   :  { %v659_v11 = vpop.permute.xlu1 %658  ;;  %v712_v17 = vpop.permute.xlu0 %711 }
 0x23c   :  { %v750_v14 = vsel %vm734_vm3, %v726_v8, %v742_v9  ;;  %v680_v10 = vmul.f32 %v659_v11, %v1230_v26 }
 0x23d   :  { %v872_v15 = vpack.c.bf16 %v751_v12, %v750_v14 }
 0x23f   :  { %884 = vst [vmem:[%s1354_s4 + $0x8] sm:$0xff] %v872_v15   ;;  %v664_v16 = vpop.permute.xlu1 %663 }
 0x240   :  { %v681_v13 = vmul.f32 %v664_v16, %v1234_v29 }
 0x242   :  { %v729_v19 = vadd.f32 %v712_v17, %v681_v13 }
 0x243   :  { %v707_v20 = vpop.permute.xlu1 %706  ;;  %v722_v30 = vpop.permute.xlu0 %721 }
 0x244   :  { %v745_v21 = vmul.f32 0.2, %v729_v19  ;;  %v728_v22 = vadd.f32 %v707_v20, %v680_v10  ;;  %vm737_vm4 = vcmp.gt.f32.partialorder %v729_v19, 0.0 }
 0x246   :  { %vm736_vm5 = vcmp.gt.f32.partialorder %v728_v22, 0.0  ;;  %v744_v23 = vmul.f32 0.2, %v728_v22  ;;  %v753_v7 = vsel %vm737_vm4, %v729_v19, %v745_v21 }
 0x247   :  { %v669_v24 = vpop.permute.xlu1 %668 }
 0x248   :  { %v752_v27 = vsel %vm736_vm5, %v728_v22, %v744_v23  ;;  %v682_v26 = vmul.f32 %v669_v24, %v1242_v43 }
 0x249   :  { %v877_v28 = vpack.c.bf16 %v753_v7, %v752_v27 }
 0x24b   :  { %885 = vst [vmem:[%s1354_s4 + $0x10] sm:$0xff] %v877_v28   ;;  %v674_v62 = vpop.permute.xlu1 %673 }
 0x24c   :  { %v683_v29 = vmul.f32 %v674_v62, %v1244_v45 }
 0x24e   :  { %v731_v31 = vadd.f32 %v722_v30, %v683_v29 }
 0x24f   :  { %v717_v32 = vpop.permute.xlu1 %716 }
 0x250   :  { %v747_v33 = vmul.f32 0.2, %v731_v31  ;;  %v730_v34 = vadd.f32 %v717_v32, %v682_v26  ;;  %vm739_vm6 = vcmp.gt.f32.partialorder %v731_v31, 0.0 }
 0x252   :  { %vm738_vm7 = vcmp.gt.f32.partialorder %v730_v34, 0.0  ;;  %v746_v35 = vmul.f32 0.2, %v730_v34  ;;  %v755_v37 = vsel %vm739_vm6, %v731_v31, %v747_v33 }
 0x254   :  { %v754_v36 = vsel %vm738_vm7, %v730_v34, %v746_v35 }
 0x255   :  { %v882_v38 = vpack.c.bf16 %v755_v37, %v754_v36 }
 0x257   :  { %886 = vst [vmem:[%s1354_s4 + $0x18] sm:$0xff] %v882_v38  }

// kernel: _lambda_.7
= control target key start
LH: loop header
LB: loop body
LE: loop exit
PB: predicated region body
PF: predicated region fallthrough
CT: control target
= control target key end

     0   :  { %s3448_s0 = inlined_call_operand.vmem [shape: bf16[1024,32], index: 0, kind: input, shape index: {}]   ;;  %s3449_s1 = inlined_call_operand.vmem [shape: bf16[128,1024], index: 1, kind: input, shape index: {}]   ;;  %s3450_s2 = inlined_call_operand.vmem [shape: f32[128,1], index: 2, kind: input, shape index: {}]   ;;  %s3451_s3 = inlined_call_operand.vmem [shape: f32[128,1], index: 3, kind: input, shape index: {}]   ;;  %s3452_s4 = inlined_call_operand.vmem [shape: f32[128,32], index: 4, kind: input, shape index: {}]   ;;  %s3453_s5 = inlined_call_operand.vmem [shape: f32[32,2], index: 5, kind: input, shape index: {}]   ;;  %s3454_s6 = inlined_call_operand.hbm [shape: f32[1,2], index: 6, kind: output, shape index: {}]  }
   0x1   :  { %v2437_v0 = vld [vmem:[%s3448_s0 + $0x40] sm:$0xff]   ;;  %v2441_v4 = vld [vmem:[%s3448_s0 + $0x48] sm:$0xff]   ;;  %v2445_v8 = vld [vmem:[%s3448_s0 + $0x50] sm:$0xff]  }
   0x2   :  { %v2438_v1 = vld [vmem:[%s3448_s0 + $0xc0] sm:$0xff]   ;;  %2152 = vmatprep.subr.bf16.mxu0 %v2437_v0  ;;  %v2442_v5 = vld [vmem:[%s3448_s0 + $0xc8] sm:$0xff]   ;;  %v2446_v9 = vld [vmem:[%s3448_s0 + $0xd0] sm:$0xff]  }
   0x3   :  { %v2439_v2 = vld [vmem:[%s3448_s0] sm:$0xff]   ;;  %2216 = vmatprep.subr.bf16.mxu1 %v2438_v1  ;;  %v2443_v6 = vld [vmem:[%s3448_s0 + $0x8] sm:$0xff]   ;;  %v2447_v10 = vld [vmem:[%s3448_s0 + $0x10] sm:$0xff]  }
   0x4   :  { %v2440_v3 = vld [vmem:[%s3448_s0 + $0x80] sm:$0xff]   ;;  %2153 = vmatpush3.bf16.msra.mxu0 %v2439_v2  ;;  %v2444_v7 = vld [vmem:[%s3448_s0 + $0x88] sm:$0xff]   ;;  %v2448_v11 = vld [vmem:[%s3448_s0 + $0x90] sm:$0xff]  }
   0x5   :  { %2217 = vmatpush3.bf16.msra.mxu1 %v2440_v3  ;;  %2154 = vmatprep.subr.bf16.mxu0 %v2441_v4  ;;  %v2449_v12 = vld [vmem:[%s3448_s0 + $0x58] sm:$0xff]   ;;  %v2453_v16 = vld [vmem:[%s3448_s0 + $0x60] sm:$0xff]   ;;  %v2457_v20 = vld [vmem:[%s3448_s0 + $0x68] sm:$0xff]  }
   0x6   :  { %2218 = vmatprep.subr.bf16.mxu1 %v2442_v5  ;;  %v2450_v13 = vld [vmem:[%s3448_s0 + $0xd8] sm:$0xff]   ;;  %v2454_v17 = vld [vmem:[%s3448_s0 + $0xe0] sm:$0xff]   ;;  %v2458_v21 = vld [vmem:[%s3448_s0 + $0xe8] sm:$0xff]  }
   0x7   :  { %v2451_v14 = vld [vmem:[%s3448_s0 + $0x18] sm:$0xff]   ;;  %v2455_v18 = vld [vmem:[%s3448_s0 + $0x20] sm:$0xff]   ;;  %v2459_v22 = vld [vmem:[%s3448_s0 + $0x28] sm:$0xff]  }
   0x8   :  { %2155 = vmatpush3.bf16.msra.mxu0 %v2443_v6  ;;  %v2452_v15 = vld [vmem:[%s3448_s0 + $0x98] sm:$0xff]   ;;  %v2456_v19 = vld [vmem:[%s3448_s0 + $0xa0] sm:$0xff]   ;;  %v2460_v23 = vld [vmem:[%s3448_s0 + $0xa8] sm:$0xff]  }
   0x9   :  { %2219 = vmatpush3.bf16.msra.mxu1 %v2444_v7  ;;  %2156 = vmatprep.subr.bf16.mxu0 %v2445_v8  ;;  %v2461_v24 = vld [vmem:[%s3448_s0 + $0x70] sm:$0xff]   ;;  %v2465_v28 = vld [vmem:[%s3448_s0 + $0x78] sm:$0xff]   ;;  %v25_v32 = vld [vmem:[%s3449_s1] sm:$0xff] }
   0xa   :  { %2220 = vmatprep.subr.bf16.mxu1 %v2446_v9  ;;  %v2462_v25 = vld [vmem:[%s3448_s0 + $0xf0] sm:$0xff]   ;;  %v2466_v29 = vld [vmem:[%s3448_s0 + $0xf8] sm:$0xff]   ;;  %v29_v33 = vld [vmem:[%s3449_s1 + $0x20] sm:$0xff] }
   0xb   :  { %v2463_v26 = vld [vmem:[%s3448_s0 + $0x30] sm:$0xff]   ;;  %v2467_v30 = vld [vmem:[%s3448_s0 + $0x38] sm:$0xff]   ;;  %v26_v34 = vld [vmem:[%s3449_s1 + $0x8] sm:$0xff]  ;;  %v2022_v35 = vcombine.low %v25_v32, %v29_v33  ;;  %v2023_v36 = vcombine.high %v25_v32, %v29_v33 }
   0xc   :  { %2157 = vmatpush3.bf16.msra.mxu0 %v2447_v10  ;;  %v2464_v27 = vld [vmem:[%s3448_s0 + $0xb0] sm:$0xff]   ;;  %v2468_v31 = vld [vmem:[%s3448_s0 + $0xb8] sm:$0xff]   ;;  %v30_v37 = vld [vmem:[%s3449_s1 + $0x28] sm:$0xff] }
   0xd   :  { %2221 = vmatpush3.bf16.msra.mxu1 %v2448_v11  ;;  %2158 = vmatprep.subr.bf16.mxu0 %v2449_v12  ;;  %v2024_v38 = vcombine.low %v26_v34, %v30_v37  ;;  %v2025_v39 = vcombine.high %v26_v34, %v30_v37  ;;  %v2469_v40 = vld [vmem:[%s3448_s0 + $0x140] sm:$0xff]   ;;  %v34_v47 = vld [vmem:[%s3449_s1 + $0x48] sm:$0xff]  ;;  %v2477_v62 = vld [vmem:[%s3448_s0 + $0x150] sm:$0xff]  }
   0xe   :  { %2222 = vmatprep.subr.bf16.mxu1 %v2450_v13  ;;  %953 = vmatprep.mubr.bf16.mxu0 %v2023_v36  ;;  %v2470_v41 = vld [vmem:[%s3448_s0 + $0x100] sm:$0xff]   ;;  %v38_v48 = vld [vmem:[%s3449_s1 + $0x68] sm:$0xff]  ;;  %v2478_v63 = vld [vmem:[%s3448_s0 + $0x110] sm:$0xff]  }
   0xf   :  { %1050 = vmatprep.mubr.bf16.mxu1 %v2025_v39  ;;  %v2471_v42 = vld [vmem:[%s3448_s0 + $0x1c0] sm:$0xff]   ;;  %v2033_v49 = vcombine.high %v34_v47, %v38_v48  ;;  %v2473_v50 = vld [vmem:[%s3448_s0 + $0x148] sm:$0xff]   ;;  %v2032_v53 = vcombine.low %v34_v47, %v38_v48  ;;  %v2479_v0 = vld [vmem:[%s3448_s0 + $0x1d0] sm:$0xff]  }
  0x10   :  { %2159 = vmatpush3.bf16.msra.mxu0 %v2451_v14  ;;  %v2472_v43 = vld [vmem:[%s3448_s0 + $0x180] sm:$0xff]   ;;  %v2474_v52 = vld [vmem:[%s3448_s0 + $0x108] sm:$0xff]   ;;  %v2480_v1 = vld [vmem:[%s3448_s0 + $0x190] sm:$0xff]  }
  0x11   :  { %2223 = vmatpush3.bf16.msra.mxu1 %v2452_v15  ;;  %2160 = vmatprep.subr.bf16.mxu0 %v2453_v16  ;;  %v33_v44 = vld [vmem:[%s3449_s1 + $0x40] sm:$0xff]  ;;  %v2475_v54 = vld [vmem:[%s3448_s0 + $0x1c8] sm:$0xff]   ;;  %v2481_v10 = vld [vmem:[%s3448_s0 + $0x158] sm:$0xff]  }
  0x12   :  { %2224 = vmatprep.subr.bf16.mxu1 %v2454_v17  ;;  %v37_v45 = vld [vmem:[%s3449_s1 + $0x60] sm:$0xff]  ;;  %v2476_v55 = vld [vmem:[%s3448_s0 + $0x188] sm:$0xff]   ;;  %v2482_v11 = vld [vmem:[%s3448_s0 + $0x118] sm:$0xff]  }
  0x13   :  { %v2031_v46 = vcombine.high %v33_v44, %v37_v45  ;;  %v2030_v51 = vcombine.low %v33_v44, %v37_v45  ;;  %v41_v56 = vld [vmem:[%s3449_s1 + $0x80] sm:$0xff]  ;;  %v42_v58 = vld [vmem:[%s3449_s1 + $0x88] sm:$0xff]  ;;  %v2483_v12 = vld [vmem:[%s3448_s0 + $0x1d8] sm:$0xff]  }
  0x14   :  { %2161 = vmatpush3.bf16.msra.mxu0 %v2455_v18  ;;  %v45_v57 = vld [vmem:[%s3449_s1 + $0xa0] sm:$0xff]  ;;  %v46_v59 = vld [vmem:[%s3449_s1 + $0xa8] sm:$0xff]  ;;  %v2484_v13 = vld [vmem:[%s3448_s0 + $0x198] sm:$0xff]  }
  0x15   :  { %2225 = vmatpush3.bf16.msra.mxu1 %v2456_v19  ;;  %2162 = vmatprep.subr.bf16.mxu0 %v2457_v20  ;;  %v2039_v60 = vcombine.high %v41_v56, %v45_v57  ;;  %v2041_v61 = vcombine.high %v42_v58, %v46_v59  ;;  %v2038_v2 = vcombine.low %v41_v56, %v45_v57  ;;  %v49_v3 = vld [vmem:[%s3449_s1 + $0xc0] sm:$0xff]  ;;  %v50_v5 = vld [vmem:[%s3449_s1 + $0xc8] sm:$0xff]  ;;  %v2494_v39 = vld [vmem:[%s3448_s0 + $0x130] sm:$0xff]  }
  0x16   :  { %2226 = vmatprep.subr.bf16.mxu1 %v2458_v21  ;;  %v53_v4 = vld [vmem:[%s3449_s1 + $0xe0] sm:$0xff]  ;;  %v2040_v6 = vcombine.low %v42_v58, %v46_v59  ;;  %v54_v8 = vld [vmem:[%s3449_s1 + $0xe8] sm:$0xff]  ;;  %v2498_v48 = vld [vmem:[%s3448_s0 + $0x138] sm:$0xff]  }
  0x17   :  { %v2047_v7 = vcombine.high %v49_v3, %v53_v4  ;;  %v2049_v9 = vcombine.high %v50_v5, %v54_v8  ;;  %v57_v14 = vld [vmem:[%s3449_s1 + $0x100] sm:$0xff]  ;;  %v58_v16 = vld [vmem:[%s3449_s1 + $0x108] sm:$0xff]  ;;  %v2046_v19 = vcombine.low %v49_v3, %v53_v4  ;;  %v2048_v21 = vcombine.low %v50_v5, %v54_v8 }
  0x18   :  { %2163 = vmatpush3.bf16.msra.mxu0 %v2459_v22  ;;  %v61_v15 = vld [vmem:[%s3449_s1 + $0x120] sm:$0xff]  ;;  %v62_v17 = vld [vmem:[%s3449_s1 + $0x128] sm:$0xff] }
  0x19   :  { %2227 = vmatpush3.bf16.msra.mxu1 %v2460_v23  ;;  %2164 = vmatprep.subr.bf16.mxu0 %v2461_v24  ;;  %v2485_v18 = vld [vmem:[%s3448_s0 + $0x160] sm:$0xff]   ;;  %v2055_v22 = vcombine.high %v57_v14, %v61_v15  ;;  %v2057_v24 = vcombine.high %v58_v16, %v62_v17  ;;  %v2491_v32 = vld [vmem:[%s3448_s0 + $0x1e8] sm:$0xff]   ;;  %v2054_v34 = vcombine.low %v57_v14, %v61_v15 }
  0x1a   :  { %2228 = vmatprep.subr.bf16.mxu1 %v2462_v25  ;;  %v2486_v20 = vld [vmem:[%s3448_s0 + $0x120] sm:$0xff]   ;;  %v2492_v33 = vld [vmem:[%s3448_s0 + $0x1a8] sm:$0xff]  }
  0x1b   :  { %v2487_v23 = vld [vmem:[%s3448_s0 + $0x1e0] sm:$0xff]   ;;  %v74_v44 = vld [vmem:[%s3449_s1 + $0x188] sm:$0xff] }
  0x1c   :  { %2165 = vmatpush3.bf16.msra.mxu0 %v2463_v26  ;;  %v2488_v25 = vld [vmem:[%s3448_s0 + $0x1a0] sm:$0xff]   ;;  %v78_v45 = vld [vmem:[%s3449_s1 + $0x1a8] sm:$0xff] }
  0x1d   :  { %2229 = vmatpush3.bf16.msra.mxu1 %v2464_v27  ;;  %2166 = vmatprep.subr.bf16.mxu0 %v2465_v28  ;;  %v65_v26 = vld [vmem:[%s3449_s1 + $0x140] sm:$0xff]  ;;  %v2489_v28 = vld [vmem:[%s3448_s0 + $0x168] sm:$0xff]   ;;  %v2072_v59 = vcombine.low %v74_v44, %v78_v45 }
  0x1e   :  { %2230 = vmatprep.subr.bf16.mxu1 %v2466_v29  ;;  %v69_v27 = vld [vmem:[%s3449_s1 + $0x160] sm:$0xff]  ;;  %v66_v29 = vld [vmem:[%s3449_s1 + $0x148] sm:$0xff] }
  0x1f   :  { %v2063_v36 = vcombine.high %v65_v26, %v69_v27  ;;  %v2062_v47 = vcombine.low %v65_v26, %v69_v27  ;;  %v82_v56 = vld [vmem:[%s3449_s1 + $0x1c8] sm:$0xff] }
  0x20   :  { %2167 = vmatpush3.bf16.msra.mxu0 %v2467_v30  ;;  %v70_v30 = vld [vmem:[%s3449_s1 + $0x168] sm:$0xff] }
  0x21   :  { %2231 = vmatpush3.bf16.msra.mxu1 %v2468_v31  ;;  %2280 = vmatprep.subr.bf16.mxu0 %v2469_v40  ;;  %v2490_v31 = vld [vmem:[%s3448_s0 + $0x128] sm:$0xff]   ;;  %v2065_v37 = vcombine.high %v66_v29, %v70_v30  ;;  %v2495_v40 = vld [vmem:[%s3448_s0 + $0x1f0] sm:$0xff]  }
  0x22   :  { %2344 = vmatprep.subr.bf16.mxu1 %v2471_v42  ;;  %v77_v42 = vld [vmem:[%s3449_s1 + $0x1a0] sm:$0xff]  ;;  %v86_v57 = vld [vmem:[%s3449_s1 + $0x1e8] sm:$0xff] }
  0x23   :  { %954 = vmatmul.mubr.bf16.vlgmr.msra.gmra.mrb[0].mxu0 %v2022_v35  ;;  %v2056_v35 = vcombine.low %v58_v16, %v62_v17 }
  0x24   :  { %1051 = vmatmul.mubr.bf16.vlgmr.msra.gmra.mrb[0].mxu1 %v2024_v38  ;;  %2281 = vmatpush3.bf16.msra.mxu0 %v2470_v41  ;;  %v2493_v38 = vld [vmem:[%s3448_s0 + $0x170] sm:$0xff]   ;;  %v73_v41 = vld [vmem:[%s3449_s1 + $0x180] sm:$0xff] }
  0x25   :  { %2345 = vmatpush3.bf16.msra.mxu1 %v2472_v43  ;;  %961 = vmatprep.mubr.bf16.mxu0 %v2031_v46  ;;  %v2496_v43 = vld [vmem:[%s3448_s0 + $0x1b0] sm:$0xff]   ;;  %v2497_v46 = vld [vmem:[%s3448_s0 + $0x178] sm:$0xff]   ;;  %v2070_v58 = vcombine.low %v73_v41, %v77_v42 }
  0x26   :  { %1058 = vmatprep.mubr.bf16.mxu1 %v2033_v49  ;;  %2282 = vmatprep.subr.bf16.mxu0 %v2473_v50  ;;  %v2064_v49 = vcombine.low %v66_v29, %v70_v30  ;;  %v2071_v50 = vcombine.high %v73_v41, %v77_v42 }
  0x27   :  { %2346 = vmatprep.subr.bf16.mxu1 %v2475_v54  ;;  %v81_v54 = vld [vmem:[%s3449_s1 + $0x1c0] sm:$0xff] }
  0x28   :  { %2283 = vmatpush3.bf16.msra.mxu0 %v2474_v52  ;;  %v2073_v52 = vcombine.high %v74_v44, %v78_v45 }
  0x29   :  { %2347 = vmatpush3.bf16.msra.mxu1 %v2476_v55  ;;  %2284 = vmatprep.subr.bf16.mxu0 %v2477_v62  ;;  %v85_v55 = vld [vmem:[%s3449_s1 + $0x1e0] sm:$0xff] }
  0x2a   :  { %2348 = vmatprep.subr.bf16.mxu1 %v2479_v0 }
  0x2b   :  { %962 = vmatmul.mubr.bf16.gmra.mrb[4].mxu0 %v2030_v51  ;;  %v2499_v51 = vld [vmem:[%s3448_s0 + $0x1f8] sm:$0xff]  }
  0x2c   :  { %1059 = vmatmul.mubr.bf16.gmra.mrb[4].mxu1 %v2032_v53  ;;  %969 = vmatprep.mubr.bf16.mxu0 %v2039_v60  ;;  %v2500_v53 = vld [vmem:[%s3448_s0 + $0x1b8] sm:$0xff]   ;;  %v2079_v60 = vcombine.high %v81_v54, %v85_v55 }
  0x2d   :  { %1066 = vmatprep.mubr.bf16.mxu1 %v2041_v61  ;;  %2285 = vmatpush3.bf16.msra.mxu0 %v2478_v63  ;;  %v2081_v61 = vcombine.high %v82_v56, %v86_v57 }
  0x2e   :  { %2349 = vmatpush3.bf16.msra.mxu1 %v2480_v1  ;;  %2286 = vmatprep.subr.bf16.mxu0 %v2481_v10 }
  0x2f   :  { %2350 = vmatprep.subr.bf16.mxu1 %v2483_v12 }
  0x31   :  { %2287 = vmatpush3.bf16.msra.mxu0 %v2482_v11 }
  0x32   :  { %2351 = vmatpush3.bf16.msra.mxu1 %v2484_v13  ;;  %2288 = vmatprep.subr.bf16.mxu0 %v2485_v18 }
  0x33   :  { %970 = vmatmul.mubr.bf16.gmra.mrb[8].mxu0 %v2038_v2  ;;  %2352 = vmatprep.subr.bf16.mxu1 %v2487_v23 }
  0x34   :  { %1067 = vmatmul.mubr.bf16.gmra.mrb[8].mxu1 %v2040_v6  ;;  %977 = vmatprep.mubr.bf16.mxu0 %v2047_v7 }
  0x35   :  { %1074 = vmatprep.mubr.bf16.mxu1 %v2049_v9  ;;  %2289 = vmatpush3.bf16.msra.mxu0 %v2486_v20 }
  0x36   :  { %2353 = vmatpush3.bf16.msra.mxu1 %v2488_v25  ;;  %2290 = vmatprep.subr.bf16.mxu0 %v2489_v28 }
  0x37   :  { %2354 = vmatprep.subr.bf16.mxu1 %v2491_v32 }
  0x39   :  { %2291 = vmatpush3.bf16.msra.mxu0 %v2490_v31 }
  0x3a   :  { %2355 = vmatpush3.bf16.msra.mxu1 %v2492_v33  ;;  %2292 = vmatprep.subr.bf16.mxu0 %v2493_v38 }
  0x3b   :  { %978 = vmatmul.mubr.bf16.gmra.mrb[12].mxu0 %v2046_v19  ;;  %2356 = vmatprep.subr.bf16.mxu1 %v2495_v40 }
  0x3c   :  { %1075 = vmatmul.mubr.bf16.gmra.mrb[12].mxu1 %v2048_v21  ;;  %985 = vmatprep.mubr.bf16.mxu0 %v2055_v22 }
  0x3d   :  { %1082 = vmatprep.mubr.bf16.mxu1 %v2057_v24  ;;  %2293 = vmatpush3.bf16.msra.mxu0 %v2494_v39 }
  0x3e   :  { %2357 = vmatpush3.bf16.msra.mxu1 %v2496_v43  ;;  %2294 = vmatprep.subr.bf16.mxu0 %v2497_v46 }
  0x3f   :  { %2358 = vmatprep.subr.bf16.mxu1 %v2499_v51 }
  0x41   :  { %2295 = vmatpush3.bf16.msra.mxu0 %v2498_v48 }
  0x42   :  { %2359 = vmatpush3.bf16.msra.mxu1 %v2500_v53 }
  0x43   :  { %986 = vmatmul.mubr.bf16.gmra.mrb[16].mxu0 %v2054_v34 }
  0x44   :  { %1083 = vmatmul.mubr.bf16.gmra.mrb[16].mxu1 %v2056_v35  ;;  %993 = vmatprep.mubr.bf16.mxu0 %v2063_v36 }
  0x45   :  { %1090 = vmatprep.mubr.bf16.mxu1 %v2065_v37 }
  0x4b   :  { %994 = vmatmul.mubr.bf16.gmra.mrb[20].mxu0 %v2062_v47 }
  0x4c   :  { %1091 = vmatmul.mubr.bf16.gmra.mrb[20].mxu1 %v2064_v49  ;;  %1001 = vmatprep.mubr.bf16.mxu0 %v2071_v50 }
  0x4d   :  { %1098 = vmatprep.mubr.bf16.mxu1 %v2073_v52 }
  0x53   :  { %1002 = vmatmul.mubr.bf16.gmra.mrb[24].mxu0 %v2070_v58 }
  0x54   :  { %1099 = vmatmul.mubr.bf16.gmra.mrb[24].mxu1 %v2072_v59  ;;  %1009 = vmatprep.mubr.bf16.mxu0 %v2079_v60 }
  0x55   :  { %11 = vsyncpa [#allocation3], 0  ;;  %1106 = vmatprep.mubr.bf16.mxu1 %v2081_v61  ;;  %v27_v62 = vld [vmem:[%s3449_s1 + $0x10] sm:$0xff]  ;;  %v28_v0 = vld [vmem:[%s3449_s1 + $0x18] sm:$0xff]  ;;  %v2078_v2 = vcombine.low %v81_v54, %v85_v55  ;;  %v2080_v3 = vcombine.low %v82_v56, %v86_v57  ;;  %vm1309_vm0 = vcmask 261120   ;;  %vm2563_vm1 = vmmov 0  }
  0x56   :  { %v31_v63 = vld [vmem:[%s3449_s1 + $0x30] sm:$0xff]  ;;  %v32_v1 = vld [vmem:[%s3449_s1 + $0x38] sm:$0xff] }
  0x57   :  { %v2027_v4 = vcombine.high %v27_v62, %v31_v63  ;;  %v2029_v5 = vcombine.high %v28_v0, %v32_v1  ;;  %v35_v6 = vld [vmem:[%s3449_s1 + $0x50] sm:$0xff]  ;;  %v36_v8 = vld [vmem:[%s3449_s1 + $0x58] sm:$0xff]  ;;  %v2026_v10 = vcombine.low %v27_v62, %v31_v63  ;;  %v2028_v11 = vcombine.low %v28_v0, %v32_v1 }
  0x58   :  { %v39_v7 = vld [vmem:[%s3449_s1 + $0x70] sm:$0xff]  ;;  %v40_v9 = vld [vmem:[%s3449_s1 + $0x78] sm:$0xff] }
  0x59   :  { %v2035_v12 = vcombine.high %v35_v6, %v39_v7  ;;  %v2037_v13 = vcombine.high %v36_v8, %v40_v9  ;;  %v43_v14 = vld [vmem:[%s3449_s1 + $0x90] sm:$0xff]  ;;  %v44_v16 = vld [vmem:[%s3449_s1 + $0x98] sm:$0xff]  ;;  %v2034_v18 = vcombine.low %v35_v6, %v39_v7  ;;  %v2036_v19 = vcombine.low %v36_v8, %v40_v9 }
  0x5a   :  { %v47_v15 = vld [vmem:[%s3449_s1 + $0xb0] sm:$0xff]  ;;  %v48_v17 = vld [vmem:[%s3449_s1 + $0xb8] sm:$0xff] }
  0x5b   :  { %1010 = vmatmul.mubr.bf16.gmra.mrb[28].mxu0 %v2078_v2  ;;  %v2043_v20 = vcombine.high %v43_v14, %v47_v15  ;;  %v2045_v21 = vcombine.high %v44_v16, %v48_v17  ;;  %v51_v22 = vld [vmem:[%s3449_s1 + $0xd0] sm:$0xff]  ;;  %v52_v24 = vld [vmem:[%s3449_s1 + $0xd8] sm:$0xff]  ;;  %v2042_v26 = vcombine.low %v43_v14, %v47_v15  ;;  %v2044_v27 = vcombine.low %v44_v16, %v48_v17 }
  0x5c   :  { %1107 = vmatmul.mubr.bf16.gmra.mrb[28].mxu1 %v2080_v3  ;;  %1147 = vmatprep.mubr.bf16.mxu0 %v2027_v4  ;;  %v55_v23 = vld [vmem:[%s3449_s1 + $0xf0] sm:$0xff]  ;;  %v56_v25 = vld [vmem:[%s3449_s1 + $0xf8] sm:$0xff] }
  0x5d   :  { %1244 = vmatprep.mubr.bf16.mxu1 %v2029_v5  ;;  %v2051_v28 = vcombine.high %v51_v22, %v55_v23  ;;  %v2053_v29 = vcombine.high %v52_v24, %v56_v25  ;;  %v59_v30 = vld [vmem:[%s3449_s1 + $0x110] sm:$0xff]  ;;  %v60_v32 = vld [vmem:[%s3449_s1 + $0x118] sm:$0xff]  ;;  %v2050_v34 = vcombine.low %v51_v22, %v55_v23  ;;  %v2052_v35 = vcombine.low %v52_v24, %v56_v25 }
  0x5e   :  { %v63_v31 = vld [vmem:[%s3449_s1 + $0x130] sm:$0xff]  ;;  %v64_v33 = vld [vmem:[%s3449_s1 + $0x138] sm:$0xff] }
  0x5f   :  { %v2059_v36 = vcombine.high %v59_v30, %v63_v31  ;;  %v2061_v37 = vcombine.high %v60_v32, %v64_v33  ;;  %v67_v38 = vld [vmem:[%s3449_s1 + $0x150] sm:$0xff]  ;;  %v68_v40 = vld [vmem:[%s3449_s1 + $0x158] sm:$0xff]  ;;  %v2058_v42 = vcombine.low %v59_v30, %v63_v31  ;;  %v2060_v43 = vcombine.low %v60_v32, %v64_v33 }
  0x60   :  { %v71_v39 = vld [vmem:[%s3449_s1 + $0x170] sm:$0xff]  ;;  %v72_v41 = vld [vmem:[%s3449_s1 + $0x178] sm:$0xff] }
  0x61   :  { %v2067_v44 = vcombine.high %v67_v38, %v71_v39  ;;  %v2069_v45 = vcombine.high %v68_v40, %v72_v41  ;;  %v75_v46 = vld [vmem:[%s3449_s1 + $0x190] sm:$0xff]  ;;  %v76_v48 = vld [vmem:[%s3449_s1 + $0x198] sm:$0xff]  ;;  %v2066_v50 = vcombine.low %v67_v38, %v71_v39  ;;  %v2068_v51 = vcombine.low %v68_v40, %v72_v41 }
  0x62   :  { %v79_v47 = vld [vmem:[%s3449_s1 + $0x1b0] sm:$0xff]  ;;  %v80_v49 = vld [vmem:[%s3449_s1 + $0x1b8] sm:$0xff] }
  0x63   :  { %1148 = vmatmul.mubr.bf16.vlgmr.msra.gmra.mrb[32].mxu0 %v2026_v10  ;;  %v2075_v52 = vcombine.high %v75_v46, %v79_v47  ;;  %v2077_v53 = vcombine.high %v76_v48, %v80_v49  ;;  %v83_v54 = vld [vmem:[%s3449_s1 + $0x1d0] sm:$0xff]  ;;  %v84_v56 = vld [vmem:[%s3449_s1 + $0x1d8] sm:$0xff]  ;;  %v2074_v58 = vcombine.low %v75_v46, %v79_v47  ;;  %v2076_v59 = vcombine.low %v76_v48, %v80_v49 }
  0x64   :  { %1245 = vmatmul.mubr.bf16.vlgmr.msra.gmra.mrb[32].mxu1 %v2028_v11  ;;  %1155 = vmatprep.mubr.bf16.mxu0 %v2035_v12  ;;  %v87_v55 = vld [vmem:[%s3449_s1 + $0x1f0] sm:$0xff]  ;;  %v88_v57 = vld [vmem:[%s3449_s1 + $0x1f8] sm:$0xff] }
  0x65   :  { %1252 = vmatprep.mubr.bf16.mxu1 %v2037_v13  ;;  %v2083_v60 = vcombine.high %v83_v54, %v87_v55  ;;  %v2085_v61 = vcombine.high %v84_v56, %v88_v57  ;;  %v2082_v62 = vcombine.low %v83_v54, %v87_v55  ;;  %v2084_v63 = vcombine.low %v84_v56, %v88_v57 }
  0x6b   :  { %1156 = vmatmul.mubr.bf16.gmra.mrb[36].mxu0 %v2034_v18 }
  0x6c   :  { %1253 = vmatmul.mubr.bf16.gmra.mrb[36].mxu1 %v2036_v19  ;;  %1163 = vmatprep.mubr.bf16.mxu0 %v2043_v20 }
  0x6d   :  { %1260 = vmatprep.mubr.bf16.mxu1 %v2045_v21 }
  0x73   :  { %1164 = vmatmul.mubr.bf16.gmra.mrb[40].mxu0 %v2042_v26 }
  0x74   :  { %1261 = vmatmul.mubr.bf16.gmra.mrb[40].mxu1 %v2044_v27  ;;  %1171 = vmatprep.mubr.bf16.mxu0 %v2051_v28 }
  0x75   :  { %1268 = vmatprep.mubr.bf16.mxu1 %v2053_v29 }
  0x7b   :  { %1172 = vmatmul.mubr.bf16.gmra.mrb[44].mxu0 %v2050_v34 }
  0x7c   :  { %1269 = vmatmul.mubr.bf16.gmra.mrb[44].mxu1 %v2052_v35  ;;  %1179 = vmatprep.mubr.bf16.mxu0 %v2059_v36 }
  0x7d   :  { %1276 = vmatprep.mubr.bf16.mxu1 %v2061_v37 }
  0x83   :  { %1180 = vmatmul.mubr.bf16.gmra.mrb[48].mxu0 %v2058_v42 }
  0x84   :  { %1277 = vmatmul.mubr.bf16.gmra.mrb[48].mxu1 %v2060_v43  ;;  %1187 = vmatprep.mubr.bf16.mxu0 %v2067_v44 }
  0x85   :  { %1284 = vmatprep.mubr.bf16.mxu1 %v2069_v45 }
  0x8b   :  { %1188 = vmatmul.mubr.bf16.gmra.mrb[52].mxu0 %v2066_v50 }
  0x8c   :  { %1285 = vmatmul.mubr.bf16.gmra.mrb[52].mxu1 %v2068_v51  ;;  %1195 = vmatprep.mubr.bf16.mxu0 %v2075_v52 }
  0x8d   :  { %1292 = vmatprep.mubr.bf16.mxu1 %v2077_v53 }
  0x93   :  { %1196 = vmatmul.mubr.bf16.gmra.mrb[56].mxu0 %v2074_v58 }
  0x94   :  { %1293 = vmatmul.mubr.bf16.gmra.mrb[56].mxu1 %v2076_v59  ;;  %1203 = vmatprep.mubr.bf16.mxu0 %v2083_v60 }
  0x95   :  { %1300 = vmatprep.mubr.bf16.mxu1 %v2085_v61 }
  0x9b   :  { %1204 = vmatmul.mubr.bf16.gmra.mrb[60].mxu0 %v2082_v62 }
  0x9c   :  { %1301 = vmatmul.mubr.bf16.gmra.mrb[60].mxu1 %v2084_v63 }
  0xf6   :  { %v2168_v0 = vpop.f32.mrb[0].mxu0 }
  0xf7   :  { %v2232_v1 = vpop.f32.mrb[0].mxu1  ;;  %v2169_v2 = vpop.f32.mrb[1].mxu0 }
  0xf8   :  { %v2170_v3 = vadd.f32 %v2169_v2, %v2168_v0  ;;  %v2233_v4 = vpop.f32.mrb[1].mxu1  ;;  %v2171_v5 = vpop.f32.mrb[2].mxu0 }
  0xf9   :  { %v2234_v6 = vadd.f32 %v2233_v4, %v2232_v1  ;;  %v2235_v7 = vpop.f32.mrb[2].mxu1  ;;  %v2172_v8 = vpop.f32.mrb[3].mxu0 }
  0xfa   :  { %v2173_v9 = vadd.f32 %v2172_v8, %v2171_v5  ;;  %v2236_v10 = vpop.f32.mrb[3].mxu1 }
  0xfb   :  { %v2985_v11 = vadd.f32 %v2234_v6, %v2170_v3  ;;  %v2237_v12 = vadd.f32 %v2236_v10, %v2235_v7 }
  0xfd   :  { %v2987_v13 = vadd.f32 %v2237_v12, %v2173_v9 }
  0xfe   :  { %v2174_v14 = vpop.f32.mrb[4].mxu0 }
  0xff   :  { %v2238_v15 = vpop.f32.mrb[4].mxu1  ;;  %v2175_v16 = vpop.f32.mrb[5].mxu0 }
 0x100   :  { %v2176_v17 = vadd.f32 %v2175_v16, %v2174_v14  ;;  %v2239_v18 = vpop.f32.mrb[5].mxu1  ;;  %v2177_v19 = vpop.f32.mrb[6].mxu0 }
 0x101   :  { %v2240_v20 = vadd.f32 %v2239_v18, %v2238_v15  ;;  %v2241_v21 = vpop.f32.mrb[6].mxu1  ;;  %v2178_v22 = vpop.f32.mrb[7].mxu0 }
 0x102   :  { %v2179_v23 = vadd.f32 %v2178_v22, %v2177_v19  ;;  %v2242_v24 = vpop.f32.mrb[7].mxu1 }
 0x103   :  { %v2989_v25 = vadd.f32 %v2240_v20, %v2176_v17  ;;  %v2243_v26 = vadd.f32 %v2242_v24, %v2241_v21 }
 0x105   :  { %v2991_v27 = vadd.f32 %v2243_v26, %v2179_v23 }
 0x106   :  { %v2180_v28 = vpop.f32.mrb[8].mxu0 }
 0x107   :  { %v2244_v29 = vpop.f32.mrb[8].mxu1  ;;  %v2181_v30 = vpop.f32.mrb[9].mxu0 }
 0x108   :  { %v2182_v31 = vadd.f32 %v2181_v30, %v2180_v28  ;;  %v2245_v32 = vpop.f32.mrb[9].mxu1  ;;  %v2183_v33 = vpop.f32.mrb[10].mxu0 }
 0x109   :  { %v2246_v34 = vadd.f32 %v2245_v32, %v2244_v29  ;;  %v2247_v35 = vpop.f32.mrb[10].mxu1  ;;  %v2184_v36 = vpop.f32.mrb[11].mxu0 }
 0x10a   :  { %v2185_v37 = vadd.f32 %v2184_v36, %v2183_v33  ;;  %v2248_v38 = vpop.f32.mrb[11].mxu1 }
 0x10b   :  { %v2993_v39 = vadd.f32 %v2246_v34, %v2182_v31  ;;  %v2249_v40 = vadd.f32 %v2248_v38, %v2247_v35 }
 0x10d   :  { %v2995_v41 = vadd.f32 %v2249_v40, %v2185_v37 }
 0x10e   :  { %v2186_v42 = vpop.f32.mrb[12].mxu0 }
 0x10f   :  { %v2250_v43 = vpop.f32.mrb[12].mxu1  ;;  %v2187_v44 = vpop.f32.mrb[13].mxu0 }
 0x110   :  { %v2188_v45 = vadd.f32 %v2187_v44, %v2186_v42  ;;  %v2251_v46 = vpop.f32.mrb[13].mxu1  ;;  %v2189_v47 = vpop.f32.mrb[14].mxu0 }
 0x111   :  { %v2252_v48 = vadd.f32 %v2251_v46, %v2250_v43  ;;  %v2253_v49 = vpop.f32.mrb[14].mxu1  ;;  %v2190_v50 = vpop.f32.mrb[15].mxu0 }
 0x112   :  { %v2191_v51 = vadd.f32 %v2190_v50, %v2189_v47  ;;  %v2254_v52 = vpop.f32.mrb[15].mxu1 }
 0x113   :  { %v2997_v53 = vadd.f32 %v2252_v48, %v2188_v45  ;;  %v2255_v54 = vadd.f32 %v2254_v52, %v2253_v49 }
 0x115   :  { %v2999_v55 = vadd.f32 %v2255_v54, %v2191_v51 }
 0x116   :  { %v2192_v56 = vpop.f32.mrb[16].mxu0 }
 0x117   :  { %v2256_v57 = vpop.f32.mrb[16].mxu1  ;;  %v2193_v58 = vpop.f32.mrb[17].mxu0 }
 0x118   :  { %v2194_v59 = vadd.f32 %v2193_v58, %v2192_v56  ;;  %v2257_v60 = vpop.f32.mrb[17].mxu1  ;;  %v2195_v61 = vpop.f32.mrb[18].mxu0 }
 0x119   :  { %v2258_v62 = vadd.f32 %v2257_v60, %v2256_v57  ;;  %v2259_v63 = vpop.f32.mrb[18].mxu1  ;;  %v2196_v0 = vpop.f32.mrb[19].mxu0 }
 0x11a   :  { %v2197_v1 = vadd.f32 %v2196_v0, %v2195_v61  ;;  %v2260_v2 = vpop.f32.mrb[19].mxu1 }
 0x11b   :  { %v3001_v3 = vadd.f32 %v2258_v62, %v2194_v59  ;;  %v2261_v4 = vadd.f32 %v2260_v2, %v2259_v63 }
 0x11d   :  { %v3003_v5 = vadd.f32 %v2261_v4, %v2197_v1 }
 0x11e   :  { %v2198_v6 = vpop.f32.mrb[20].mxu0 }
 0x11f   :  { %v2262_v7 = vpop.f32.mrb[20].mxu1  ;;  %v2199_v8 = vpop.f32.mrb[21].mxu0 }
 0x120   :  { %v2200_v9 = vadd.f32 %v2199_v8, %v2198_v6  ;;  %v2263_v10 = vpop.f32.mrb[21].mxu1  ;;  %v2201_v12 = vpop.f32.mrb[22].mxu0 }
 0x121   :  { %v2264_v14 = vadd.f32 %v2263_v10, %v2262_v7  ;;  %v2265_v15 = vpop.f32.mrb[22].mxu1  ;;  %v2202_v16 = vpop.f32.mrb[23].mxu0 }
 0x122   :  { %v2203_v17 = vadd.f32 %v2202_v16, %v2201_v12  ;;  %v2266_v18 = vpop.f32.mrb[23].mxu1 }
 0x123   :  { %v3005_v19 = vadd.f32 %v2264_v14, %v2200_v9  ;;  %v2267_v20 = vadd.f32 %v2266_v18, %v2265_v15 }
 0x125   :  { %v3007_v21 = vadd.f32 %v2267_v20, %v2203_v17 }
 0x126   :  { %v2204_v22 = vpop.f32.mrb[24].mxu0 }
 0x127   :  { %v2268_v23 = vpop.f32.mrb[24].mxu1  ;;  %v2205_v24 = vpop.f32.mrb[25].mxu0 }
 0x128   :  { %v2206_v26 = vadd.f32 %v2205_v24, %v2204_v22  ;;  %v2269_v28 = vpop.f32.mrb[25].mxu1  ;;  %v2207_v29 = vpop.f32.mrb[26].mxu0 }
 0x129   :  { %v2270_v30 = vadd.f32 %v2269_v28, %v2268_v23  ;;  %v2271_v31 = vpop.f32.mrb[26].mxu1  ;;  %v2208_v32 = vpop.f32.mrb[27].mxu0 }
 0x12a   :  { %v2209_v33 = vadd.f32 %v2208_v32, %v2207_v29  ;;  %v2272_v34 = vpop.f32.mrb[27].mxu1 }
 0x12b   :  { %v3009_v35 = vadd.f32 %v2270_v30, %v2206_v26  ;;  %v2273_v36 = vadd.f32 %v2272_v34, %v2271_v31 }
 0x12d   :  { %v3011_v37 = vadd.f32 %v2273_v36, %v2209_v33 }
 0x12e   :  { %v2210_v38 = vpop.f32.mrb[28].mxu0 }
 0x12f   :  { %v2274_v40 = vpop.f32.mrb[28].mxu1  ;;  %v2211_v42 = vpop.f32.mrb[29].mxu0 }
 0x130   :  { %v2212_v43 = vadd.f32 %v2211_v42, %v2210_v38  ;;  %v2275_v44 = vpop.f32.mrb[29].mxu1  ;;  %v2213_v45 = vpop.f32.mrb[30].mxu0 }
 0x131   :  { %v2276_v46 = vadd.f32 %v2275_v44, %v2274_v40  ;;  %v2277_v47 = vpop.f32.mrb[30].mxu1  ;;  %v2214_v48 = vpop.f32.mrb[31].mxu0 }
 0x132   :  { %v2215_v49 = vadd.f32 %v2214_v48, %v2213_v45  ;;  %v2278_v50 = vpop.f32.mrb[31].mxu1 }
 0x133   :  { %v3013_v51 = vadd.f32 %v2276_v46, %v2212_v43  ;;  %v2279_v52 = vadd.f32 %v2278_v50, %v2277_v47 }
 0x135   :  { %v3015_v54 = vadd.f32 %v2279_v52, %v2215_v49 }
 0x136   :  { %v2296_v56 = vpop.f32.mrb[32].mxu0 }
 0x137   :  { %v2360_v57 = vpop.f32.mrb[32].mxu1  ;;  %v2297_v58 = vpop.f32.mrb[33].mxu0 }
 0x138   :  { %v2298_v59 = vadd.f32 %v2297_v58, %v2296_v56  ;;  %v2361_v60 = vpop.f32.mrb[33].mxu1  ;;  %v2299_v61 = vpop.f32.mrb[34].mxu0 }
 0x139   :  { %v2362_v62 = vadd.f32 %v2361_v60, %v2360_v57  ;;  %v2363_v63 = vpop.f32.mrb[34].mxu1  ;;  %v2300_v0 = vpop.f32.mrb[35].mxu0 }
 0x13a   :  { %v1150_v1 = vadd.f32 %v2298_v59, %v2985_v11  ;;  %v2301_v2 = vadd.f32 %v2300_v0, %v2299_v61  ;;  %v2364_v4 = vpop.f32.mrb[35].mxu1 }
 0x13b   :  { %v2365_v6 = vadd.f32 %v2364_v4, %v2363_v63 }
 0x13c   :  { %v3018_v7 = vadd.f32 %v2362_v62, %v1150_v1  ;;  %v1153_v8 = vadd.f32 %v2301_v2, %v2987_v13 }
 0x13e   :  { %v3021_v9 = vadd.f32 %v2365_v6, %v1153_v8  ;;  %v2302_v10 = vpop.f32.mrb[36].mxu0  ;;  %v1310_v12 = vsel %vm1309_vm0, %v3018_v7, 0.0  ;;  %v1358_v14 = vmul.f32 %v3018_v7, %v3018_v7 }
 0x13f   :  { %v2303_v15 = vpop.f32.mrb[37].mxu0  ;;  %1311 = vadd.xlane.f32.xlu0 %v1310_v12  ;;  %v2366_v11 = vpop.f32.mrb[36].mxu1 }
 0x140   :  { %v2304_v16 = vadd.f32 %v2303_v15, %v2302_v10  ;;  %v2305_v17 = vpop.f32.mrb[38].mxu0  ;;  %v2367_v18 = vpop.f32.mrb[37].mxu1  ;;  %v1374_v20 = vsel %vm1309_vm0, %v1358_v14, 0.0  ;;  %v1313_v29 = vsel %vm1309_vm0, %v3021_v9, 0.0  ;;  %v1359_v30 = vmul.f32 %v3021_v9, %v3021_v9 }
 0x141   :  { %v2306_v22 = vpop.f32.mrb[39].mxu0  ;;  %v2368_v23 = vadd.f32 %v2367_v18, %v2366_v11  ;;  %1375 = vadd.xlane.f32.xlu1 %v1374_v20  ;;  %v2369_v13 = vpop.f32.mrb[38].mxu1 }
 0x142   :  { %v1158_v24 = vadd.f32 %v2304_v16, %v2989_v25  ;;  %v2307_v26 = vadd.f32 %v2306_v22, %v2305_v17  ;;  %v2370_v28 = vpop.f32.mrb[39].mxu1  ;;  %v1377_v38 = vsel %vm1309_vm0, %v1359_v30, 0.0 }
 0x143   :  { %v2371_v31 = vadd.f32 %v2370_v28, %v2369_v13  ;;  %1314 = vadd.xlane.f32.xlu0 %v1313_v29 }
 0x144   :  { %v1161_v32 = vadd.f32 %v2307_v26, %v2991_v27  ;;  %v3034_v33 = vadd.f32 %v2368_v23, %v1158_v24 }
 0x146   :  { %v3036_v34 = vadd.f32 %v2371_v31, %v1161_v32  ;;  %v2308_v36 = vpop.f32.mrb[40].mxu0  ;;  %v1316_v25 = vsel %vm1309_vm0, %v3034_v33, 0.0  ;;  %v1360_v40 = vmul.f32 %v3034_v33, %v3034_v33 }
 0x147   :  { %v2309_v42 = vpop.f32.mrb[41].mxu0  ;;  %1317 = vadd.xlane.f32.xlu1 %v1316_v25  ;;  %1378 = vadd.xlane.f32.xlu0 %v1377_v38  ;;  %v2372_v43 = vpop.f32.mrb[40].mxu1 }
 0x148   :  { %v2310_v44 = vadd.f32 %v2309_v42, %v2308_v36  ;;  %v2311_v45 = vpop.f32.mrb[42].mxu0  ;;  %v2373_v27 = vpop.f32.mrb[41].mxu1  ;;  %v1319_v49 = vsel %vm1309_vm0, %v3036_v34, 0.0  ;;  %v1380_v57 = vsel %vm1309_vm0, %v1360_v40, 0.0  ;;  %v1361_v58 = vmul.f32 %v3036_v34, %v3036_v34 }
 0x149   :  { %v2312_v46 = vpop.f32.mrb[43].mxu0  ;;  %v2374_v47 = vadd.f32 %v2373_v27, %v2372_v43  ;;  %v2375_v48 = vpop.f32.mrb[42].mxu1 }
 0x14a   :  { %v1166_v50 = vadd.f32 %v2310_v44, %v2993_v39  ;;  %v2313_v52 = vadd.f32 %v2312_v46, %v2311_v45  ;;  %v2376_v56 = vpop.f32.mrb[43].mxu1  ;;  %v1383_v0 = vsel %vm1309_vm0, %v1361_v58, 0.0 }
 0x14b   :  { %v2377_v59 = vadd.f32 %v2376_v56, %v2375_v48  ;;  %1320 = vadd.xlane.f32.xlu1 %v1319_v49  ;;  %1381 = vadd.xlane.f32.xlu0 %v1380_v57 }
 0x14c   :  { %v1169_v60 = vadd.f32 %v2313_v52, %v2995_v41  ;;  %v3050_v61 = vadd.f32 %v2374_v47, %v1166_v50 }
 0x14e   :  { %v3052_v62 = vadd.f32 %v2377_v59, %v1169_v60  ;;  %v2314_v63 = vpop.f32.mrb[44].mxu0  ;;  %v1322_v39 = vsel %vm1309_vm0, %v3050_v61, 0.0  ;;  %v1362_v1 = vmul.f32 %v3050_v61, %v3050_v61 }
 0x14f   :  { %v2315_v2 = vpop.f32.mrb[45].mxu0  ;;  %1323 = vadd.xlane.f32.xlu1 %v1322_v39  ;;  %1384 = vadd.xlane.f32.xlu0 %v1383_v0  ;;  %v2378_v4 = vpop.f32.mrb[44].mxu1 }
 0x150   :  { %v2316_v6 = vadd.f32 %v2315_v2, %v2314_v63  ;;  %v2317_v8 = vpop.f32.mrb[46].mxu0  ;;  %v2379_v41 = vpop.f32.mrb[45].mxu1  ;;  %v1325_v15 = vsel %vm1309_vm0, %v3052_v62, 0.0  ;;  %v1386_v18 = vsel %vm1309_vm0, %v1362_v1, 0.0  ;;  %v1363_v20 = vmul.f32 %v3052_v62, %v3052_v62 }
 0x151   :  { %v2318_v10 = vpop.f32.mrb[47].mxu0  ;;  %v2380_v12 = vadd.f32 %v2379_v41, %v2378_v4  ;;  %v2381_v14 = vpop.f32.mrb[46].mxu1 }
 0x152   :  { %v1174_v11 = vadd.f32 %v2316_v6, %v2997_v53  ;;  %v2319_v16 = vadd.f32 %v2318_v10, %v2317_v8  ;;  %v2382_v17 = vpop.f32.mrb[47].mxu1  ;;  %v1389_v28 = vsel %vm1309_vm0, %v1363_v20, 0.0 }
 0x153   :  { %v2383_v22 = vadd.f32 %v2382_v17, %v2381_v14  ;;  %1326 = vadd.xlane.f32.xlu1 %v1325_v15  ;;  %1387 = vadd.xlane.f32.xlu0 %v1386_v18 }
 0x154   :  { %v1177_v23 = vadd.f32 %v2319_v16, %v2999_v55  ;;  %v3066_v13 = vadd.f32 %v2380_v12, %v1174_v11  ;;  %v2561_v11 = vmov 0  }
 0x155   :  { %2435 = vset.pattern.permute.xlu0 %v2561_v11  ;;  %2436 = vset.pattern.permute.xlu1 %v2561_v11 }
 0x156   :  { %v3068_v24 = vadd.f32 %v2383_v22, %v1177_v23  ;;  %v2320_v26 = vpop.f32.mrb[48].mxu0  ;;  %v1328_v53 = vsel %vm1309_vm0, %v3066_v13, 0.0  ;;  %v1364_v29 = vmul.f32 %v3066_v13, %v3066_v13 }
 0x157   :  { %v2321_v30 = vpop.f32.mrb[49].mxu0  ;;  %1329 = vadd.xlane.f32.xlu1 %v1328_v53  ;;  %1390 = vadd.xlane.f32.xlu0 %v1389_v28  ;;  %v2384_v31 = vpop.f32.mrb[48].mxu1 }
 0x158   :  { %v2322_v32 = vadd.f32 %v2321_v30, %v2320_v26  ;;  %v2323_v36 = vpop.f32.mrb[50].mxu0  ;;  %v2385_v55 = vpop.f32.mrb[49].mxu1  ;;  %v1331_v42 = vsel %vm1309_vm0, %v3068_v24, 0.0  ;;  %v1392_v27 = vsel %vm1309_vm0, %v1364_v29, 0.0  ;;  %v1365_v46 = vmul.f32 %v3068_v24, %v3068_v24 }
 0x159   :  { %v2324_v25 = vpop.f32.mrb[51].mxu0  ;;  %v2386_v38 = vadd.f32 %v2385_v55, %v2384_v31  ;;  %v2387_v40 = vpop.f32.mrb[50].mxu1 }
 0x15a   :  { %v1182_v43 = vadd.f32 %v2322_v32, %v3001_v3  ;;  %v2325_v44 = vadd.f32 %v2324_v25, %v2323_v36  ;;  %v2388_v45 = vpop.f32.mrb[51].mxu1  ;;  %v1395_v56 = vsel %vm1309_vm0, %v1365_v46, 0.0 }
 0x15b   :  { %v2389_v47 = vadd.f32 %v2388_v45, %v2387_v40  ;;  %1332 = vadd.xlane.f32.xlu1 %v1331_v42  ;;  %1393 = vadd.xlane.f32.xlu0 %v1392_v27 }
 0x15c   :  { %v1185_v48 = vadd.f32 %v2325_v44, %v3003_v5  ;;  %v3082_v49 = vadd.f32 %v2386_v38, %v1182_v43 }
 0x15e   :  { %v3084_v50 = vadd.f32 %v2389_v47, %v1185_v48  ;;  %v2326_v52 = vpop.f32.mrb[52].mxu0  ;;  %v1334_v3 = vsel %vm1309_vm0, %v3082_v49, 0.0  ;;  %v1366_v57 = vmul.f32 %v3082_v49, %v3082_v49 }
 0x15f   :  { %v2327_v58 = vpop.f32.mrb[53].mxu0  ;;  %1335 = vadd.xlane.f32.xlu1 %v1334_v3  ;;  %1396 = vadd.xlane.f32.xlu0 %v1395_v56  ;;  %v2390_v59 = vpop.f32.mrb[52].mxu1 }
 0x160   :  { %v2328_v60 = vadd.f32 %v2327_v58, %v2326_v52  ;;  %v2329_v63 = vpop.f32.mrb[54].mxu0  ;;  %v2391_v5 = vpop.f32.mrb[53].mxu1  ;;  %v1337_v2 = vsel %vm1309_vm0, %v3084_v50, 0.0  ;;  %v1398_v41 = vsel %vm1309_vm0, %v1366_v57, 0.0  ;;  %v1367_v10 = vmul.f32 %v3084_v50, %v3084_v50 }
 0x161   :  { %v2330_v39 = vpop.f32.mrb[55].mxu0  ;;  %v2392_v0 = vadd.f32 %v2391_v5, %v2390_v59  ;;  %v2393_v1 = vpop.f32.mrb[54].mxu1 }
 0x162   :  { %v1190_v4 = vadd.f32 %v2328_v60, %v3005_v19  ;;  %v2331_v6 = vadd.f32 %v2330_v39, %v2329_v63  ;;  %v2394_v8 = vpop.f32.mrb[55].mxu1  ;;  %v1401_v18 = vsel %vm1309_vm0, %v1367_v10, 0.0 }
 0x163   :  { %v2395_v12 = vadd.f32 %v2394_v8, %v2393_v1  ;;  %1338 = vadd.xlane.f32.xlu1 %v1337_v2  ;;  %1399 = vadd.xlane.f32.xlu0 %v1398_v41 }
 0x164   :  { %v1193_v14 = vadd.f32 %v2331_v6, %v3007_v21  ;;  %v3098_v15 = vadd.f32 %v2392_v0, %v1190_v4 }
 0x166   :  { %v3100_v16 = vadd.f32 %v2395_v12, %v1193_v14  ;;  %v2332_v19 = vpop.f32.mrb[56].mxu0  ;;  %v1340_v17 = vsel %vm1309_vm0, %v3098_v15, 0.0  ;;  %v1368_v20 = vmul.f32 %v3098_v15, %v3098_v15 }
 0x167   :  { %v2333_v22 = vpop.f32.mrb[57].mxu0  ;;  %1341 = vadd.xlane.f32.xlu1 %v1340_v17  ;;  %1402 = vadd.xlane.f32.xlu0 %v1401_v18  ;;  %v2396_v21 = vpop.f32.mrb[56].mxu1 }
 0x168   :  { %v2334_v23 = vadd.f32 %v2333_v22, %v2332_v19  ;;  %v2335_v26 = vpop.f32.mrb[58].mxu0  ;;  %v2397_v53 = vpop.f32.mrb[57].mxu1  ;;  %v1343_v31 = vsel %vm1309_vm0, %v3100_v16, 0.0  ;;  %v1404_v25 = vsel %vm1309_vm0, %v1368_v20, 0.0  ;;  %v1369_v38 = vmul.f32 %v3100_v16, %v3100_v16 }
 0x169   :  { %v2336_v28 = vpop.f32.mrb[59].mxu0  ;;  %v2398_v29 = vadd.f32 %v2397_v53, %v2396_v21  ;;  %v2399_v30 = vpop.f32.mrb[58].mxu1 }
 0x16a   :  { %v1198_v32 = vadd.f32 %v2334_v23, %v3009_v35  ;;  %v2337_v36 = vadd.f32 %v2336_v28, %v2335_v26  ;;  %v2400_v55 = vpop.f32.mrb[59].mxu1  ;;  %v1407_v27 = vsel %vm1309_vm0, %v1369_v38, 0.0 }
 0x16b   :  { %v2401_v40 = vadd.f32 %v2400_v55, %v2399_v30  ;;  %1344 = vadd.xlane.f32.xlu1 %v1343_v31  ;;  %1405 = vadd.xlane.f32.xlu0 %v1404_v25 }
 0x16c   :  { %v1201_v42 = vadd.f32 %v2337_v36, %v3011_v37  ;;  %v3114_v43 = vadd.f32 %v2398_v29, %v1198_v32 }
 0x16e   :  { %v3116_v44 = vadd.f32 %v2401_v40, %v1201_v42  ;;  %v2338_v45 = vpop.f32.mrb[60].mxu0  ;;  %v1346_v35 = vsel %vm1309_vm0, %v3114_v43, 0.0  ;;  %v1370_v46 = vmul.f32 %v3114_v43, %v3114_v43 }
 0x16f   :  { %v2339_v47 = vpop.f32.mrb[61].mxu0  ;;  %1347 = vadd.xlane.f32.xlu1 %v1346_v35  ;;  %1408 = vadd.xlane.f32.xlu0 %v1407_v27  ;;  %v2402_v48 = vpop.f32.mrb[60].mxu1 }
 0x170   :  { %v2340_v52 = vadd.f32 %v2339_v47, %v2338_v45  ;;  %v2341_v3 = vpop.f32.mrb[62].mxu0  ;;  %v2403_v37 = vpop.f32.mrb[61].mxu1  ;;  %v1349_v59 = vsel %vm1309_vm0, %v3116_v44, 0.0  ;;  %v1410_v39 = vsel %vm1309_vm0, %v1370_v46, 0.0  ;;  %v1371_v0 = vmul.f32 %v3116_v44, %v3116_v44 }
 0x171   :  { %v2342_v56 = vpop.f32.mrb[63].mxu0  ;;  %v2404_v57 = vadd.f32 %v2403_v37, %v2402_v48  ;;  %v2405_v58 = vpop.f32.mrb[62].mxu1 }
 0x172   :  { %v1206_v60 = vadd.f32 %v2340_v52, %v3013_v51  ;;  %v2343_v63 = vadd.f32 %v2342_v56, %v2341_v3  ;;  %v2406_v5 = vpop.f32.mrb[63].mxu1  ;;  %v1413_v51 = vsel %vm1309_vm0, %v1371_v0, 0.0  ;;  %v1534_v56 = vld [vmem:[%s3450_s2] sm:$0xff] }
 0x173   :  { %v2407_v1 = vadd.f32 %v2406_v5, %v2405_v58  ;;  %1350 = vadd.xlane.f32.xlu1 %v1349_v59  ;;  %1411 = vadd.xlane.f32.xlu0 %v1410_v39 }
 0x174   :  { %v1209_v2 = vadd.f32 %v2343_v63, %v3015_v54  ;;  %v3130_v4 = vadd.f32 %v2404_v57, %v1206_v60 }
 0x176   :  { %v3132_v6 = vadd.f32 %v2407_v1, %v1209_v2  ;;  %v1352_v8 = vsel %vm1309_vm0, %v3130_v4, 0.0  ;;  %v1372_v41 = vmul.f32 %v3130_v4, %v3130_v4 }
 0x177   :  { %1353 = vadd.xlane.f32.xlu1 %v1352_v8  ;;  %1414 = vadd.xlane.f32.xlu0 %v1413_v51 }
 0x178   :  { %v1355_v10 = vsel %vm1309_vm0, %v3132_v6, 0.0  ;;  %v1416_v12 = vsel %vm1309_vm0, %v1372_v41, 0.0  ;;  %v1373_v54 = vmul.f32 %v3132_v6, %v3132_v6 }
 0x17a   :  { %v1419_v14 = vsel %vm1309_vm0, %v1373_v54, 0.0  ;;  %v1535_v54 = vld [vmem:[%s3450_s2 + $0x8] sm:$0xff] }
 0x17b   :  { %1356 = vadd.xlane.f32.xlu1 %v1355_v10  ;;  %1417 = vadd.xlane.f32.xlu0 %v1416_v12 }
 0x17f   :  { %1420 = vadd.xlane.f32.xlu1 %v1419_v14 }
 0x1cc   :  { %v1312_v11 = vpop.xlane.xlu0 %1311 }
 0x1cd   :  { %v1422_v19 = vmul.f32 0.03125, %v1312_v11 }
 0x1ce   :  { %v1376_v17 = vpop.xlane.xlu1 %1375 }
 0x1cf   :  { %v1454_v18 = vmul.f32 %v1422_v19, %v1422_v19  ;;  %v1438_v20 = vmul.f32 0.03125, %v1376_v17 }
 0x1d0   :  { %v1315_v22 = vpop.xlane.xlu0 %1314 }
 0x1d1   :  { %v1470_v21 = vsub.f32 %v1438_v20, %v1454_v18  ;;  %v3145_v23 = vmul.f32 0.03125, %v1315_v22 }
 0x1d3   :  { %v1486_v26 = vmax.f32 %v1470_v21, 0.0  ;;  %v1455_v30 = vmul.f32 %v3145_v23, %v3145_v23 }
 0x1d4   :  { %v1318_v53 = vpop.xlane.xlu1 %1317  ;;  %v1379_v28 = vpop.xlane.xlu0 %1378 }
 0x1d5   :  { %v1502_v29 = vadd.f32 1e-05, %v1486_v26  ;;  %v3149_v31 = vmul.f32 0.03125, %v1318_v53  ;;  %v1439_v32 = vmul.f32 0.03125, %v1379_v28 }
 0x1d7   :  { %2501 = vrsqrt.f32 %v1502_v29  ;;  %v1471_v36 = vsub.f32 %v1439_v32, %v1455_v30  ;;  %v1456_v38 = vmul.f32 %v3149_v31, %v3149_v31  ;;  %v1566_v32 = vld [vmem:[%s3451_s3] sm:$0xff] }
 0x1d8   :  { %v1321_v55 = vpop.xlane.xlu1 %1320  ;;  %v1382_v25 = vpop.xlane.xlu0 %1381 }
 0x1d9   :  { %v1487_v40 = vmax.f32 %v1471_v36, 0.0  ;;  %v3153_v42 = vmul.f32 0.03125, %v1321_v55  ;;  %v1440_v45 = vmul.f32 0.03125, %v1382_v25 }
 0x1db   :  { %v1503_v35 = vadd.f32 1e-05, %v1487_v40  ;;  %v1472_v27 = vsub.f32 %v1440_v45, %v1456_v38  ;;  %v1457_v48 = vmul.f32 %v3153_v42, %v3153_v42 }
 0x1dc   :  { %v1324_v46 = vpop.xlane.xlu1 %1323  ;;  %v1385_v47 = vpop.xlane.xlu0 %1384 }
 0x1dd   :  { %2503 = vrsqrt.f32 %v1503_v35  ;;  %v1441_v52 = vmul.f32 0.03125, %v1385_v47  ;;  %v1488_v3 = vmax.f32 %v1472_v27, 0.0  ;;  %v3160_v60 = vmul.f32 0.03125, %v1324_v46 }
 0x1df   :  { %v1473_v37 = vsub.f32 %v1441_v52, %v1457_v48  ;;  %v1504_v39 = vadd.f32 1e-05, %v1488_v3  ;;  %v1458_v51 = vmul.f32 %v3160_v60, %v3160_v60  ;;  %v1567_v48 = vld [vmem:[%s3451_s3 + $0x8] sm:$0xff] }
 0x1e0   :  { %v1327_v57 = vpop.xlane.xlu1 %1326  ;;  %v1388_v58 = vpop.xlane.xlu0 %1387 }
 0x1e1   :  { %v2502_v59 = vpop.eup %2501  ;;  %v3162_v63 = vmul.f32 0.03125, %v1327_v57  ;;  %v1489_v0 = vmax.f32 %v1473_v37, 0.0  ;;  %v1442_v1 = vmul.f32 0.03125, %v1388_v58  ;;  %2505 = vrsqrt.f32 %v1504_v39 }
 0x1e2   :  { %v1550_v5 = vmul.f32 %v2502_v59, %v1534_v56 }
 0x1e3   :  { %v1459_v41 = vmul.f32 %v3162_v63, %v3162_v63  ;;  %v1505_v11 = vadd.f32 1e-05, %v1489_v0  ;;  %v1474_v17 = vsub.f32 %v1442_v1, %v1458_v51  ;;  %v1536_v1 = vld [vmem:[%s3450_s2 + $0x10] sm:$0xff] }
 0x1e4   :  { %v1330_v2 = vpop.xlane.xlu1 %1329  ;;  %1616 = vperm.xlu0 %2435, %v1550_v5   ;;  %v1391_v8 = vpop.xlane.xlu0 %1390  ;;  %v1582_v26 = vmul.f32 %v1550_v5, %v1422_v19 }
 0x1e5   :  { %v3168_v10 = vmul.f32 0.03125, %v1330_v2  ;;  %v1443_v12 = vmul.f32 0.03125, %v1391_v8  ;;  %2507 = vrsqrt.f32 %v1505_v11  ;;  %v1490_v36 = vmax.f32 %v1474_v17, 0.0 }
 0x1e6   :  { %v1598_v45 = vsub.f32 %v1566_v32, %v1582_v26 }
 0x1e7   :  { %v2504_v14 = vpop.eup %2503  ;;  %v1475_v18 = vsub.f32 %v1443_v12, %v1459_v41  ;;  %v1460_v53 = vmul.f32 %v3168_v10, %v3168_v10  ;;  %v1506_v52 = vadd.f32 1e-05, %v1490_v36 }
 0x1e8   :  { %v1333_v20 = vpop.xlane.xlu1 %1332  ;;  %v1394_v22 = vpop.xlane.xlu0 %1393  ;;  %v1551_v21 = vmul.f32 %v2504_v14, %v1535_v54 }
 0x1e9   :  { %v1491_v28 = vmax.f32 %v1475_v18, 0.0  ;;  %v3175_v29 = vmul.f32 0.03125, %v1333_v20  ;;  %v1444_v30 = vmul.f32 0.03125, %v1394_v22  ;;  %v1537_v20 = vld [vmem:[%s3450_s2 + $0x18] sm:$0xff]  ;;  %v1539_v22 = vld [vmem:[%s3450_s2 + $0x28] sm:$0xff] }
 0x1ea   :  { %1621 = vperm.xlu1 %2436, %v1551_v21   ;;  %v1583_v35 = vmul.f32 %v1551_v21, %v3145_v23 }
 0x1eb   :  { %v1507_v55 = vadd.f32 1e-05, %v1491_v28  ;;  %v1476_v25 = vsub.f32 %v1444_v30, %v1460_v53  ;;  %v1461_v38 = vmul.f32 %v3175_v29, %v3175_v29  ;;  %v2506_v23 = vpop.eup %2505 }
 0x1ec   :  { %v1336_v19 = vpop.xlane.xlu1 %1335  ;;  %v1397_v40 = vpop.xlane.xlu0 %1396  ;;  %v1599_v59 = vsub.f32 %v1567_v48, %v1583_v35  ;;  %v1552_v54 = vmul.f32 %v2506_v23, %v1536_v1  ;;  %v1540_v35 = vld [vmem:[%s3450_s2 + $0x30] sm:$0xff]  ;;  %v1541_v1 = vld [vmem:[%s3450_s2 + $0x38] sm:$0xff] }
 0x1ed   :  { %2509 = vrsqrt.f32 %v1507_v55  ;;  %v1492_v27 = vmax.f32 %v1476_v25, 0.0  ;;  %v3183_v46 = vmul.f32 0.03125, %v1336_v19  ;;  %v1445_v47 = vmul.f32 0.03125, %v1397_v40 }
 0x1ee   :  { %1712 = vperm.xlu1 %2436, %v1598_v45   ;;  %v1584_v25 = vmul.f32 %v1552_v54, %v3149_v31  ;;  %v1568_v45 = vld [vmem:[%s3451_s3 + $0x10] sm:$0xff] }
 0x1ef   :  { %v1508_v3 = vadd.f32 1e-05, %v1492_v27  ;;  %v1477_v37 = vsub.f32 %v1445_v47, %v1461_v38  ;;  %v1462_v56 = vmul.f32 %v3183_v46, %v3183_v46  ;;  %v2508_v14 = vpop.eup %2507 }
 0x1f0   :  { %v1339_v57 = vpop.xlane.xlu1 %1338  ;;  %v1400_v58 = vpop.xlane.xlu0 %1399  ;;  %v1553_v36 = vmul.f32 %v2508_v14, %v1537_v20 }
 0x1f1   :  { %2511 = vrsqrt.f32 %v1508_v3  ;;  %v1493_v5 = vmax.f32 %v1477_v37, 0.0  ;;  %v3190_v39 = vmul.f32 0.03125, %v1339_v57  ;;  %v1446_v0 = vmul.f32 0.03125, %v1400_v58 }
 0x1f2   :  { %1717 = vperm.xlu1 %2436, %v1599_v59   ;;  %2513 = vrsqrt.f32 %v1506_v52  ;;  %v1600_v37 = vsub.f32 %v1568_v45, %v1584_v25  ;;  %v1585_v57 = vmul.f32 %v1553_v36, %v3153_v42 }
 0x1f3   :  { %v1509_v2 = vadd.f32 1e-05, %v1493_v5  ;;  %v1478_v8 = vsub.f32 %v1446_v0, %v1462_v56  ;;  %v1463_v51 = vmul.f32 %v3190_v39, %v3190_v39  ;;  %v1569_v0 = vld [vmem:[%s3451_s3 + $0x18] sm:$0xff] }
 0x1f4   :  { %v1342_v41 = vpop.xlane.xlu1 %1341  ;;  %v1403_v12 = vpop.xlane.xlu0 %1402  ;;  %v1601_v14 = vsub.f32 %v1569_v0, %v1585_v57 }
 0x1f5   :  { %2515 = vrsqrt.f32 %v1509_v2  ;;  %v1494_v11 = vmax.f32 %v1478_v8, 0.0  ;;  %v3197_v17 = vmul.f32 0.03125, %v1342_v41  ;;  %v1447_v18 = vmul.f32 0.03125, %v1403_v12  ;;  %v1538_v2 = vld [vmem:[%s3450_s2 + $0x20] sm:$0xff] }
 0x1f6   :  { %1626 = vperm.xlu1 %2436, %v1552_v54  }
 0x1f7   :  { %v2510_v21 = vpop.eup %2509  ;;  %v1510_v26 = vadd.f32 1e-05, %v1494_v11  ;;  %v1479_v53 = vsub.f32 %v1447_v18, %v1463_v51  ;;  %v1464_v28 = vmul.f32 %v3197_v17, %v3197_v17 }
 0x1f8   :  { %v1345_v30 = vpop.xlane.xlu1 %1344  ;;  %v1406_v32 = vpop.xlane.xlu0 %1405  ;;  %v3207_v55 = vmul.f32 %v2510_v21, %v1539_v22 }
 0x1f9   :  { %2517 = vrsqrt.f32 %v1510_v26  ;;  %v1495_v38 = vmax.f32 %v1479_v53, 0.0  ;;  %v3210_v19 = vmul.f32 0.03125, %v1345_v30  ;;  %v1448_v40 = vmul.f32 0.03125, %v1406_v32  ;;  %v1542_v26 = vld [vmem:[%s3450_s2 + $0x40] sm:$0xff] }
 0x1fa   :  { %1631 = vperm.xlu1 %2436, %v1553_v36   ;;  %1641 = vperm.xlu0 %2435, %v3207_v55  }
 0x1fb   :  { %v2512_v27 = vpop.eup %2511  ;;  %v1511_v47 = vadd.f32 1e-05, %v1495_v38  ;;  %v1480_v48 = vsub.f32 %v1448_v40, %v1464_v28  ;;  %v1465_v31 = vmul.f32 %v3210_v19, %v3210_v19 }
 0x1fc   :  { %v1348_v52 = vpop.xlane.xlu1 %1347  ;;  %v1409_v3 = vpop.xlane.xlu0 %1408  ;;  %v3221_v56 = vmul.f32 %v2512_v27, %v1540_v35 }
 0x1fd   :  { %v2514_v58 = vpop.eup %2513  ;;  %2519 = vrsqrt.f32 %v1511_v47  ;;  %v1496_v59 = vmax.f32 %v1480_v48, 0.0  ;;  %v3224_v23 = vmul.f32 0.03125, %v1348_v52  ;;  %v1449_v5 = vmul.f32 0.03125, %v1409_v3  ;;  %v1570_v47 = vld [vmem:[%s3451_s3 + $0x20] sm:$0xff]  ;;  %v1543_v48 = vld [vmem:[%s3450_s2 + $0x48] sm:$0xff] }
 0x1fe   :  { %1722 = vperm.xlu1 %2436, %v1600_v37   ;;  %1646 = vperm.xlu0 %2435, %v3221_v56   ;;  %v1554_v18 = vmul.f32 %v2514_v58, %v1538_v2 }
 0x1ff   :  { %v2516_v42 = vpop.eup %2515  ;;  %v1512_v8 = vadd.f32 1e-05, %v1496_v59  ;;  %v1481_v51 = vsub.f32 %v1449_v5, %v1465_v31  ;;  %v1466_v41 = vmul.f32 %v3224_v23, %v3224_v23  ;;  %v1587_v5 = vmul.f32 %v3207_v55, %v3162_v63 }
 0x200   :  { %v1351_v12 = vpop.xlane.xlu1 %1350  ;;  %v1412_v54 = vpop.xlane.xlu0 %1411  ;;  %v1557_v11 = vmul.f32 %v2516_v42, %v1541_v1  ;;  %v1586_v40 = vmul.f32 %v1554_v18, %v3160_v60  ;;  %v1571_v42 = vld [vmem:[%s3451_s3 + $0x28] sm:$0xff] }
 0x201   :  { %2521 = vrsqrt.f32 %v1512_v8  ;;  %v1497_v20 = vmax.f32 %v1481_v51, 0.0  ;;  %v3238_v22 = vmul.f32 0.03125, %v1351_v12  ;;  %v1450_v21 = vmul.f32 0.03125, %v1412_v54  ;;  %v1544_v8 = vld [vmem:[%s3450_s2 + $0x50] sm:$0xff] }
 0x202   :  { %1727 = vperm.xlu1 %2436, %v1601_v14   ;;  %1651 = vperm.xlu0 %2435, %v1557_v11   ;;  %v1602_v58 = vsub.f32 %v1570_v47, %v1586_v40  ;;  %v1603_v63 = vsub.f32 %v1571_v42, %v1587_v5  ;;  %v1588_v14 = vmul.f32 %v3221_v56, %v3168_v10  ;;  %v1573_v40 = vld [vmem:[%s3451_s3 + $0x38] sm:$0xff] }
 0x203   :  { %v2518_v53 = vpop.eup %2517  ;;  %v1513_v28 = vadd.f32 1e-05, %v1497_v20  ;;  %v1482_v30 = vsub.f32 %v1450_v21, %v1466_v41  ;;  %v1467_v32 = vmul.f32 %v3238_v22, %v3238_v22 }
 0x204   :  { %v1354_v36 = vpop.xlane.xlu1 %1353  ;;  %v1415_v25 = vpop.xlane.xlu0 %1414  ;;  %v3245_v38 = vmul.f32 %v2518_v53, %v1542_v26  ;;  %v1572_v26 = vld [vmem:[%s3451_s3 + $0x30] sm:$0xff]  ;;  %v1545_v53 = vld [vmem:[%s3450_s2 + $0x58] sm:$0xff] }
 0x205   :  { %2523 = vrsqrt.f32 %v1513_v28  ;;  %v1498_v45 = vmax.f32 %v1482_v30, 0.0  ;;  %v3248_v35 = vmul.f32 0.03125, %v1354_v36  ;;  %v1451_v27 = vmul.f32 0.03125, %v1415_v25 }
 0x206   :  { %1636 = vperm.xlu1 %2436, %v1554_v18   ;;  %1656 = vperm.xlu0 %2435, %v3245_v38   ;;  %v1604_v10 = vsub.f32 %v1572_v26, %v1588_v14  ;;  %v1589_v36 = vmul.f32 %v1557_v11, %v3175_v29  ;;  %v1924_v29 = vld [vmem:[%s3453_s5 + $0x8] sm:$0xff] }
 0x207   :  { %v2520_v31 = vpop.eup %2519  ;;  %v1514_v52 = vadd.f32 1e-05, %v1498_v45  ;;  %v1483_v3 = vsub.f32 %v1451_v27, %v1467_v32  ;;  %v1468_v60 = vmul.f32 %v3248_v35, %v3248_v35  ;;  %v1546_v45 = vld [vmem:[%s3450_s2 + $0x60] sm:$0xff] }
 0x208   :  { %v1357_v37 = vpop.xlane.xlu1 %1356  ;;  %v1418_v57 = vpop.xlane.xlu0 %1417  ;;  %v1559_v59 = vmul.f32 %v2520_v31, %v1543_v48  ;;  %v1923_v27 = vld [vmem:[%s3453_s5] sm:$0xff]  ;;  %v2562_v48 = vmov 0.0|0.0  }
 0x209   :  { %2525 = vrsqrt.f32 %v1514_v52  ;;  %v1499_v0 = vmax.f32 %v1483_v3, 0.0  ;;  %v3261_v1 = vmul.f32 0.03125, %v1357_v37  ;;  %v1452_v2 = vmul.f32 0.03125, %v1418_v57  ;;  %2424 = vmatprep.subr.bf16.mxu0 %v2562_v48  ;;  %v1574_v37 = vld [vmem:[%s3451_s3 + $0x40] sm:$0xff]  ;;  %v1547_v57 = vld [vmem:[%s3450_s2 + $0x68] sm:$0xff] }
 0x20a   :  { %1732 = vperm.xlu1 %2436, %v1602_v58   ;;  %1661 = vperm.xlu0 %2435, %v1559_v59   ;;  %v2425_v31 = vpack.c.bf16 %v1924_v29, %v1923_v27  ;;  %v1605_v52 = vsub.f32 %v1573_v40, %v1589_v36 }
 0x20b   :  { %v2522_v51 = vpop.eup %2521  ;;  %v1515_v41 = vadd.f32 1e-05, %v1499_v0  ;;  %v1484_v12 = vsub.f32 %v1452_v2, %v1468_v60  ;;  %v1469_v18 = vmul.f32 %v3261_v1, %v3261_v1  ;;  %v1590_v60 = vmul.f32 %v3245_v38, %v3183_v46  ;;  %v1575_v46 = vld [vmem:[%s3451_s3 + $0x48] sm:$0xff]  ;;  %v1548_v38 = vld [vmem:[%s3450_s2 + $0x70] sm:$0xff] }
 0x20c   :  { %v1421_v54 = vpop.xlane.xlu1 %1420  ;;  %v1560_v55 = vmul.f32 %v2522_v51, %v1544_v8  ;;  %2426 = vmatpush3.bf16.msra.mxu0 %v2425_v31  ;;  %v1591_v2 = vmul.f32 %v1559_v59, %v3190_v39  ;;  %v1549_v39 = vld [vmem:[%s3450_s2 + $0x78] sm:$0xff] }
 0x20d   :  { %2527 = vrsqrt.f32 %v1515_v41  ;;  %v1500_v20 = vmax.f32 %v1484_v12, 0.0  ;;  %v1453_v21 = vmul.f32 0.03125, %v1421_v54  ;;  %2427 = vmatprep.subr.bf16.mxu0 %v2562_v48  ;;  %v1606_v5 = vsub.f32 %v1574_v37, %v1590_v60  ;;  %v1576_v12 = vld [vmem:[%s3451_s3 + $0x50] sm:$0xff] }
 0x20e   :  { %1737 = vperm.xlu1 %2436, %v1603_v63   ;;  %1666 = vperm.xlu0 %2435, %v1560_v55   ;;  %v1607_v8 = vsub.f32 %v1575_v46, %v1591_v2  ;;  %v1592_v41 = vmul.f32 %v1560_v55, %v3197_v17  ;;  %v1581_v17 = vld [vmem:[%s3451_s3 + $0x78] sm:$0xff] }
 0x20f   :  { %v2524_v28 = vpop.eup %2523  ;;  %v1516_v30 = vadd.f32 1e-05, %v1500_v20  ;;  %v1485_v32 = vsub.f32 %v1453_v21, %v1469_v18  ;;  %v1577_v18 = vld [vmem:[%s3451_s3 + $0x58] sm:$0xff] }
 0x210   :  { %v1561_v56 = vmul.f32 %v2524_v28, %v1545_v53  ;;  %v1608_v54 = vsub.f32 %v1576_v12, %v1592_v41 }
 0x211   :  { %2529 = vrsqrt.f32 %v1516_v30  ;;  %v1501_v25 = vmax.f32 %v1485_v32, 0.0  ;;  %v1579_v30 = vld [vmem:[%s3451_s3 + $0x68] sm:$0xff] }
 0x212   :  { %1742 = vperm.xlu1 %2436, %v1604_v10   ;;  %1671 = vperm.xlu0 %2435, %v1561_v56   ;;  %v1593_v14 = vmul.f32 %v1561_v56, %v3210_v19  ;;  %v1578_v19 = vld [vmem:[%s3451_s3 + $0x60] sm:$0xff]  ;;  %v1925_v56 = vld [vmem:[%s3453_s5 + $0x10] sm:$0xff] }
 0x213   :  { %v2526_v11 = vpop.eup %2525  ;;  %v1517_v47 = vadd.f32 1e-05, %v1501_v25  ;;  %v2564_v25 = vmov 0.0  }
 0x214   :  { %v1562_v3 = vmul.f32 %v2526_v11, %v1546_v45  ;;  %v1609_v20 = vsub.f32 %v1577_v18, %v1593_v14  ;;  %2421 = vmatprep.mubr.msk.f32.mxu0 %vm2563_vm1, %v2564_v25  ;;  %v1855_v18 = vld [vmem:[%s3452_s4 + $0x8] sm:$0xff] }
 0x215   :  { %2531 = vrsqrt.f32 %v1517_v47 }
 0x216   :  { %1747 = vperm.xlu1 %2436, %v1605_v52   ;;  %1676 = vperm.xlu0 %2435, %v1562_v3   ;;  %v1594_v26 = vmul.f32 %v1562_v3, %v3224_v23  ;;  %v1580_v23 = vld [vmem:[%s3451_s3 + $0x70] sm:$0xff] }
 0x217   :  { %v2528_v58 = vpop.eup %2527 }
 0x218   :  { %v1563_v0 = vmul.f32 %v2528_v58, %v1547_v57  ;;  %v1610_v53 = vsub.f32 %v1578_v19, %v1594_v26 }
 0x21a   :  { %1752 = vperm.xlu1 %2436, %v1606_v5   ;;  %1681 = vperm.xlu0 %2435, %v1563_v0   ;;  %v1595_v28 = vmul.f32 %v1563_v0, %v3238_v22  ;;  %v1926_v22 = vld [vmem:[%s3453_s5 + $0x18] sm:$0xff] }
 0x21b   :  { %v2530_v42 = vpop.eup %2529  ;;  %v2428_v36 = vpack.c.bf16 %v1926_v22, %v1925_v56 }
 0x21c   :  { %v1564_v51 = vmul.f32 %v2530_v42, %v1548_v38  ;;  %v1611_v32 = vsub.f32 %v1579_v30, %v1595_v28 }
 0x21d   :  { %2429 = vmatpush3.bf16.msra.mxu0 %v2428_v36 }
 0x21e   :  { %1757 = vperm.xlu1 %2436, %v1607_v8   ;;  %1686 = vperm.xlu0 %2435, %v1564_v51  }
 0x21f   :  { %v2532_v59 = vpop.eup %2531 }
 0x220   :  { %v1565_v63 = vmul.f32 %v2532_v59, %v1549_v39 }
 0x222   :  { %1762 = vperm.xlu1 %2436, %v1608_v54   ;;  %1691 = vperm.xlu0 %2435, %v1565_v63   ;;  %v1597_v55 = vmul.f32 %v1565_v63, %v3261_v1  ;;  %v1596_v1 = vmul.f32 %v1564_v51, %v3248_v35 }
 0x224   :  { %v1613_v21 = vsub.f32 %v1581_v17, %v1597_v55  ;;  %v1612_v10 = vsub.f32 %v1580_v23, %v1596_v1 }
 0x226   :  { %1767 = vperm.xlu1 %2436, %v1609_v20   ;;  %1787 = vperm.xlu0 %2435, %v1613_v21   ;;  %v1854_v21 = vld [vmem:[%s3452_s4] sm:$0xff] }
 0x22a   :  { %1772 = vperm.xlu1 %2436, %v1610_v53   ;;  %v1856_v53 = vld [vmem:[%s3452_s4 + $0x10] sm:$0xff] }
 0x22e   :  { %1777 = vperm.xlu1 %2436, %v1611_v32   ;;  %v1857_v32 = vld [vmem:[%s3452_s4 + $0x18] sm:$0xff] }
 0x232   :  { %1782 = vperm.xlu1 %2436, %v1612_v10  }
 0x263   :  { %v1617_v27 = vpop.permute.xlu0 %1616 }
 0x264   :  { %v1694_v0 = vmul.f32 %v1617_v27, %v3018_v7  ;;  %v1858_v27 = vld [vmem:[%s3452_s4 + $0x20] sm:$0xff] }
 0x269   :  { %v1622_v35 = vpop.permute.xlu1 %1621 }
 0x26a   :  { %v1695_v5 = vmul.f32 %v1622_v35, %v3021_v9 }
 0x26d   :  { %v1713_v40 = vpop.permute.xlu1 %1712 }
 0x26e   :  { %v1790_v8 = vadd.f32 %v1713_v40, %v1694_v0 }
 0x270   :  { %v1822_v9 = vmul.f32 0.2, %v1790_v8  ;;  %vm1806_vm3 = vcmp.gt.f32.partialorder %v1790_v8, 0.0 }
 0x271   :  { %v1718_v45 = vpop.permute.xlu1 %1717 }
 0x272   :  { %v1791_v2 = vadd.f32 %v1718_v45, %v1695_v5  ;;  %v1838_v26 = vsel %vm1806_vm3, %v1790_v8, %v1822_v9  ;;  %vm2006_vm3 = vcmask 8192  }
 0x273   :  { %v1870_v56 = vmul.f32 %v1854_v21, %v1838_v26 }
 0x274   :  { %v1823_v12 = vmul.f32 0.2, %v1791_v2  ;;  %vm1807_vm2 = vcmp.gt.f32.partialorder %v1791_v2, 0.0 }
 0x275   :  { %v1627_v29 = vpop.permute.xlu1 %1626 }
 0x276   :  { %v1696_v46 = vmul.f32 %v1627_v29, %v3034_v33 }
 0x279   :  { %v1632_v11 = vpop.permute.xlu1 %1631  ;;  %v1642_v47 = vpop.permute.xlu0 %1641 }
 0x27a   :  { %v1697_v51 = vmul.f32 %v1632_v11, %v3036_v34  ;;  %v1699_v7 = vmul.f32 %v1642_v47, %v3052_v62  ;;  %v1839_v34 = vsel %vm1807_vm2, %v1791_v2, %v1823_v12 }
 0x27b   :  { %v1871_v19 = vmul.f32 %v1855_v18, %v1839_v34  ;;  %v1862_v34 = vld [vmem:[%s3452_s4 + $0x40] sm:$0xff] }
 0x27d   :  { %v1723_v48 = vpop.permute.xlu1 %1722  ;;  %v1647_v31 = vpop.permute.xlu0 %1646 }
 0x27e   :  { %v1792_v41 = vadd.f32 %v1723_v48, %v1696_v46  ;;  %v1700_v62 = vmul.f32 %v1647_v31, %v3066_v13  ;;  %v1886_v31 = vsel %vm1309_vm0, %v1870_v56, 0.0 }
 0x280   :  { %v1824_v33 = vmul.f32 0.2, %v1792_v41  ;;  %vm1808_vm4 = vcmp.gt.f32.partialorder %v1792_v41, 0.0 }
 0x281   :  { %v1728_v52 = vpop.permute.xlu1 %1727  ;;  %v1652_v3 = vpop.permute.xlu0 %1651 }
 0x282   :  { %v1793_v39 = vadd.f32 %v1728_v52, %v1697_v51  ;;  %v1840_v28 = vsel %vm1808_vm4, %v1792_v41, %v1824_v33  ;;  %v1701_v23 = vmul.f32 %v1652_v3, %v3068_v24  ;;  %v1887_v24 = vsel %vm1309_vm0, %v1871_v19, 0.0 }
 0x283   :  { %v1872_v25 = vmul.f32 %v1856_v53, %v1840_v28  ;;  %v1888_v2 = vadd.f32 %v1887_v24, %v1886_v31 }
 0x284   :  { %v1825_v17 = vmul.f32 0.2, %v1793_v39  ;;  %vm1809_vm5 = vcmp.gt.f32.partialorder %v1793_v39, 0.0 }
 0x285   :  { %v1637_v60 = vpop.permute.xlu1 %1636  ;;  %v1657_v37 = vpop.permute.xlu0 %1656 }
 0x286   :  { %v1698_v59 = vmul.f32 %v1637_v60, %v3050_v61  ;;  %v1841_v1 = vsel %vm1809_vm5, %v1793_v39, %v1825_v17  ;;  %v1702_v35 = vmul.f32 %v1657_v37, %v3082_v49  ;;  %v1859_v49 = vld [vmem:[%s3452_s4 + $0x28] sm:$0xff]  ;;  %v1889_v37 = vsel %vm1309_vm0, %v1872_v25, 0.0 }
 0x287   :  { %v1873_v45 = vmul.f32 %v1857_v32, %v1841_v1  ;;  %v1890_v41 = vadd.f32 %v1889_v37, %v1888_v2  ;;  %v1864_v32 = vld [vmem:[%s3452_s4 + $0x50] sm:$0xff]  ;;  %v1867_v2 = vld [vmem:[%s3452_s4 + $0x68] sm:$0xff] }
 0x289   :  { %v1733_v57 = vpop.permute.xlu1 %1732  ;;  %v1662_v58 = vpop.permute.xlu0 %1661 }
 0x28a   :  { %v1794_v14 = vadd.f32 %v1733_v57, %v1698_v59  ;;  %v1703_v11 = vmul.f32 %v1662_v58, %v3084_v50  ;;  %v1891_v50 = vsel %vm1309_vm0, %v1873_v45, 0.0  ;;  %v1861_v59 = vld [vmem:[%s3452_s4 + $0x38] sm:$0xff] }
 0x28b   :  { %v1892_v33 = vadd.f32 %v1891_v50, %v1890_v41 }
 0x28c   :  { %v1826_v30 = vmul.f32 0.2, %v1794_v14  ;;  %vm1810_vm6 = vcmp.gt.f32.partialorder %v1794_v14, 0.0 }
 0x28d   :  { %v1738_v38 = vpop.permute.xlu1 %1737  ;;  %v3343_v42 = vpop.permute.xlu0 %1666 }
 0x28e   :  { %v1795_v55 = vadd.f32 %v1738_v38, %v1699_v7  ;;  %v1842_v29 = vsel %vm1810_vm6, %v1794_v14, %v1826_v30  ;;  %v1704_v46 = vmul.f32 %v3343_v42, %v3098_v15  ;;  %v1860_v38 = vld [vmem:[%s3452_s4 + $0x30] sm:$0xff] }
 0x28f   :  { %v1874_v57 = vmul.f32 %v1858_v27, %v1842_v29 }
 0x290   :  { %v1827_v22 = vmul.f32 0.2, %v1795_v55  ;;  %vm1811_vm7 = vcmp.gt.f32.partialorder %v1795_v55, 0.0 }
 0x291   :  { %v1743_v54 = vpop.permute.xlu1 %1742  ;;  %v3347_v63 = vpop.permute.xlu0 %1671  ;;  %v1893_v39 = vsel %vm1309_vm0, %v1874_v57, 0.0 }
 0x292   :  { %v1796_v10 = vadd.f32 %v1743_v54, %v1700_v62  ;;  %v1843_v52 = vsel %vm1811_vm7, %v1795_v55, %v1827_v22  ;;  %v1705_v18 = vmul.f32 %v3347_v63, %v3100_v16  ;;  %v1863_v62 = vld [vmem:[%s3452_s4 + $0x48] sm:$0xff] }
 0x293   :  { %v1875_v58 = vmul.f32 %v1859_v49, %v1843_v52 }
 0x294   :  { %v1828_v47 = vmul.f32 0.2, %v1796_v10  ;;  %vm1812_vm8 = vcmp.gt.f32.partialorder %v1796_v10, 0.0 }
 0x295   :  { %v1748_v20 = vpop.permute.xlu1 %1747  ;;  %v3353_v61 = vpop.permute.xlu0 %1676  ;;  %v1895_v14 = vsel %vm1309_vm0, %v1875_v58, 0.0 }
 0x296   :  { %v1797_v40 = vadd.f32 %v1748_v20, %v1701_v23  ;;  %v1844_v8 = vsel %vm1812_vm8, %v1796_v10, %v1828_v47  ;;  %v1894_v20 = vadd.f32 %v1893_v39, %v1892_v33  ;;  %v1706_v63 = vmul.f32 %v3353_v61, %v3114_v43  ;;  %v1866_v47 = vld [vmem:[%s3452_s4 + $0x60] sm:$0xff] }
 0x297   :  { %v1876_v15 = vmul.f32 %v1860_v38, %v1844_v8 }
 0x298   :  { %v1829_v5 = vmul.f32 0.2, %v1797_v40  ;;  %vm1813_vm9 = vcmp.gt.f32.partialorder %v1797_v40, 0.0  ;;  %v1896_v28 = vadd.f32 %v1895_v14, %v1894_v20 }
 0x299   :  { %v1753_v36 = vpop.permute.xlu1 %1752  ;;  %v3366_v13 = vpop.permute.xlu0 %1681  ;;  %v1897_v30 = vsel %vm1309_vm0, %v1876_v15, 0.0 }
 0x29a   :  { %v1798_v48 = vadd.f32 %v1753_v36, %v1702_v35  ;;  %v1845_v54 = vsel %vm1813_vm9, %v1797_v40, %v1829_v5  ;;  %v1898_v25 = vadd.f32 %v1897_v30, %v1896_v28  ;;  %v1865_v40 = vld [vmem:[%s3452_s4 + $0x58] sm:$0xff]  ;;  %v1707_v27 = vmul.f32 %v3366_v13, %v3116_v44 }
 0x29b   :  { %v1877_v21 = vmul.f32 %v1861_v59, %v1845_v54  ;;  %v1868_v59 = vld [vmem:[%s3452_s4 + $0x70] sm:$0xff] }
 0x29c   :  { %v1830_v51 = vmul.f32 0.2, %v1798_v48  ;;  %vm1814_vm10 = vcmp.gt.f32.partialorder %v1798_v48, 0.0 }
 0x29d   :  { %v1758_v3 = vpop.permute.xlu1 %1757  ;;  %v3378_v60 = vpop.permute.xlu0 %1686  ;;  %v1899_v10 = vsel %vm1309_vm0, %v1877_v21, 0.0 }
 0x29e   :  { %v1799_v0 = vadd.f32 %v1758_v3, %v1703_v11  ;;  %v1846_v17 = vsel %vm1814_vm10, %v1798_v48, %v1830_v51  ;;  %v1900_v24 = vadd.f32 %v1899_v10, %v1898_v25  ;;  %v1708_v57 = vmul.f32 %v3378_v60, %v3130_v4 }
 0x29f   :  { %v1878_v16 = vmul.f32 %v1862_v34, %v1846_v17 }
 0x2a0   :  { %v1831_v9 = vmul.f32 0.2, %v1799_v0  ;;  %vm1815_vm11 = vcmp.gt.f32.partialorder %v1799_v0, 0.0 }
 0x2a1   :  { %v1763_v12 = vpop.permute.xlu1 %1762  ;;  %v1692_v42 = vpop.permute.xlu0 %1691  ;;  %v1901_v45 = vsel %vm1309_vm0, %v1878_v16, 0.0 }
 0x2a2   :  { %v1800_v7 = vadd.f32 %v1763_v12, %v1704_v46  ;;  %v1847_v19 = vsel %vm1815_vm11, %v1799_v0, %v1831_v9  ;;  %v1709_v35 = vmul.f32 %v1692_v42, %v3132_v6  ;;  %v1902_v52 = vadd.f32 %v1901_v45, %v1900_v24  ;;  %v1869_v12 = vld [vmem:[%s3452_s4 + $0x78] sm:$0xff]  ;;  %s2565_s4 = smov [#allocation2]  }
 0x2a3   :  { %v1879_v56 = vmul.f32 %v1863_v62, %v1847_v19  ;;  %s2014_s28 = sshll.u32 %s2565_s4, 4  ;;  %s2015_s28 = int_to_ptr.vmem [resolvable:$true] %s2014_s28 }
 0x2a4   :  { %v1832_v55 = vmul.f32 0.2, %v1800_v7  ;;  %vm1816_vm12 = vcmp.gt.f32.partialorder %v1800_v7, 0.0  ;;  %s2537_s29 = scalar_lea.vmem %s2015_s28, 16  ;;  %s2541_s30 = scalar_lea.vmem %s2015_s28, 32 }
 0x2a5   :  { %v1768_v26 = vpop.permute.xlu1 %1767  ;;  %v1788_v22 = vpop.permute.xlu0 %1787  ;;  %v1903_v48 = vsel %vm1309_vm0, %v1879_v56, 0.0  ;;  %p2538_p0 = scmp.ne.s32.totalorder %s2015_s28, %s2537_s29  ;;  %p2542_p1 = scmp.lt.s32.totalorder %s2015_s28, %s2015_s28 }
 0x2a6   :  { %v1801_v53 = vadd.f32 %v1768_v26, %v1705_v18  ;;  %v1848_v1 = vsel %vm1816_vm12, %v1800_v7, %v1832_v55  ;;  %v1805_v11 = vadd.f32 %v1788_v22, %v1709_v35  ;;  %v1904_v5 = vadd.f32 %v1903_v48, %v1902_v52  ;;  %p2543_p2 = scmp.lt.s32.totalorder %s2541_s30, %s2537_s29 }
 0x2a7   :  { %v1880_v29 = vmul.f32 %v1864_v32, %v1848_v1 }
 0x2a8   :  { %vm1817_vm13 = vcmp.gt.f32.partialorder %v1801_v53, 0.0  ;;  %v1833_v23 = vmul.f32 0.2, %v1801_v53  ;;  %v1837_v0 = vmul.f32 0.2, %v1805_v11  ;;  %vm1821_vm1 = vcmp.gt.f32.partialorder %v1805_v11, 0.0  ;;  %p2544_p3 = por %p2543_p2, %p2542_p1 }
 0x2a9   :  { %v1773_v36 = vpop.permute.xlu1 %1772  ;;  %v1905_v44 = vsel %vm1309_vm0, %v1880_v29, 0.0 }
 0x2aa   :  { %v1849_v43 = vsel %vm1817_vm13, %v1801_v53, %v1833_v23  ;;  %v1802_v61 = vadd.f32 %v1773_v36, %v1706_v63  ;;  %v1906_v38 = vadd.f32 %v1905_v44, %v1904_v5  ;;  %v1853_v39 = vsel %vm1821_vm1, %v1805_v11, %v1837_v0  ;;  %p2545_p4 = pnand %p2544_p3, %p2538_p0 }
 0x2ab   :  { %v1881_v31 = vmul.f32 %v1865_v40, %v1849_v43  ;;  %v1885_v15 = vmul.f32 %v1869_v12, %v1853_v39 }
 0x2ac   :  { %vm1818_vm14 = vcmp.gt.f32.partialorder %v1802_v61, 0.0  ;;  %v1834_v6 = vmul.f32 0.2, %v1802_v61 }
 0x2ad   :  { %v1778_v49 = vpop.permute.xlu1 %1777  ;;  %v1907_v58 = vsel %vm1309_vm0, %v1881_v31, 0.0  ;;  %v1915_v17 = vsel %vm1309_vm0, %v1885_v15, 0.0 }
 0x2ae   :  { %v1850_v3 = vsel %vm1818_vm14, %v1802_v61, %v1834_v6  ;;  %v1803_v37 = vadd.f32 %v1778_v49, %v1707_v27  ;;  %v1908_v41 = vadd.f32 %v1907_v58, %v1906_v38 }
 0x2af   :  { %v1882_v13 = vmul.f32 %v1866_v47, %v1850_v3 }
 0x2b0   :  { %vm1819_vm15 = vcmp.gt.f32.partialorder %v1803_v37, 0.0  ;;  %v1835_v50 = vmul.f32 0.2, %v1803_v37 }
 0x2b1   :  { %v1783_v46 = vpop.permute.xlu1 %1782  ;;  %v1909_v4 = vsel %vm1309_vm0, %v1882_v13, 0.0 }
 0x2b2   :  { %v1851_v8 = vsel %vm1819_vm15, %v1803_v37, %v1835_v50  ;;  %v1804_v51 = vadd.f32 %v1783_v46, %v1708_v57  ;;  %v1910_v7 = vadd.f32 %v1909_v4, %v1908_v41 }
 0x2b3   :  { %v1883_v60 = vmul.f32 %v1867_v2, %v1851_v8 }
 0x2b4   :  { %vm1820_vm2 = vcmp.gt.f32.partialorder %v1804_v51, 0.0  ;;  %v1836_v54 = vmul.f32 0.2, %v1804_v51 }
 0x2b5   :  { %v1911_v9 = vsel %vm1309_vm0, %v1883_v60, 0.0 }
 0x2b6   :  { %v1852_v33 = vsel %vm1820_vm2, %v1804_v51, %v1836_v54  ;;  %v1912_v14 = vadd.f32 %v1911_v9, %v1910_v7 }
 0x2b7   :  { %v1884_v42 = vmul.f32 %v1868_v59, %v1852_v33 }
 0x2b9   :  { %v1913_v18 = vsel %vm1309_vm0, %v1884_v42, 0.0 }
 0x2ba   :  { %v1914_v34 = vadd.f32 %v1913_v18, %v1912_v14 }
 0x2bc   :  { %v1916_v55 = vadd.f32 %v1915_v17, %v1914_v34 }
 0x2be   :  { %v1917_v20 = vrot.slane %v1916_v55, 4 }
 0x2c0   :  { %v1918_v21 = vadd.f32 %v1917_v20, %v1916_v55 }
 0x2c2   :  { %v1919_v26 = vrot.slane %v1918_v21, 2 }
 0x2c4   :  { %v1920_v62 = vadd.f32 %v1919_v26, %v1918_v21 }
 0x2c6   :  { %v1921_v19 = vrot.slane %v1920_v62, 1 }
 0x2c8   :  { %v1922_v53 = vadd.f32 %v1921_v19, %v1920_v62 }
 0x2ca   :  { %2422 = vmatmul.mubr.msk.f32.vlgmr.msra.gmra.mrb[64].mxu0 %vm1309_vm0, %v1922_v53 }
 0x39d   :  { %v1996_v28 = vpop.f32.mrb[64].mxu0 }
 0x39e   :  { %v2151_v30 = vmul.f32 -1.442695, %v1996_v28  ;;  %v2423_v16 = vpop.f32.mrb[65].mxu0 }
 0x3a0   :  { %2533 = vpow2.f32 %v2151_v30 }
 0x3aa   :  { %v2534_v63 = vpop.eup %2533 }
 0x3ab   :  { %v2003_v32 = vadd.f32 1.0, %v2534_v63 }
 0x3ad   :  { %2535 = vrcp.f32 %v2003_v32 }
 0x3b7   :  { %v2536_v1 = vpop.eup %2535 }
 0x3b8   :  { %2007 = vst.msk [vmem:[#allocation2] sm:$0x1] %vm2006_vm3, %v2536_v1 }
 0x3b9   :  { %2548 = shalt.err (!%p2545_p4)
}
 0x3ba   :  { %s2549_s9 = scalar_lea.hbm %s3454_s6, 16 }
 0x3bb   :  { %p2550_p5 = scmp.ne.s32.totalorder %s3454_s6, %s2549_s9  ;;  %p2553_p6 = scmp.lt.u32.totalorder %s2549_s9, %s3454_s6 }
 0x3bd   :  { %p2555_p7 = pnand %p2553_p6, %p2550_p5 }
 0x3bf   :  { %2558 = shalt.err (!%p2555_p7)
}
 0x3c0   :  { %2017 = dma.vmem_to_hbm [thread:$0]  %s2015_s28, 16, %s3454_s6, [#allocation3]  }
 0x3c1   :  { %2559 = dma.done.wait [#allocation3], 16  }
 0x3c2   :  { %2560 = vsyncadd [#allocation3], 4294967280 }
 0x3c3   :  { %2021 = vsyncpa [#allocation3], 1 }

</bundles_post_ra>
